<compile_context>
chip_gen: v6e
topology: v6e:2x2x1
jax: 0.10.0
libtpu: 0.0.40
codegen_flags: <defaults>
</compile_context>

<pallas_src>
import math

import numpy as np
import jax
import jax.numpy as jnp
from jax.experimental import pallas as pl
from jax.experimental.pallas import tpu as pltpu

# ----------------------------------------------------------------------------
# Small-shape configuration (channel / FC widths kept from the module)
# ----------------------------------------------------------------------------
B = 2
H0 = W0 = 16                     # input spatial (original: 200)
C0, C1, C2, C3 = 1, 8, 16, 32    # channel widths, as in the module
C0P = 8                          # conv1 Cin padded 1 -> 8 (exact: zero channels)
FC1, FC2 = 1024, 256             # fc widths, as in the module
K, STRIDE, PAD = 3, 2, 1


def _out_size(n):
    return (n + 2 * PAD - K) // STRIDE + 1


H1, W1 = _out_size(H0), _out_size(W0)          # 8 x 8
H2, W2 = _out_size(H1), _out_size(W1)          # 4 x 4
H3, W3 = _out_size(H2), _out_size(W2)          # 2 x 2
HW0, HW1, HW2, HW3 = H0 * W0, H1 * W1, H2 * W2, H3 * W3


# ----------------------------------------------------------------------------
# Host-side constant construction
# ----------------------------------------------------------------------------
def _make_gather(h_in, w_in):
    """0/1 tap-gather matrices G[t] (HWout, HWin) for a k3/s2/p1 conv.

    (G[t] @ A)[o, ci] == x[ci, ih, iw] of output pixel o's tap t (0 if padded),
    with A the (HWin, Cin) spatial-major / channel-minor activation matrix.
    """
    h_out, w_out = _out_size(h_in), _out_size(w_in)
    g = np.zeros((K * K, h_out * w_out, h_in * w_in), np.float32)
    for di in range(K):
        for dj in range(K):
            t = di * K + dj
            for ho in range(h_out):
                ih = STRIDE * ho + di - PAD
                if ih < 0 or ih >= h_in:
                    continue
                for wo in range(w_out):
                    iw = STRIDE * wo + dj - PAD
                    if iw < 0 or iw >= w_in:
                        continue
                    g[t, ho * w_out + wo, ih * w_in + iw] = 1.0
    return g


def init_torch_params(key):
    """Synthetic weights in PyTorch layouts (Conv2d: OIHW, Linear: (out, in))."""
    ks = jax.random.split(key, 10)

    def u(k, shape, fan_in):
        bound = 1.0 / math.sqrt(fan_in)
        return jax.random.uniform(k, shape, jnp.float32, -bound, bound)

    w1 = u(ks[0], (C1, C0, K, K), C0 * K * K); b1 = u(ks[1], (C1,), C0 * K * K)
    w2 = u(ks[2], (C2, C1, K, K), C1 * K * K); b2 = u(ks[3], (C2,), C1 * K * K)
    w3 = u(ks[4], (C3, C2, K, K), C2 * K * K); b3 = u(ks[5], (C3,), C2 * K * K)
    wf1 = u(ks[6], (FC1, C3 * HW3), C3 * HW3); bf1 = u(ks[7], (FC1,), C3 * HW3)
    wf2 = u(ks[8], (FC2, FC1), FC1);           bf2 = u(ks[9], (FC2,), FC1)
    return (w1, b1, w2, b2, w3, b3, wf1, bf1, wf2, bf2)


def pack_kernel_params(tp):
    """Re-layout PyTorch weights for the fused kernel (a real checkpoint would
    go through exactly these transforms). Large operands are cast to bf16."""
    (w1, b1, w2, b2, w3, b3, wf1, bf1, wf2, bf2) = tp

    def conv_w(w):                     # (Cout, Cin, K, K) -> (K*K, Cin, Cout)
        return jnp.transpose(w, (2, 3, 1, 0)).reshape(K * K, w.shape[1], w.shape[0])

    def row(b):
        return b.reshape(1, -1).astype(jnp.float32)

    wc1 = jnp.pad(conv_w(w1), ((0, 0), (0, C0P - C0), (0, 0)))   # pad Cin 1->8
    wc2 = conv_w(w2)
    wc3 = conv_w(w3)

    # fc1 rows are NCHW-flattened (c, h, w); reorder to the kernel's
    # (spatial-major, channel-minor) activation layout -> (HW3, C3, FC1).
    wf1_k = jnp.transpose(wf1.T.reshape(C3, HW3, FC1), (1, 0, 2))

    g1 = jnp.asarray(_make_gather(H0, W0), jnp.bfloat16)
    g2 = jnp.asarray(_make_gather(H1, W1), jnp.bfloat16)
    g3 = jnp.asarray(_make_gather(H2, W2), jnp.bfloat16)

    return (g1, g2, g3,
            wc1.astype(jnp.float32), row(b1),
            wc2.astype(jnp.float32), row(b2),
            wc3.astype(jnp.float32), row(b3),
            wf1_k.astype(jnp.bfloat16), row(bf1),
            wf2.T.astype(jnp.bfloat16), row(bf2))


# ----------------------------------------------------------------------------
# Fused Pallas kernel (one batch element per grid step)
# ----------------------------------------------------------------------------
def _encoder_kernel(x_ref, g1_ref, g2_ref, g3_ref,
                    wc1_ref, bc1_ref, wc2_ref, bc2_ref, wc3_ref, bc3_ref,
                    wf1_ref, bf1_ref, wf2_ref, bf2_ref, o_ref):
    f32 = jnp.float32

    def mm(a, b):  # bf16 operands, f32 accumulation on the MXU
        return jnp.dot(a.astype(jnp.bfloat16), b.astype(jnp.bfloat16),
                       preferred_element_type=f32)

    def conv_relu(a, g_ref, w_ref, b_ref, hw_out, c_out):
        acc = jnp.zeros((hw_out, c_out), f32)
        for t in range(K * K):                       # 9-tap direct accumulation
            acc = acc + mm(mm(g_ref[t], a), w_ref[t])
        return jnp.maximum(acc + b_ref[...], 0.0)

    a = x_ref[0]                                     # (HW0, C0P) f32
    a = conv_relu(a, g1_ref, wc1_ref, bc1_ref, HW1, C1)   # (64, 8)
    a = conv_relu(a, g2_ref, wc2_ref, bc2_ref, HW2, C2)   # (16, 16)
    a = conv_relu(a, g3_ref, wc3_ref, bc3_ref, HW3, C3)   # (4, 32)

    # fc1 over the NCHW-flattened features; the (c,h,w) -> (hw, c) reorder is
    # folded into wf1's layout, so this is a plain sum of per-pixel matmuls.
    h = jnp.zeros((1, FC1), f32)
    for s in range(HW3):
        h = h + mm(a[s:s + 1, :], wf1_ref[s])
    h = jnp.maximum(h + bf1_ref[...], 0.0)

    # fc2 (+ ReLU), lane-dense (1, 256) store
    h = jnp.maximum(mm(h, wf2_ref[...]) + bf2_ref[...], 0.0)
    o_ref[0] = h


@jax.jit
def encoder_forward(x_nchw, kparams):
    """x_nchw: (B, 1, H0, W0) float32 -> (B, FC2) float32."""
    (g1, g2, g3, wc1, bc1, wc2, bc2, wc3, bc3, wf1, bf1, wf2, bf2) = kparams
    b = x_nchw.shape[0]

    # (B, 1, H, W) -> (B, HW, C0P): spatial-major rows, channel padded to 8
    # with zeros (exact, matching zero-padded wc1 rows).
    x = x_nchw.astype(jnp.float32).reshape(b, HW0, 1)
    x = jnp.pad(x, ((0, 0), (0, 0), (0, C0P - C0)))

    const3 = lambda i: (0, 0, 0)
    const2 = lambda i: (0, 0)

    out = pl.pallas_call(
        _encoder_kernel,
        out_shape=jax.ShapeDtypeStruct((b, 1, FC2), jnp.float32),
        grid=(b,),
        in_specs=[
            pl.BlockSpec((1, HW0, C0P), lambda i: (i, 0, 0)),   # x (per batch)
            pl.BlockSpec(g1.shape, const3),
            pl.BlockSpec(g2.shape, const3),
            pl.BlockSpec(g3.shape, const3),
            pl.BlockSpec(wc1.shape, const3),
            pl.BlockSpec(bc1.shape, const2),
            pl.BlockSpec(wc2.shape, const3),
            pl.BlockSpec(bc2.shape, const2),
            pl.BlockSpec(wc3.shape, const3),
            pl.BlockSpec(bc3.shape, const2),
            pl.BlockSpec(wf1.shape, const3),
            pl.BlockSpec(bf1.shape, const2),
            pl.BlockSpec(wf2.shape, const2),
            pl.BlockSpec(bf2.shape, const2),
        ],
        out_specs=pl.BlockSpec((1, 1, FC2), lambda i: (i, 0, 0)),
        compiler_params=pltpu.CompilerParams(
            dimension_semantics=("parallel",)),     # both TCs on v7x
    )(x, g1, g2, g3, wc1, bc1, wc2, bc2, wc3, bc3, wf1, bf1, wf2, bf2)
    return out.reshape(b, FC2)


# ----------------------------------------------------------------------------
# Pure-JAX reference (f32, highest precision) for validation
# ----------------------------------------------------------------------------
@jax.jit
def reference_forward(x, tp):
    (w1, b1, w2, b2, w3, b3, wf1, bf1, wf2, bf2) = tp
    hi = jax.lax.Precision.HIGHEST

    def conv(x, w, b):
        y = jax.lax.conv_general_dilated(
            x, w, (STRIDE, STRIDE), ((PAD, PAD), (PAD, PAD)),
            dimension_numbers=("NCHW", "OIHW", "NCHW"), precision=hi)
        return jax.nn.relu(y + b[None, :, None, None])

    x = conv(x, w1, b1)
    x = conv(x, w2, b2)
    x = conv(x, w3, b3)
    x = x.reshape(x.shape[0], -1)
    x = jax.nn.relu(jnp.dot(x, wf1.T, precision=hi) + bf1)
    x = jax.nn.relu(jnp.dot(x, wf2.T, precision=hi) + bf2)
    return x


# ----------------------------------------------------------------------------
if __name__ == "__main__":
    root = jax.random.PRNGKey(0)
    kp, kx = jax.random.split(root)

    torch_params = init_torch_params(kp)
    kparams = pack_kernel_params(torch_params)

    x = jax.random.normal(kx, (B, C0, H0, W0), jnp.float32)

    out = jax.block_until_ready(encoder_forward(x, kparams))
    assert out.shape == (B, FC2)

    ref = jax.block_until_ready(reference_forward(x, torch_params))
    np.testing.assert_allclose(np.asarray(out), np.asarray(ref),
                               rtol=5e-2, atol=5e-2)   # bf16-matmul tolerance
    print("KERNEL_OK")
</pallas_src>

<mosaic_0001>
module attributes {stable_mosaic.version = 11 : i64} {
  func.func @_encoder_kernel(%arg0: i32, %arg1: memref<1x256x8xf32, #tpu.memory_space<vmem>>, %arg2: memref<9x64x256xbf16, #tpu.memory_space<vmem>>, %arg3: memref<9x16x64xbf16, #tpu.memory_space<vmem>>, %arg4: memref<9x4x16xbf16, #tpu.memory_space<vmem>>, %arg5: memref<9x8x8xf32, #tpu.memory_space<vmem>>, %arg6: memref<1x8xf32, #tpu.memory_space<vmem>>, %arg7: memref<9x8x16xf32, #tpu.memory_space<vmem>>, %arg8: memref<1x16xf32, #tpu.memory_space<vmem>>, %arg9: memref<9x16x32xf32, #tpu.memory_space<vmem>>, %arg10: memref<1x32xf32, #tpu.memory_space<vmem>>, %arg11: memref<4x32x1024xbf16, #tpu.memory_space<vmem>>, %arg12: memref<1x1024xf32, #tpu.memory_space<vmem>>, %arg13: memref<1024x256xbf16, #tpu.memory_space<vmem>>, %arg14: memref<1x256xf32, #tpu.memory_space<vmem>>, %arg15: memref<1x1x256xf32, #tpu.memory_space<vmem>>) attributes {dimension_semantics = [#tpu.dimension_semantics<parallel>], iteration_bounds = array<i64: 2>, scalar_prefetch = 0 : i64, scratch_operands = 0 : i64, tpu.core_type = #tpu.core_type<tc>, window_params = [{transform_indices = @transform_0, window_bounds = array<i64: 1, 256, 8>}, {pipeline_mode = #tpu.pipeline_mode<synchronous>, transform_indices = @transform_1, window_bounds = array<i64: 9, 64, 256>}, {pipeline_mode = #tpu.pipeline_mode<synchronous>, transform_indices = @transform_2, window_bounds = array<i64: 9, 16, 64>}, {pipeline_mode = #tpu.pipeline_mode<synchronous>, transform_indices = @transform_3, window_bounds = array<i64: 9, 4, 16>}, {pipeline_mode = #tpu.pipeline_mode<synchronous>, transform_indices = @transform_4, window_bounds = array<i64: 9, 8, 8>}, {pipeline_mode = #tpu.pipeline_mode<synchronous>, transform_indices = @transform_5, window_bounds = array<i64: 1, 8>}, {pipeline_mode = #tpu.pipeline_mode<synchronous>, transform_indices = @transform_6, window_bounds = array<i64: 9, 8, 16>}, {pipeline_mode = #tpu.pipeline_mode<synchronous>, transform_indices = @transform_7, window_bounds = array<i64: 1, 16>}, {pipeline_mode = #tpu.pipeline_mode<synchronous>, transform_indices = @transform_8, window_bounds = array<i64: 9, 16, 32>}, {pipeline_mode = #tpu.pipeline_mode<synchronous>, transform_indices = @transform_9, window_bounds = array<i64: 1, 32>}, {pipeline_mode = #tpu.pipeline_mode<synchronous>, transform_indices = @transform_10, window_bounds = array<i64: 4, 32, 1024>}, {pipeline_mode = #tpu.pipeline_mode<synchronous>, transform_indices = @transform_11, window_bounds = array<i64: 1, 1024>}, {pipeline_mode = #tpu.pipeline_mode<synchronous>, transform_indices = @transform_12, window_bounds = array<i64: 1024, 256>}, {pipeline_mode = #tpu.pipeline_mode<synchronous>, transform_indices = @transform_13, window_bounds = array<i64: 1, 256>}, {transform_indices = @transform_14, window_bounds = array<i64: 1, 1, 256>}]} {
    %c0 = arith.constant 0 : index
    %c0_0 = arith.constant 0 : index
    %c0_1 = arith.constant 0 : index
    %0 = vector.load %arg1[%c0, %c0_0, %c0_1] : memref<1x256x8xf32, #tpu.memory_space<vmem>>, vector<1x256x8xf32>
    %1 = vector.shape_cast %0 : vector<1x256x8xf32> to vector<256x8xf32>
    %cst = arith.constant 0.000000e+00 : f32
    %2 = vector.broadcast %cst : f32 to vector<64x8xf32>
    %c0_2 = arith.constant 0 : index
    %c0_3 = arith.constant 0 : index
    %c0_4 = arith.constant 0 : index
    %3 = vector.load %arg2[%c0_2, %c0_3, %c0_4] : memref<9x64x256xbf16, #tpu.memory_space<vmem>>, vector<1x64x256xbf16>
    %4 = vector.shape_cast %3 : vector<1x64x256xbf16> to vector<64x256xbf16>
    %5 = arith.truncf %1 : vector<256x8xf32> to vector<256x8xbf16>
    %cst_5 = arith.constant dense<0.000000e+00> : vector<64x8xf32>
    %6 = tpu.matmul %4, %5, %cst_5 {dimension_numbers = #tpu.dot_dimension_numbers<[1], [0], [0], [1], [0, 0, 1, 1], [], []>} : vector<64x256xbf16>, vector<256x8xbf16>, vector<64x8xf32> -> vector<64x8xf32>
    %c0_6 = arith.constant 0 : index
    %c0_7 = arith.constant 0 : index
    %c0_8 = arith.constant 0 : index
    %7 = vector.load %arg5[%c0_6, %c0_7, %c0_8] : memref<9x8x8xf32, #tpu.memory_space<vmem>>, vector<1x8x8xf32>
    %8 = vector.shape_cast %7 : vector<1x8x8xf32> to vector<8x8xf32>
    %9 = arith.truncf %6 : vector<64x8xf32> to vector<64x8xbf16>
    %10 = arith.truncf %8 : vector<8x8xf32> to vector<8x8xbf16>
    %cst_9 = arith.constant dense<0.000000e+00> : vector<64x8xf32>
    %11 = tpu.matmul %9, %10, %cst_9 {dimension_numbers = #tpu.dot_dimension_numbers<[1], [0], [0], [1], [0, 0, 1, 1], [], []>} : vector<64x8xbf16>, vector<8x8xbf16>, vector<64x8xf32> -> vector<64x8xf32>
    %12 = arith.addf %2, %11 : vector<64x8xf32>
    %c1 = arith.constant 1 : index
    %c0_10 = arith.constant 0 : index
    %c0_11 = arith.constant 0 : index
    %13 = vector.load %arg2[%c1, %c0_10, %c0_11] : memref<9x64x256xbf16, #tpu.memory_space<vmem>>, vector<1x64x256xbf16>
    %14 = vector.shape_cast %13 : vector<1x64x256xbf16> to vector<64x256xbf16>
    %15 = arith.truncf %1 : vector<256x8xf32> to vector<256x8xbf16>
    %cst_12 = arith.constant dense<0.000000e+00> : vector<64x8xf32>
    %16 = tpu.matmul %14, %15, %cst_12 {dimension_numbers = #tpu.dot_dimension_numbers<[1], [0], [0], [1], [0, 0, 1, 1], [], []>} : vector<64x256xbf16>, vector<256x8xbf16>, vector<64x8xf32> -> vector<64x8xf32>
    %c1_13 = arith.constant 1 : index
    %c0_14 = arith.constant 0 : index
    %c0_15 = arith.constant 0 : index
    %17 = vector.load %arg5[%c1_13, %c0_14, %c0_15] : memref<9x8x8xf32, #tpu.memory_space<vmem>>, vector<1x8x8xf32>
    %18 = vector.shape_cast %17 : vector<1x8x8xf32> to vector<8x8xf32>
    %19 = arith.truncf %16 : vector<64x8xf32> to vector<64x8xbf16>
    %20 = arith.truncf %18 : vector<8x8xf32> to vector<8x8xbf16>
    %cst_16 = arith.constant dense<0.000000e+00> : vector<64x8xf32>
    %21 = tpu.matmul %19, %20, %cst_16 {dimension_numbers = #tpu.dot_dimension_numbers<[1], [0], [0], [1], [0, 0, 1, 1], [], []>} : vector<64x8xbf16>, vector<8x8xbf16>, vector<64x8xf32> -> vector<64x8xf32>
    %22 = arith.addf %12, %21 : vector<64x8xf32>
    %c2 = arith.constant 2 : index
    %c0_17 = arith.constant 0 : index
    %c0_18 = arith.constant 0 : index
    %23 = vector.load %arg2[%c2, %c0_17, %c0_18] : memref<9x64x256xbf16, #tpu.memory_space<vmem>>, vector<1x64x256xbf16>
    %24 = vector.shape_cast %23 : vector<1x64x256xbf16> to vector<64x256xbf16>
    %25 = arith.truncf %1 : vector<256x8xf32> to vector<256x8xbf16>
    %cst_19 = arith.constant dense<0.000000e+00> : vector<64x8xf32>
    %26 = tpu.matmul %24, %25, %cst_19 {dimension_numbers = #tpu.dot_dimension_numbers<[1], [0], [0], [1], [0, 0, 1, 1], [], []>} : vector<64x256xbf16>, vector<256x8xbf16>, vector<64x8xf32> -> vector<64x8xf32>
    %c2_20 = arith.constant 2 : index
    %c0_21 = arith.constant 0 : index
    %c0_22 = arith.constant 0 : index
    %27 = vector.load %arg5[%c2_20, %c0_21, %c0_22] : memref<9x8x8xf32, #tpu.memory_space<vmem>>, vector<1x8x8xf32>
    %28 = vector.shape_cast %27 : vector<1x8x8xf32> to vector<8x8xf32>
    %29 = arith.truncf %26 : vector<64x8xf32> to vector<64x8xbf16>
    %30 = arith.truncf %28 : vector<8x8xf32> to vector<8x8xbf16>
    %cst_23 = arith.constant dense<0.000000e+00> : vector<64x8xf32>
    %31 = tpu.matmul %29, %30, %cst_23 {dimension_numbers = #tpu.dot_dimension_numbers<[1], [0], [0], [1], [0, 0, 1, 1], [], []>} : vector<64x8xbf16>, vector<8x8xbf16>, vector<64x8xf32> -> vector<64x8xf32>
    %32 = arith.addf %22, %31 : vector<64x8xf32>
    %c3 = arith.constant 3 : index
    %c0_24 = arith.constant 0 : index
    %c0_25 = arith.constant 0 : index
    %33 = vector.load %arg2[%c3, %c0_24, %c0_25] : memref<9x64x256xbf16, #tpu.memory_space<vmem>>, vector<1x64x256xbf16>
    %34 = vector.shape_cast %33 : vector<1x64x256xbf16> to vector<64x256xbf16>
    %35 = arith.truncf %1 : vector<256x8xf32> to vector<256x8xbf16>
    %cst_26 = arith.constant dense<0.000000e+00> : vector<64x8xf32>
    %36 = tpu.matmul %34, %35, %cst_26 {dimension_numbers = #tpu.dot_dimension_numbers<[1], [0], [0], [1], [0, 0, 1, 1], [], []>} : vector<64x256xbf16>, vector<256x8xbf16>, vector<64x8xf32> -> vector<64x8xf32>
    %c3_27 = arith.constant 3 : index
    %c0_28 = arith.constant 0 : index
    %c0_29 = arith.constant 0 : index
    %37 = vector.load %arg5[%c3_27, %c0_28, %c0_29] : memref<9x8x8xf32, #tpu.memory_space<vmem>>, vector<1x8x8xf32>
    %38 = vector.shape_cast %37 : vector<1x8x8xf32> to vector<8x8xf32>
    %39 = arith.truncf %36 : vector<64x8xf32> to vector<64x8xbf16>
    %40 = arith.truncf %38 : vector<8x8xf32> to vector<8x8xbf16>
    %cst_30 = arith.constant dense<0.000000e+00> : vector<64x8xf32>
    %41 = tpu.matmul %39, %40, %cst_30 {dimension_numbers = #tpu.dot_dimension_numbers<[1], [0], [0], [1], [0, 0, 1, 1], [], []>} : vector<64x8xbf16>, vector<8x8xbf16>, vector<64x8xf32> -> vector<64x8xf32>
    %42 = arith.addf %32, %41 : vector<64x8xf32>
    %c4 = arith.constant 4 : index
    %c0_31 = arith.constant 0 : index
    %c0_32 = arith.constant 0 : index
    %43 = vector.load %arg2[%c4, %c0_31, %c0_32] : memref<9x64x256xbf16, #tpu.memory_space<vmem>>, vector<1x64x256xbf16>
    %44 = vector.shape_cast %43 : vector<1x64x256xbf16> to vector<64x256xbf16>
    %45 = arith.truncf %1 : vector<256x8xf32> to vector<256x8xbf16>
    %cst_33 = arith.constant dense<0.000000e+00> : vector<64x8xf32>
    %46 = tpu.matmul %44, %45, %cst_33 {dimension_numbers = #tpu.dot_dimension_numbers<[1], [0], [0], [1], [0, 0, 1, 1], [], []>} : vector<64x256xbf16>, vector<256x8xbf16>, vector<64x8xf32> -> vector<64x8xf32>
    %c4_34 = arith.constant 4 : index
    %c0_35 = arith.constant 0 : index
    %c0_36 = arith.constant 0 : index
    %47 = vector.load %arg5[%c4_34, %c0_35, %c0_36] : memref<9x8x8xf32, #tpu.memory_space<vmem>>, vector<1x8x8xf32>
    %48 = vector.shape_cast %47 : vector<1x8x8xf32> to vector<8x8xf32>
    %49 = arith.truncf %46 : vector<64x8xf32> to vector<64x8xbf16>
    %50 = arith.truncf %48 : vector<8x8xf32> to vector<8x8xbf16>
    %cst_37 = arith.constant dense<0.000000e+00> : vector<64x8xf32>
    %51 = tpu.matmul %49, %50, %cst_37 {dimension_numbers = #tpu.dot_dimension_numbers<[1], [0], [0], [1], [0, 0, 1, 1], [], []>} : vector<64x8xbf16>, vector<8x8xbf16>, vector<64x8xf32> -> vector<64x8xf32>
    %52 = arith.addf %42, %51 : vector<64x8xf32>
    %c5 = arith.constant 5 : index
    %c0_38 = arith.constant 0 : index
    %c0_39 = arith.constant 0 : index
    %53 = vector.load %arg2[%c5, %c0_38, %c0_39] : memref<9x64x256xbf16, #tpu.memory_space<vmem>>, vector<1x64x256xbf16>
    %54 = vector.shape_cast %53 : vector<1x64x256xbf16> to vector<64x256xbf16>
    %55 = arith.truncf %1 : vector<256x8xf32> to vector<256x8xbf16>
    %cst_40 = arith.constant dense<0.000000e+00> : vector<64x8xf32>
    %56 = tpu.matmul %54, %55, %cst_40 {dimension_numbers = #tpu.dot_dimension_numbers<[1], [0], [0], [1], [0, 0, 1, 1], [], []>} : vector<64x256xbf16>, vector<256x8xbf16>, vector<64x8xf32> -> vector<64x8xf32>
    %c5_41 = arith.constant 5 : index
    %c0_42 = arith.constant 0 : index
    %c0_43 = arith.constant 0 : index
    %57 = vector.load %arg5[%c5_41, %c0_42, %c0_43] : memref<9x8x8xf32, #tpu.memory_space<vmem>>, vector<1x8x8xf32>
    %58 = vector.shape_cast %57 : vector<1x8x8xf32> to vector<8x8xf32>
    %59 = arith.truncf %56 : vector<64x8xf32> to vector<64x8xbf16>
    %60 = arith.truncf %58 : vector<8x8xf32> to vector<8x8xbf16>
    %cst_44 = arith.constant dense<0.000000e+00> : vector<64x8xf32>
    %61 = tpu.matmul %59, %60, %cst_44 {dimension_numbers = #tpu.dot_dimension_numbers<[1], [0], [0], [1], [0, 0, 1, 1], [], []>} : vector<64x8xbf16>, vector<8x8xbf16>, vector<64x8xf32> -> vector<64x8xf32>
    %62 = arith.addf %52, %61 : vector<64x8xf32>
    %c6 = arith.constant 6 : index
    %c0_45 = arith.constant 0 : index
    %c0_46 = arith.constant 0 : index
    %63 = vector.load %arg2[%c6, %c0_45, %c0_46] : memref<9x64x256xbf16, #tpu.memory_space<vmem>>, vector<1x64x256xbf16>
    %64 = vector.shape_cast %63 : vector<1x64x256xbf16> to vector<64x256xbf16>
    %65 = arith.truncf %1 : vector<256x8xf32> to vector<256x8xbf16>
    %cst_47 = arith.constant dense<0.000000e+00> : vector<64x8xf32>
    %66 = tpu.matmul %64, %65, %cst_47 {dimension_numbers = #tpu.dot_dimension_numbers<[1], [0], [0], [1], [0, 0, 1, 1], [], []>} : vector<64x256xbf16>, vector<256x8xbf16>, vector<64x8xf32> -> vector<64x8xf32>
    %c6_48 = arith.constant 6 : index
    %c0_49 = arith.constant 0 : index
    %c0_50 = arith.constant 0 : index
    %67 = vector.load %arg5[%c6_48, %c0_49, %c0_50] : memref<9x8x8xf32, #tpu.memory_space<vmem>>, vector<1x8x8xf32>
    %68 = vector.shape_cast %67 : vector<1x8x8xf32> to vector<8x8xf32>
    %69 = arith.truncf %66 : vector<64x8xf32> to vector<64x8xbf16>
    %70 = arith.truncf %68 : vector<8x8xf32> to vector<8x8xbf16>
    %cst_51 = arith.constant dense<0.000000e+00> : vector<64x8xf32>
    %71 = tpu.matmul %69, %70, %cst_51 {dimension_numbers = #tpu.dot_dimension_numbers<[1], [0], [0], [1], [0, 0, 1, 1], [], []>} : vector<64x8xbf16>, vector<8x8xbf16>, vector<64x8xf32> -> vector<64x8xf32>
    %72 = arith.addf %62, %71 : vector<64x8xf32>
    %c7 = arith.constant 7 : index
    %c0_52 = arith.constant 0 : index
    %c0_53 = arith.constant 0 : index
    %73 = vector.load %arg2[%c7, %c0_52, %c0_53] : memref<9x64x256xbf16, #tpu.memory_space<vmem>>, vector<1x64x256xbf16>
    %74 = vector.shape_cast %73 : vector<1x64x256xbf16> to vector<64x256xbf16>
    %75 = arith.truncf %1 : vector<256x8xf32> to vector<256x8xbf16>
    %cst_54 = arith.constant dense<0.000000e+00> : vector<64x8xf32>
    %76 = tpu.matmul %74, %75, %cst_54 {dimension_numbers = #tpu.dot_dimension_numbers<[1], [0], [0], [1], [0, 0, 1, 1], [], []>} : vector<64x256xbf16>, vector<256x8xbf16>, vector<64x8xf32> -> vector<64x8xf32>
    %c7_55 = arith.constant 7 : index
    %c0_56 = arith.constant 0 : index
    %c0_57 = arith.constant 0 : index
    %77 = vector.load %arg5[%c7_55, %c0_56, %c0_57] : memref<9x8x8xf32, #tpu.memory_space<vmem>>, vector<1x8x8xf32>
    %78 = vector.shape_cast %77 : vector<1x8x8xf32> to vector<8x8xf32>
    %79 = arith.truncf %76 : vector<64x8xf32> to vector<64x8xbf16>
    %80 = arith.truncf %78 : vector<8x8xf32> to vector<8x8xbf16>
    %cst_58 = arith.constant dense<0.000000e+00> : vector<64x8xf32>
    %81 = tpu.matmul %79, %80, %cst_58 {dimension_numbers = #tpu.dot_dimension_numbers<[1], [0], [0], [1], [0, 0, 1, 1], [], []>} : vector<64x8xbf16>, vector<8x8xbf16>, vector<64x8xf32> -> vector<64x8xf32>
    %82 = arith.addf %72, %81 : vector<64x8xf32>
    %c8 = arith.constant 8 : index
    %c0_59 = arith.constant 0 : index
    %c0_60 = arith.constant 0 : index
    %83 = vector.load %arg2[%c8, %c0_59, %c0_60] : memref<9x64x256xbf16, #tpu.memory_space<vmem>>, vector<1x64x256xbf16>
    %84 = vector.shape_cast %83 : vector<1x64x256xbf16> to vector<64x256xbf16>
    %85 = arith.truncf %1 : vector<256x8xf32> to vector<256x8xbf16>
    %cst_61 = arith.constant dense<0.000000e+00> : vector<64x8xf32>
    %86 = tpu.matmul %84, %85, %cst_61 {dimension_numbers = #tpu.dot_dimension_numbers<[1], [0], [0], [1], [0, 0, 1, 1], [], []>} : vector<64x256xbf16>, vector<256x8xbf16>, vector<64x8xf32> -> vector<64x8xf32>
    %c8_62 = arith.constant 8 : index
    %c0_63 = arith.constant 0 : index
    %c0_64 = arith.constant 0 : index
    %87 = vector.load %arg5[%c8_62, %c0_63, %c0_64] : memref<9x8x8xf32, #tpu.memory_space<vmem>>, vector<1x8x8xf32>
    %88 = vector.shape_cast %87 : vector<1x8x8xf32> to vector<8x8xf32>
    %89 = arith.truncf %86 : vector<64x8xf32> to vector<64x8xbf16>
    %90 = arith.truncf %88 : vector<8x8xf32> to vector<8x8xbf16>
    %cst_65 = arith.constant dense<0.000000e+00> : vector<64x8xf32>
    %91 = tpu.matmul %89, %90, %cst_65 {dimension_numbers = #tpu.dot_dimension_numbers<[1], [0], [0], [1], [0, 0, 1, 1], [], []>} : vector<64x8xbf16>, vector<8x8xbf16>, vector<64x8xf32> -> vector<64x8xf32>
    %92 = arith.addf %82, %91 : vector<64x8xf32>
    %c0_66 = arith.constant 0 : index
    %c0_67 = arith.constant 0 : index
    %93 = vector.load %arg6[%c0_66, %c0_67] : memref<1x8xf32, #tpu.memory_space<vmem>>, vector<1x8xf32>
    %94 = vector.broadcast %93 : vector<1x8xf32> to vector<64x8xf32>
    %95 = arith.addf %92, %94 : vector<64x8xf32>
    %cst_68 = arith.constant 0.000000e+00 : f32
    %96 = vector.broadcast %cst_68 : f32 to vector<64x8xf32>
    %97 = arith.maximumf %95, %96 : vector<64x8xf32>
    %cst_69 = arith.constant 0.000000e+00 : f32
    %98 = vector.broadcast %cst_69 : f32 to vector<16x16xf32>
    %c0_70 = arith.constant 0 : index
    %c0_71 = arith.constant 0 : index
    %c0_72 = arith.constant 0 : index
    %99 = vector.load %arg3[%c0_70, %c0_71, %c0_72] : memref<9x16x64xbf16, #tpu.memory_space<vmem>>, vector<1x16x64xbf16>
    %100 = vector.shape_cast %99 : vector<1x16x64xbf16> to vector<16x64xbf16>
    %101 = arith.truncf %97 : vector<64x8xf32> to vector<64x8xbf16>
    %cst_73 = arith.constant dense<0.000000e+00> : vector<16x8xf32>
    %102 = tpu.matmul %100, %101, %cst_73 {dimension_numbers = #tpu.dot_dimension_numbers<[1], [0], [0], [1], [0, 0, 1, 1], [], []>} : vector<16x64xbf16>, vector<64x8xbf16>, vector<16x8xf32> -> vector<16x8xf32>
    %c0_74 = arith.constant 0 : index
    %c0_75 = arith.constant 0 : index
    %c0_76 = arith.constant 0 : index
    %103 = vector.load %arg7[%c0_74, %c0_75, %c0_76] : memref<9x8x16xf32, #tpu.memory_space<vmem>>, vector<1x8x16xf32>
    %104 = vector.shape_cast %103 : vector<1x8x16xf32> to vector<8x16xf32>
    %105 = arith.truncf %102 : vector<16x8xf32> to vector<16x8xbf16>
    %106 = arith.truncf %104 : vector<8x16xf32> to vector<8x16xbf16>
    %cst_77 = arith.constant dense<0.000000e+00> : vector<16x16xf32>
    %107 = tpu.matmul %105, %106, %cst_77 {dimension_numbers = #tpu.dot_dimension_numbers<[1], [0], [0], [1], [0, 0, 1, 1], [], []>} : vector<16x8xbf16>, vector<8x16xbf16>, vector<16x16xf32> -> vector<16x16xf32>
    %108 = arith.addf %98, %107 : vector<16x16xf32>
    %c1_78 = arith.constant 1 : index
    %c0_79 = arith.constant 0 : index
    %c0_80 = arith.constant 0 : index
    %109 = vector.load %arg3[%c1_78, %c0_79, %c0_80] : memref<9x16x64xbf16, #tpu.memory_space<vmem>>, vector<1x16x64xbf16>
    %110 = vector.shape_cast %109 : vector<1x16x64xbf16> to vector<16x64xbf16>
    %111 = arith.truncf %97 : vector<64x8xf32> to vector<64x8xbf16>
    %cst_81 = arith.constant dense<0.000000e+00> : vector<16x8xf32>
    %112 = tpu.matmul %110, %111, %cst_81 {dimension_numbers = #tpu.dot_dimension_numbers<[1], [0], [0], [1], [0, 0, 1, 1], [], []>} : vector<16x64xbf16>, vector<64x8xbf16>, vector<16x8xf32> -> vector<16x8xf32>
    %c1_82 = arith.constant 1 : index
    %c0_83 = arith.constant 0 : index
    %c0_84 = arith.constant 0 : index
    %113 = vector.load %arg7[%c1_82, %c0_83, %c0_84] : memref<9x8x16xf32, #tpu.memory_space<vmem>>, vector<1x8x16xf32>
    %114 = vector.shape_cast %113 : vector<1x8x16xf32> to vector<8x16xf32>
    %115 = arith.truncf %112 : vector<16x8xf32> to vector<16x8xbf16>
    %116 = arith.truncf %114 : vector<8x16xf32> to vector<8x16xbf16>
    %cst_85 = arith.constant dense<0.000000e+00> : vector<16x16xf32>
    %117 = tpu.matmul %115, %116, %cst_85 {dimension_numbers = #tpu.dot_dimension_numbers<[1], [0], [0], [1], [0, 0, 1, 1], [], []>} : vector<16x8xbf16>, vector<8x16xbf16>, vector<16x16xf32> -> vector<16x16xf32>
    %118 = arith.addf %108, %117 : vector<16x16xf32>
    %c2_86 = arith.constant 2 : index
    %c0_87 = arith.constant 0 : index
    %c0_88 = arith.constant 0 : index
    %119 = vector.load %arg3[%c2_86, %c0_87, %c0_88] : memref<9x16x64xbf16, #tpu.memory_space<vmem>>, vector<1x16x64xbf16>
    %120 = vector.shape_cast %119 : vector<1x16x64xbf16> to vector<16x64xbf16>
    %121 = arith.truncf %97 : vector<64x8xf32> to vector<64x8xbf16>
    %cst_89 = arith.constant dense<0.000000e+00> : vector<16x8xf32>
    %122 = tpu.matmul %120, %121, %cst_89 {dimension_numbers = #tpu.dot_dimension_numbers<[1], [0], [0], [1], [0, 0, 1, 1], [], []>} : vector<16x64xbf16>, vector<64x8xbf16>, vector<16x8xf32> -> vector<16x8xf32>
    %c2_90 = arith.constant 2 : index
    %c0_91 = arith.constant 0 : index
    %c0_92 = arith.constant 0 : index
    %123 = vector.load %arg7[%c2_90, %c0_91, %c0_92] : memref<9x8x16xf32, #tpu.memory_space<vmem>>, vector<1x8x16xf32>
    %124 = vector.shape_cast %123 : vector<1x8x16xf32> to vector<8x16xf32>
    %125 = arith.truncf %122 : vector<16x8xf32> to vector<16x8xbf16>
    %126 = arith.truncf %124 : vector<8x16xf32> to vector<8x16xbf16>
    %cst_93 = arith.constant dense<0.000000e+00> : vector<16x16xf32>
    %127 = tpu.matmul %125, %126, %cst_93 {dimension_numbers = #tpu.dot_dimension_numbers<[1], [0], [0], [1], [0, 0, 1, 1], [], []>} : vector<16x8xbf16>, vector<8x16xbf16>, vector<16x16xf32> -> vector<16x16xf32>
    %128 = arith.addf %118, %127 : vector<16x16xf32>
    %c3_94 = arith.constant 3 : index
    %c0_95 = arith.constant 0 : index
    %c0_96 = arith.constant 0 : index
    %129 = vector.load %arg3[%c3_94, %c0_95, %c0_96] : memref<9x16x64xbf16, #tpu.memory_space<vmem>>, vector<1x16x64xbf16>
    %130 = vector.shape_cast %129 : vector<1x16x64xbf16> to vector<16x64xbf16>
    %131 = arith.truncf %97 : vector<64x8xf32> to vector<64x8xbf16>
    %cst_97 = arith.constant dense<0.000000e+00> : vector<16x8xf32>
    %132 = tpu.matmul %130, %131, %cst_97 {dimension_numbers = #tpu.dot_dimension_numbers<[1], [0], [0], [1], [0, 0, 1, 1], [], []>} : vector<16x64xbf16>, vector<64x8xbf16>, vector<16x8xf32> -> vector<16x8xf32>
    %c3_98 = arith.constant 3 : index
    %c0_99 = arith.constant 0 : index
    %c0_100 = arith.constant 0 : index
    %133 = vector.load %arg7[%c3_98, %c0_99, %c0_100] : memref<9x8x16xf32, #tpu.memory_space<vmem>>, vector<1x8x16xf32>
    %134 = vector.shape_cast %133 : vector<1x8x16xf32> to vector<8x16xf32>
    %135 = arith.truncf %132 : vector<16x8xf32> to vector<16x8xbf16>
    %136 = arith.truncf %134 : vector<8x16xf32> to vector<8x16xbf16>
    %cst_101 = arith.constant dense<0.000000e+00> : vector<16x16xf32>
    %137 = tpu.matmul %135, %136, %cst_101 {dimension_numbers = #tpu.dot_dimension_numbers<[1], [0], [0], [1], [0, 0, 1, 1], [], []>} : vector<16x8xbf16>, vector<8x16xbf16>, vector<16x16xf32> -> vector<16x16xf32>
    %138 = arith.addf %128, %137 : vector<16x16xf32>
    %c4_102 = arith.constant 4 : index
    %c0_103 = arith.constant 0 : index
    %c0_104 = arith.constant 0 : index
    %139 = vector.load %arg3[%c4_102, %c0_103, %c0_104] : memref<9x16x64xbf16, #tpu.memory_space<vmem>>, vector<1x16x64xbf16>
    %140 = vector.shape_cast %139 : vector<1x16x64xbf16> to vector<16x64xbf16>
    %141 = arith.truncf %97 : vector<64x8xf32> to vector<64x8xbf16>
    %cst_105 = arith.constant dense<0.000000e+00> : vector<16x8xf32>
    %142 = tpu.matmul %140, %141, %cst_105 {dimension_numbers = #tpu.dot_dimension_numbers<[1], [0], [0], [1], [0, 0, 1, 1], [], []>} : vector<16x64xbf16>, vector<64x8xbf16>, vector<16x8xf32> -> vector<16x8xf32>
    %c4_106 = arith.constant 4 : index
    %c0_107 = arith.constant 0 : index
    %c0_108 = arith.constant 0 : index
    %143 = vector.load %arg7[%c4_106, %c0_107, %c0_108] : memref<9x8x16xf32, #tpu.memory_space<vmem>>, vector<1x8x16xf32>
    %144 = vector.shape_cast %143 : vector<1x8x16xf32> to vector<8x16xf32>
    %145 = arith.truncf %142 : vector<16x8xf32> to vector<16x8xbf16>
    %146 = arith.truncf %144 : vector<8x16xf32> to vector<8x16xbf16>
    %cst_109 = arith.constant dense<0.000000e+00> : vector<16x16xf32>
    %147 = tpu.matmul %145, %146, %cst_109 {dimension_numbers = #tpu.dot_dimension_numbers<[1], [0], [0], [1], [0, 0, 1, 1], [], []>} : vector<16x8xbf16>, vector<8x16xbf16>, vector<16x16xf32> -> vector<16x16xf32>
    %148 = arith.addf %138, %147 : vector<16x16xf32>
    %c5_110 = arith.constant 5 : index
    %c0_111 = arith.constant 0 : index
    %c0_112 = arith.constant 0 : index
    %149 = vector.load %arg3[%c5_110, %c0_111, %c0_112] : memref<9x16x64xbf16, #tpu.memory_space<vmem>>, vector<1x16x64xbf16>
    %150 = vector.shape_cast %149 : vector<1x16x64xbf16> to vector<16x64xbf16>
    %151 = arith.truncf %97 : vector<64x8xf32> to vector<64x8xbf16>
    %cst_113 = arith.constant dense<0.000000e+00> : vector<16x8xf32>
    %152 = tpu.matmul %150, %151, %cst_113 {dimension_numbers = #tpu.dot_dimension_numbers<[1], [0], [0], [1], [0, 0, 1, 1], [], []>} : vector<16x64xbf16>, vector<64x8xbf16>, vector<16x8xf32> -> vector<16x8xf32>
    %c5_114 = arith.constant 5 : index
    %c0_115 = arith.constant 0 : index
    %c0_116 = arith.constant 0 : index
    %153 = vector.load %arg7[%c5_114, %c0_115, %c0_116] : memref<9x8x16xf32, #tpu.memory_space<vmem>>, vector<1x8x16xf32>
    %154 = vector.shape_cast %153 : vector<1x8x16xf32> to vector<8x16xf32>
    %155 = arith.truncf %152 : vector<16x8xf32> to vector<16x8xbf16>
    %156 = arith.truncf %154 : vector<8x16xf32> to vector<8x16xbf16>
    %cst_117 = arith.constant dense<0.000000e+00> : vector<16x16xf32>
    %157 = tpu.matmul %155, %156, %cst_117 {dimension_numbers = #tpu.dot_dimension_numbers<[1], [0], [0], [1], [0, 0, 1, 1], [], []>} : vector<16x8xbf16>, vector<8x16xbf16>, vector<16x16xf32> -> vector<16x16xf32>
    %158 = arith.addf %148, %157 : vector<16x16xf32>
    %c6_118 = arith.constant 6 : index
    %c0_119 = arith.constant 0 : index
    %c0_120 = arith.constant 0 : index
    %159 = vector.load %arg3[%c6_118, %c0_119, %c0_120] : memref<9x16x64xbf16, #tpu.memory_space<vmem>>, vector<1x16x64xbf16>
    %160 = vector.shape_cast %159 : vector<1x16x64xbf16> to vector<16x64xbf16>
    %161 = arith.truncf %97 : vector<64x8xf32> to vector<64x8xbf16>
    %cst_121 = arith.constant dense<0.000000e+00> : vector<16x8xf32>
    %162 = tpu.matmul %160, %161, %cst_121 {dimension_numbers = #tpu.dot_dimension_numbers<[1], [0], [0], [1], [0, 0, 1, 1], [], []>} : vector<16x64xbf16>, vector<64x8xbf16>, vector<16x8xf32> -> vector<16x8xf32>
    %c6_122 = arith.constant 6 : index
    %c0_123 = arith.constant 0 : index
    %c0_124 = arith.constant 0 : index
    %163 = vector.load %arg7[%c6_122, %c0_123, %c0_124] : memref<9x8x16xf32, #tpu.memory_space<vmem>>, vector<1x8x16xf32>
    %164 = vector.shape_cast %163 : vector<1x8x16xf32> to vector<8x16xf32>
    %165 = arith.truncf %162 : vector<16x8xf32> to vector<16x8xbf16>
    %166 = arith.truncf %164 : vector<8x16xf32> to vector<8x16xbf16>
    %cst_125 = arith.constant dense<0.000000e+00> : vector<16x16xf32>
    %167 = tpu.matmul %165, %166, %cst_125 {dimension_numbers = #tpu.dot_dimension_numbers<[1], [0], [0], [1], [0, 0, 1, 1], [], []>} : vector<16x8xbf16>, vector<8x16xbf16>, vector<16x16xf32> -> vector<16x16xf32>
    %168 = arith.addf %158, %167 : vector<16x16xf32>
    %c7_126 = arith.constant 7 : index
    %c0_127 = arith.constant 0 : index
    %c0_128 = arith.constant 0 : index
    %169 = vector.load %arg3[%c7_126, %c0_127, %c0_128] : memref<9x16x64xbf16, #tpu.memory_space<vmem>>, vector<1x16x64xbf16>
    %170 = vector.shape_cast %169 : vector<1x16x64xbf16> to vector<16x64xbf16>
    %171 = arith.truncf %97 : vector<64x8xf32> to vector<64x8xbf16>
    %cst_129 = arith.constant dense<0.000000e+00> : vector<16x8xf32>
    %172 = tpu.matmul %170, %171, %cst_129 {dimension_numbers = #tpu.dot_dimension_numbers<[1], [0], [0], [1], [0, 0, 1, 1], [], []>} : vector<16x64xbf16>, vector<64x8xbf16>, vector<16x8xf32> -> vector<16x8xf32>
    %c7_130 = arith.constant 7 : index
    %c0_131 = arith.constant 0 : index
    %c0_132 = arith.constant 0 : index
    %173 = vector.load %arg7[%c7_130, %c0_131, %c0_132] : memref<9x8x16xf32, #tpu.memory_space<vmem>>, vector<1x8x16xf32>
    %174 = vector.shape_cast %173 : vector<1x8x16xf32> to vector<8x16xf32>
    %175 = arith.truncf %172 : vector<16x8xf32> to vector<16x8xbf16>
    %176 = arith.truncf %174 : vector<8x16xf32> to vector<8x16xbf16>
    %cst_133 = arith.constant dense<0.000000e+00> : vector<16x16xf32>
    %177 = tpu.matmul %175, %176, %cst_133 {dimension_numbers = #tpu.dot_dimension_numbers<[1], [0], [0], [1], [0, 0, 1, 1], [], []>} : vector<16x8xbf16>, vector<8x16xbf16>, vector<16x16xf32> -> vector<16x16xf32>
    %178 = arith.addf %168, %177 : vector<16x16xf32>
    %c8_134 = arith.constant 8 : index
    %c0_135 = arith.constant 0 : index
    %c0_136 = arith.constant 0 : index
    %179 = vector.load %arg3[%c8_134, %c0_135, %c0_136] : memref<9x16x64xbf16, #tpu.memory_space<vmem>>, vector<1x16x64xbf16>
    %180 = vector.shape_cast %179 : vector<1x16x64xbf16> to vector<16x64xbf16>
    %181 = arith.truncf %97 : vector<64x8xf32> to vector<64x8xbf16>
    %cst_137 = arith.constant dense<0.000000e+00> : vector<16x8xf32>
    %182 = tpu.matmul %180, %181, %cst_137 {dimension_numbers = #tpu.dot_dimension_numbers<[1], [0], [0], [1], [0, 0, 1, 1], [], []>} : vector<16x64xbf16>, vector<64x8xbf16>, vector<16x8xf32> -> vector<16x8xf32>
    %c8_138 = arith.constant 8 : index
    %c0_139 = arith.constant 0 : index
    %c0_140 = arith.constant 0 : index
    %183 = vector.load %arg7[%c8_138, %c0_139, %c0_140] : memref<9x8x16xf32, #tpu.memory_space<vmem>>, vector<1x8x16xf32>
    %184 = vector.shape_cast %183 : vector<1x8x16xf32> to vector<8x16xf32>
    %185 = arith.truncf %182 : vector<16x8xf32> to vector<16x8xbf16>
    %186 = arith.truncf %184 : vector<8x16xf32> to vector<8x16xbf16>
    %cst_141 = arith.constant dense<0.000000e+00> : vector<16x16xf32>
    %187 = tpu.matmul %185, %186, %cst_141 {dimension_numbers = #tpu.dot_dimension_numbers<[1], [0], [0], [1], [0, 0, 1, 1], [], []>} : vector<16x8xbf16>, vector<8x16xbf16>, vector<16x16xf32> -> vector<16x16xf32>
    %188 = arith.addf %178, %187 : vector<16x16xf32>
    %c0_142 = arith.constant 0 : index
    %c0_143 = arith.constant 0 : index
    %189 = vector.load %arg8[%c0_142, %c0_143] : memref<1x16xf32, #tpu.memory_space<vmem>>, vector<1x16xf32>
    %190 = vector.broadcast %189 : vector<1x16xf32> to vector<16x16xf32>
    %191 = arith.addf %188, %190 : vector<16x16xf32>
    %cst_144 = arith.constant 0.000000e+00 : f32
    %192 = vector.broadcast %cst_144 : f32 to vector<16x16xf32>
    %193 = arith.maximumf %191, %192 : vector<16x16xf32>
    %cst_145 = arith.constant 0.000000e+00 : f32
    %194 = vector.broadcast %cst_145 : f32 to vector<4x32xf32>
    %c0_146 = arith.constant 0 : index
    %c0_147 = arith.constant 0 : index
    %c0_148 = arith.constant 0 : index
    %195 = vector.load %arg4[%c0_146, %c0_147, %c0_148] : memref<9x4x16xbf16, #tpu.memory_space<vmem>>, vector<1x4x16xbf16>
    %196 = vector.shape_cast %195 : vector<1x4x16xbf16> to vector<4x16xbf16>
    %197 = arith.truncf %193 : vector<16x16xf32> to vector<16x16xbf16>
    %cst_149 = arith.constant dense<0.000000e+00> : vector<4x16xf32>
    %198 = tpu.matmul %196, %197, %cst_149 {dimension_numbers = #tpu.dot_dimension_numbers<[1], [0], [0], [1], [0, 0, 1, 1], [], []>} : vector<4x16xbf16>, vector<16x16xbf16>, vector<4x16xf32> -> vector<4x16xf32>
    %c0_150 = arith.constant 0 : index
    %c0_151 = arith.constant 0 : index
    %c0_152 = arith.constant 0 : index
    %199 = vector.load %arg9[%c0_150, %c0_151, %c0_152] : memref<9x16x32xf32, #tpu.memory_space<vmem>>, vector<1x16x32xf32>
    %200 = vector.shape_cast %199 : vector<1x16x32xf32> to vector<16x32xf32>
    %201 = arith.truncf %198 : vector<4x16xf32> to vector<4x16xbf16>
    %202 = arith.truncf %200 : vector<16x32xf32> to vector<16x32xbf16>
    %cst_153 = arith.constant dense<0.000000e+00> : vector<4x32xf32>
    %203 = tpu.matmul %201, %202, %cst_153 {dimension_numbers = #tpu.dot_dimension_numbers<[1], [0], [0], [1], [0, 0, 1, 1], [], []>} : vector<4x16xbf16>, vector<16x32xbf16>, vector<4x32xf32> -> vector<4x32xf32>
    %204 = arith.addf %194, %203 : vector<4x32xf32>
    %c1_154 = arith.constant 1 : index
    %c0_155 = arith.constant 0 : index
    %c0_156 = arith.constant 0 : index
    %205 = vector.load %arg4[%c1_154, %c0_155, %c0_156] : memref<9x4x16xbf16, #tpu.memory_space<vmem>>, vector<1x4x16xbf16>
    %206 = vector.shape_cast %205 : vector<1x4x16xbf16> to vector<4x16xbf16>
    %207 = arith.truncf %193 : vector<16x16xf32> to vector<16x16xbf16>
    %cst_157 = arith.constant dense<0.000000e+00> : vector<4x16xf32>
    %208 = tpu.matmul %206, %207, %cst_157 {dimension_numbers = #tpu.dot_dimension_numbers<[1], [0], [0], [1], [0, 0, 1, 1], [], []>} : vector<4x16xbf16>, vector<16x16xbf16>, vector<4x16xf32> -> vector<4x16xf32>
    %c1_158 = arith.constant 1 : index
    %c0_159 = arith.constant 0 : index
    %c0_160 = arith.constant 0 : index
    %209 = vector.load %arg9[%c1_158, %c0_159, %c0_160] : memref<9x16x32xf32, #tpu.memory_space<vmem>>, vector<1x16x32xf32>
    %210 = vector.shape_cast %209 : vector<1x16x32xf32> to vector<16x32xf32>
    %211 = arith.truncf %208 : vector<4x16xf32> to vector<4x16xbf16>
    %212 = arith.truncf %210 : vector<16x32xf32> to vector<16x32xbf16>
    %cst_161 = arith.constant dense<0.000000e+00> : vector<4x32xf32>
    %213 = tpu.matmul %211, %212, %cst_161 {dimension_numbers = #tpu.dot_dimension_numbers<[1], [0], [0], [1], [0, 0, 1, 1], [], []>} : vector<4x16xbf16>, vector<16x32xbf16>, vector<4x32xf32> -> vector<4x32xf32>
    %214 = arith.addf %204, %213 : vector<4x32xf32>
    %c2_162 = arith.constant 2 : index
    %c0_163 = arith.constant 0 : index
    %c0_164 = arith.constant 0 : index
    %215 = vector.load %arg4[%c2_162, %c0_163, %c0_164] : memref<9x4x16xbf16, #tpu.memory_space<vmem>>, vector<1x4x16xbf16>
    %216 = vector.shape_cast %215 : vector<1x4x16xbf16> to vector<4x16xbf16>
    %217 = arith.truncf %193 : vector<16x16xf32> to vector<16x16xbf16>
    %cst_165 = arith.constant dense<0.000000e+00> : vector<4x16xf32>
    %218 = tpu.matmul %216, %217, %cst_165 {dimension_numbers = #tpu.dot_dimension_numbers<[1], [0], [0], [1], [0, 0, 1, 1], [], []>} : vector<4x16xbf16>, vector<16x16xbf16>, vector<4x16xf32> -> vector<4x16xf32>
    %c2_166 = arith.constant 2 : index
    %c0_167 = arith.constant 0 : index
    %c0_168 = arith.constant 0 : index
    %219 = vector.load %arg9[%c2_166, %c0_167, %c0_168] : memref<9x16x32xf32, #tpu.memory_space<vmem>>, vector<1x16x32xf32>
    %220 = vector.shape_cast %219 : vector<1x16x32xf32> to vector<16x32xf32>
    %221 = arith.truncf %218 : vector<4x16xf32> to vector<4x16xbf16>
    %222 = arith.truncf %220 : vector<16x32xf32> to vector<16x32xbf16>
    %cst_169 = arith.constant dense<0.000000e+00> : vector<4x32xf32>
    %223 = tpu.matmul %221, %222, %cst_169 {dimension_numbers = #tpu.dot_dimension_numbers<[1], [0], [0], [1], [0, 0, 1, 1], [], []>} : vector<4x16xbf16>, vector<16x32xbf16>, vector<4x32xf32> -> vector<4x32xf32>
    %224 = arith.addf %214, %223 : vector<4x32xf32>
    %c3_170 = arith.constant 3 : index
    %c0_171 = arith.constant 0 : index
    %c0_172 = arith.constant 0 : index
    %225 = vector.load %arg4[%c3_170, %c0_171, %c0_172] : memref<9x4x16xbf16, #tpu.memory_space<vmem>>, vector<1x4x16xbf16>
    %226 = vector.shape_cast %225 : vector<1x4x16xbf16> to vector<4x16xbf16>
    %227 = arith.truncf %193 : vector<16x16xf32> to vector<16x16xbf16>
    %cst_173 = arith.constant dense<0.000000e+00> : vector<4x16xf32>
    %228 = tpu.matmul %226, %227, %cst_173 {dimension_numbers = #tpu.dot_dimension_numbers<[1], [0], [0], [1], [0, 0, 1, 1], [], []>} : vector<4x16xbf16>, vector<16x16xbf16>, vector<4x16xf32> -> vector<4x16xf32>
    %c3_174 = arith.constant 3 : index
    %c0_175 = arith.constant 0 : index
    %c0_176 = arith.constant 0 : index
    %229 = vector.load %arg9[%c3_174, %c0_175, %c0_176] : memref<9x16x32xf32, #tpu.memory_space<vmem>>, vector<1x16x32xf32>
    %230 = vector.shape_cast %229 : vector<1x16x32xf32> to vector<16x32xf32>
    %231 = arith.truncf %228 : vector<4x16xf32> to vector<4x16xbf16>
    %232 = arith.truncf %230 : vector<16x32xf32> to vector<16x32xbf16>
    %cst_177 = arith.constant dense<0.000000e+00> : vector<4x32xf32>
    %233 = tpu.matmul %231, %232, %cst_177 {dimension_numbers = #tpu.dot_dimension_numbers<[1], [0], [0], [1], [0, 0, 1, 1], [], []>} : vector<4x16xbf16>, vector<16x32xbf16>, vector<4x32xf32> -> vector<4x32xf32>
    %234 = arith.addf %224, %233 : vector<4x32xf32>
    %c4_178 = arith.constant 4 : index
    %c0_179 = arith.constant 0 : index
    %c0_180 = arith.constant 0 : index
    %235 = vector.load %arg4[%c4_178, %c0_179, %c0_180] : memref<9x4x16xbf16, #tpu.memory_space<vmem>>, vector<1x4x16xbf16>
    %236 = vector.shape_cast %235 : vector<1x4x16xbf16> to vector<4x16xbf16>
    %237 = arith.truncf %193 : vector<16x16xf32> to vector<16x16xbf16>
    %cst_181 = arith.constant dense<0.000000e+00> : vector<4x16xf32>
    %238 = tpu.matmul %236, %237, %cst_181 {dimension_numbers = #tpu.dot_dimension_numbers<[1], [0], [0], [1], [0, 0, 1, 1], [], []>} : vector<4x16xbf16>, vector<16x16xbf16>, vector<4x16xf32> -> vector<4x16xf32>
    %c4_182 = arith.constant 4 : index
    %c0_183 = arith.constant 0 : index
    %c0_184 = arith.constant 0 : index
    %239 = vector.load %arg9[%c4_182, %c0_183, %c0_184] : memref<9x16x32xf32, #tpu.memory_space<vmem>>, vector<1x16x32xf32>
    %240 = vector.shape_cast %239 : vector<1x16x32xf32> to vector<16x32xf32>
    %241 = arith.truncf %238 : vector<4x16xf32> to vector<4x16xbf16>
    %242 = arith.truncf %240 : vector<16x32xf32> to vector<16x32xbf16>
    %cst_185 = arith.constant dense<0.000000e+00> : vector<4x32xf32>
    %243 = tpu.matmul %241, %242, %cst_185 {dimension_numbers = #tpu.dot_dimension_numbers<[1], [0], [0], [1], [0, 0, 1, 1], [], []>} : vector<4x16xbf16>, vector<16x32xbf16>, vector<4x32xf32> -> vector<4x32xf32>
    %244 = arith.addf %234, %243 : vector<4x32xf32>
    %c5_186 = arith.constant 5 : index
    %c0_187 = arith.constant 0 : index
    %c0_188 = arith.constant 0 : index
    %245 = vector.load %arg4[%c5_186, %c0_187, %c0_188] : memref<9x4x16xbf16, #tpu.memory_space<vmem>>, vector<1x4x16xbf16>
    %246 = vector.shape_cast %245 : vector<1x4x16xbf16> to vector<4x16xbf16>
    %247 = arith.truncf %193 : vector<16x16xf32> to vector<16x16xbf16>
    %cst_189 = arith.constant dense<0.000000e+00> : vector<4x16xf32>
    %248 = tpu.matmul %246, %247, %cst_189 {dimension_numbers = #tpu.dot_dimension_numbers<[1], [0], [0], [1], [0, 0, 1, 1], [], []>} : vector<4x16xbf16>, vector<16x16xbf16>, vector<4x16xf32> -> vector<4x16xf32>
    %c5_190 = arith.constant 5 : index
    %c0_191 = arith.constant 0 : index
    %c0_192 = arith.constant 0 : index
    %249 = vector.load %arg9[%c5_190, %c0_191, %c0_192] : memref<9x16x32xf32, #tpu.memory_space<vmem>>, vector<1x16x32xf32>
    %250 = vector.shape_cast %249 : vector<1x16x32xf32> to vector<16x32xf32>
    %251 = arith.truncf %248 : vector<4x16xf32> to vector<4x16xbf16>
    %252 = arith.truncf %250 : vector<16x32xf32> to vector<16x32xbf16>
    %cst_193 = arith.constant dense<0.000000e+00> : vector<4x32xf32>
    %253 = tpu.matmul %251, %252, %cst_193 {dimension_numbers = #tpu.dot_dimension_numbers<[1], [0], [0], [1], [0, 0, 1, 1], [], []>} : vector<4x16xbf16>, vector<16x32xbf16>, vector<4x32xf32> -> vector<4x32xf32>
    %254 = arith.addf %244, %253 : vector<4x32xf32>
    %c6_194 = arith.constant 6 : index
    %c0_195 = arith.constant 0 : index
    %c0_196 = arith.constant 0 : index
    %255 = vector.load %arg4[%c6_194, %c0_195, %c0_196] : memref<9x4x16xbf16, #tpu.memory_space<vmem>>, vector<1x4x16xbf16>
    %256 = vector.shape_cast %255 : vector<1x4x16xbf16> to vector<4x16xbf16>
    %257 = arith.truncf %193 : vector<16x16xf32> to vector<16x16xbf16>
    %cst_197 = arith.constant dense<0.000000e+00> : vector<4x16xf32>
    %258 = tpu.matmul %256, %257, %cst_197 {dimension_numbers = #tpu.dot_dimension_numbers<[1], [0], [0], [1], [0, 0, 1, 1], [], []>} : vector<4x16xbf16>, vector<16x16xbf16>, vector<4x16xf32> -> vector<4x16xf32>
    %c6_198 = arith.constant 6 : index
    %c0_199 = arith.constant 0 : index
    %c0_200 = arith.constant 0 : index
    %259 = vector.load %arg9[%c6_198, %c0_199, %c0_200] : memref<9x16x32xf32, #tpu.memory_space<vmem>>, vector<1x16x32xf32>
    %260 = vector.shape_cast %259 : vector<1x16x32xf32> to vector<16x32xf32>
    %261 = arith.truncf %258 : vector<4x16xf32> to vector<4x16xbf16>
    %262 = arith.truncf %260 : vector<16x32xf32> to vector<16x32xbf16>
    %cst_201 = arith.constant dense<0.000000e+00> : vector<4x32xf32>
    %263 = tpu.matmul %261, %262, %cst_201 {dimension_numbers = #tpu.dot_dimension_numbers<[1], [0], [0], [1], [0, 0, 1, 1], [], []>} : vector<4x16xbf16>, vector<16x32xbf16>, vector<4x32xf32> -> vector<4x32xf32>
    %264 = arith.addf %254, %263 : vector<4x32xf32>
    %c7_202 = arith.constant 7 : index
    %c0_203 = arith.constant 0 : index
    %c0_204 = arith.constant 0 : index
    %265 = vector.load %arg4[%c7_202, %c0_203, %c0_204] : memref<9x4x16xbf16, #tpu.memory_space<vmem>>, vector<1x4x16xbf16>
    %266 = vector.shape_cast %265 : vector<1x4x16xbf16> to vector<4x16xbf16>
    %267 = arith.truncf %193 : vector<16x16xf32> to vector<16x16xbf16>
    %cst_205 = arith.constant dense<0.000000e+00> : vector<4x16xf32>
    %268 = tpu.matmul %266, %267, %cst_205 {dimension_numbers = #tpu.dot_dimension_numbers<[1], [0], [0], [1], [0, 0, 1, 1], [], []>} : vector<4x16xbf16>, vector<16x16xbf16>, vector<4x16xf32> -> vector<4x16xf32>
    %c7_206 = arith.constant 7 : index
    %c0_207 = arith.constant 0 : index
    %c0_208 = arith.constant 0 : index
    %269 = vector.load %arg9[%c7_206, %c0_207, %c0_208] : memref<9x16x32xf32, #tpu.memory_space<vmem>>, vector<1x16x32xf32>
    %270 = vector.shape_cast %269 : vector<1x16x32xf32> to vector<16x32xf32>
    %271 = arith.truncf %268 : vector<4x16xf32> to vector<4x16xbf16>
    %272 = arith.truncf %270 : vector<16x32xf32> to vector<16x32xbf16>
    %cst_209 = arith.constant dense<0.000000e+00> : vector<4x32xf32>
    %273 = tpu.matmul %271, %272, %cst_209 {dimension_numbers = #tpu.dot_dimension_numbers<[1], [0], [0], [1], [0, 0, 1, 1], [], []>} : vector<4x16xbf16>, vector<16x32xbf16>, vector<4x32xf32> -> vector<4x32xf32>
    %274 = arith.addf %264, %273 : vector<4x32xf32>
    %c8_210 = arith.constant 8 : index
    %c0_211 = arith.constant 0 : index
    %c0_212 = arith.constant 0 : index
    %275 = vector.load %arg4[%c8_210, %c0_211, %c0_212] : memref<9x4x16xbf16, #tpu.memory_space<vmem>>, vector<1x4x16xbf16>
    %276 = vector.shape_cast %275 : vector<1x4x16xbf16> to vector<4x16xbf16>
    %277 = arith.truncf %193 : vector<16x16xf32> to vector<16x16xbf16>
    %cst_213 = arith.constant dense<0.000000e+00> : vector<4x16xf32>
    %278 = tpu.matmul %276, %277, %cst_213 {dimension_numbers = #tpu.dot_dimension_numbers<[1], [0], [0], [1], [0, 0, 1, 1], [], []>} : vector<4x16xbf16>, vector<16x16xbf16>, vector<4x16xf32> -> vector<4x16xf32>
    %c8_214 = arith.constant 8 : index
    %c0_215 = arith.constant 0 : index
    %c0_216 = arith.constant 0 : index
    %279 = vector.load %arg9[%c8_214, %c0_215, %c0_216] : memref<9x16x32xf32, #tpu.memory_space<vmem>>, vector<1x16x32xf32>
    %280 = vector.shape_cast %279 : vector<1x16x32xf32> to vector<16x32xf32>
    %281 = arith.truncf %278 : vector<4x16xf32> to vector<4x16xbf16>
    %282 = arith.truncf %280 : vector<16x32xf32> to vector<16x32xbf16>
    %cst_217 = arith.constant dense<0.000000e+00> : vector<4x32xf32>
    %283 = tpu.matmul %281, %282, %cst_217 {dimension_numbers = #tpu.dot_dimension_numbers<[1], [0], [0], [1], [0, 0, 1, 1], [], []>} : vector<4x16xbf16>, vector<16x32xbf16>, vector<4x32xf32> -> vector<4x32xf32>
    %284 = arith.addf %274, %283 : vector<4x32xf32>
    %c0_218 = arith.constant 0 : index
    %c0_219 = arith.constant 0 : index
    %285 = vector.load %arg10[%c0_218, %c0_219] : memref<1x32xf32, #tpu.memory_space<vmem>>, vector<1x32xf32>
    %286 = vector.broadcast %285 : vector<1x32xf32> to vector<4x32xf32>
    %287 = arith.addf %284, %286 : vector<4x32xf32>
    %cst_220 = arith.constant 0.000000e+00 : f32
    %288 = vector.broadcast %cst_220 : f32 to vector<4x32xf32>
    %289 = arith.maximumf %287, %288 : vector<4x32xf32>
    %cst_221 = arith.constant 0.000000e+00 : f32
    %290 = vector.broadcast %cst_221 : f32 to vector<1x1024xf32>
    %291 = vector.extract_strided_slice %289 {offsets = [0, 0], sizes = [1, 32], strides = [1, 1]} : vector<4x32xf32> to vector<1x32xf32>
    %c0_222 = arith.constant 0 : index
    %c0_223 = arith.constant 0 : index
    %c0_224 = arith.constant 0 : index
    %292 = vector.load %arg11[%c0_222, %c0_223, %c0_224] : memref<4x32x1024xbf16, #tpu.memory_space<vmem>>, vector<1x32x1024xbf16>
    %293 = vector.shape_cast %292 : vector<1x32x1024xbf16> to vector<32x1024xbf16>
    %294 = arith.truncf %291 : vector<1x32xf32> to vector<1x32xbf16>
    %cst_225 = arith.constant dense<0.000000e+00> : vector<1x1024xf32>
    %295 = tpu.matmul %294, %293, %cst_225 {dimension_numbers = #tpu.dot_dimension_numbers<[1], [0], [0], [1], [0, 0, 1, 1], [], []>} : vector<1x32xbf16>, vector<32x1024xbf16>, vector<1x1024xf32> -> vector<1x1024xf32>
    %296 = arith.addf %290, %295 : vector<1x1024xf32>
    %297 = vector.extract_strided_slice %289 {offsets = [1, 0], sizes = [1, 32], strides = [1, 1]} : vector<4x32xf32> to vector<1x32xf32>
    %c1_226 = arith.constant 1 : index
    %c0_227 = arith.constant 0 : index
    %c0_228 = arith.constant 0 : index
    %298 = vector.load %arg11[%c1_226, %c0_227, %c0_228] : memref<4x32x1024xbf16, #tpu.memory_space<vmem>>, vector<1x32x1024xbf16>
    %299 = vector.shape_cast %298 : vector<1x32x1024xbf16> to vector<32x1024xbf16>
    %300 = arith.truncf %297 : vector<1x32xf32> to vector<1x32xbf16>
    %cst_229 = arith.constant dense<0.000000e+00> : vector<1x1024xf32>
    %301 = tpu.matmul %300, %299, %cst_229 {dimension_numbers = #tpu.dot_dimension_numbers<[1], [0], [0], [1], [0, 0, 1, 1], [], []>} : vector<1x32xbf16>, vector<32x1024xbf16>, vector<1x1024xf32> -> vector<1x1024xf32>
    %302 = arith.addf %296, %301 : vector<1x1024xf32>
    %303 = vector.extract_strided_slice %289 {offsets = [2, 0], sizes = [1, 32], strides = [1, 1]} : vector<4x32xf32> to vector<1x32xf32>
    %c2_230 = arith.constant 2 : index
    %c0_231 = arith.constant 0 : index
    %c0_232 = arith.constant 0 : index
    %304 = vector.load %arg11[%c2_230, %c0_231, %c0_232] : memref<4x32x1024xbf16, #tpu.memory_space<vmem>>, vector<1x32x1024xbf16>
    %305 = vector.shape_cast %304 : vector<1x32x1024xbf16> to vector<32x1024xbf16>
    %306 = arith.truncf %303 : vector<1x32xf32> to vector<1x32xbf16>
    %cst_233 = arith.constant dense<0.000000e+00> : vector<1x1024xf32>
    %307 = tpu.matmul %306, %305, %cst_233 {dimension_numbers = #tpu.dot_dimension_numbers<[1], [0], [0], [1], [0, 0, 1, 1], [], []>} : vector<1x32xbf16>, vector<32x1024xbf16>, vector<1x1024xf32> -> vector<1x1024xf32>
    %308 = arith.addf %302, %307 : vector<1x1024xf32>
    %309 = vector.extract_strided_slice %289 {offsets = [3, 0], sizes = [1, 32], strides = [1, 1]} : vector<4x32xf32> to vector<1x32xf32>
    %c3_234 = arith.constant 3 : index
    %c0_235 = arith.constant 0 : index
    %c0_236 = arith.constant 0 : index
    %310 = vector.load %arg11[%c3_234, %c0_235, %c0_236] : memref<4x32x1024xbf16, #tpu.memory_space<vmem>>, vector<1x32x1024xbf16>
    %311 = vector.shape_cast %310 : vector<1x32x1024xbf16> to vector<32x1024xbf16>
    %312 = arith.truncf %309 : vector<1x32xf32> to vector<1x32xbf16>
    %cst_237 = arith.constant dense<0.000000e+00> : vector<1x1024xf32>
    %313 = tpu.matmul %312, %311, %cst_237 {dimension_numbers = #tpu.dot_dimension_numbers<[1], [0], [0], [1], [0, 0, 1, 1], [], []>} : vector<1x32xbf16>, vector<32x1024xbf16>, vector<1x1024xf32> -> vector<1x1024xf32>
    %314 = arith.addf %308, %313 : vector<1x1024xf32>
    %c0_238 = arith.constant 0 : index
    %c0_239 = arith.constant 0 : index
    %315 = vector.load %arg12[%c0_238, %c0_239] : memref<1x1024xf32, #tpu.memory_space<vmem>>, vector<1x1024xf32>
    %316 = arith.addf %314, %315 : vector<1x1024xf32>
    %cst_240 = arith.constant 0.000000e+00 : f32
    %317 = vector.broadcast %cst_240 : f32 to vector<1x1024xf32>
    %318 = arith.maximumf %316, %317 : vector<1x1024xf32>
    %c0_241 = arith.constant 0 : index
    %c0_242 = arith.constant 0 : index
    %319 = vector.load %arg13[%c0_241, %c0_242] : memref<1024x256xbf16, #tpu.memory_space<vmem>>, vector<1024x256xbf16>
    %320 = arith.truncf %318 : vector<1x1024xf32> to vector<1x1024xbf16>
    %cst_243 = arith.constant dense<0.000000e+00> : vector<1x256xf32>
    %321 = tpu.matmul %320, %319, %cst_243 {dimension_numbers = #tpu.dot_dimension_numbers<[1], [0], [0], [1], [0, 0, 1, 1], [], []>} : vector<1x1024xbf16>, vector<1024x256xbf16>, vector<1x256xf32> -> vector<1x256xf32>
    %c0_244 = arith.constant 0 : index
    %c0_245 = arith.constant 0 : index
    %322 = vector.load %arg14[%c0_244, %c0_245] : memref<1x256xf32, #tpu.memory_space<vmem>>, vector<1x256xf32>
    %323 = arith.addf %321, %322 : vector<1x256xf32>
    %cst_246 = arith.constant 0.000000e+00 : f32
    %324 = vector.broadcast %cst_246 : f32 to vector<1x256xf32>
    %325 = arith.maximumf %323, %324 : vector<1x256xf32>
    %c0_247 = arith.constant 0 : index
    %c0_248 = arith.constant 0 : index
    %c0_249 = arith.constant 0 : index
    %326 = vector.load %arg15[%c0_247, %c0_248, %c0_249] : memref<1x1x256xf32, #tpu.memory_space<vmem>>, vector<1x1x256xf32>
    %327 = vector.shape_cast %326 : vector<1x1x256xf32> to vector<1x256xf32>
    %328 = vector.shape_cast %325 : vector<1x256xf32> to vector<1x1x256xf32>
    tpu.vector_store %arg15[%c0_247, %c0_248, %c0_249], %328 {strides = array<i32>} : memref<1x1x256xf32, #tpu.memory_space<vmem>>, vector<1x1x256xf32>,
    return
  }
  func.func @transform_0(%arg0: i32) -> (i32, i32, i32) {
    %c0_i32 = arith.constant 0 : i32
    %c0_i32_0 = arith.constant 0 : i32
    %c0_i32_1 = arith.constant 0 : i32
    return %arg0, %c0_i32, %c0_i32_0 : i32, i32, i32
  }
  func.func @transform_1(%arg0: i32) -> (i32, i32, i32) {
    %c0_i32 = arith.constant 0 : i32
    %c0_i32_0 = arith.constant 0 : i32
    %c0_i32_1 = arith.constant 0 : i32
    %c0_i32_2 = arith.constant 0 : i32
    return %c0_i32, %c0_i32_0, %c0_i32_1 : i32, i32, i32
  }
  func.func @transform_2(%arg0: i32) -> (i32, i32, i32) {
    %c0_i32 = arith.constant 0 : i32
    %c0_i32_0 = arith.constant 0 : i32
    %c0_i32_1 = arith.constant 0 : i32
    %c0_i32_2 = arith.constant 0 : i32
    return %c0_i32, %c0_i32_0, %c0_i32_1 : i32, i32, i32
  }
  func.func @transform_3(%arg0: i32) -> (i32, i32, i32) {
    %c0_i32 = arith.constant 0 : i32
    %c0_i32_0 = arith.constant 0 : i32
    %c0_i32_1 = arith.constant 0 : i32
    %c0_i32_2 = arith.constant 0 : i32
    return %c0_i32, %c0_i32_0, %c0_i32_1 : i32, i32, i32
  }
  func.func @transform_4(%arg0: i32) -> (i32, i32, i32) {
    %c0_i32 = arith.constant 0 : i32
    %c0_i32_0 = arith.constant 0 : i32
    %c0_i32_1 = arith.constant 0 : i32
    %c0_i32_2 = arith.constant 0 : i32
    return %c0_i32, %c0_i32_0, %c0_i32_1 : i32, i32, i32
  }
  func.func @transform_5(%arg0: i32) -> (i32, i32) {
    %c0_i32 = arith.constant 0 : i32
    %c0_i32_0 = arith.constant 0 : i32
    %c0_i32_1 = arith.constant 0 : i32
    return %c0_i32, %c0_i32_0 : i32, i32
  }
  func.func @transform_6(%arg0: i32) -> (i32, i32, i32) {
    %c0_i32 = arith.constant 0 : i32
    %c0_i32_0 = arith.constant 0 : i32
    %c0_i32_1 = arith.constant 0 : i32
    %c0_i32_2 = arith.constant 0 : i32
    return %c0_i32, %c0_i32_0, %c0_i32_1 : i32, i32, i32
  }
  func.func @transform_7(%arg0: i32) -> (i32, i32) {
    %c0_i32 = arith.constant 0 : i32
    %c0_i32_0 = arith.constant 0 : i32
    %c0_i32_1 = arith.constant 0 : i32
    return %c0_i32, %c0_i32_0 : i32, i32
  }
  func.func @transform_8(%arg0: i32) -> (i32, i32, i32) {
    %c0_i32 = arith.constant 0 : i32
    %c0_i32_0 = arith.constant 0 : i32
    %c0_i32_1 = arith.constant 0 : i32
    %c0_i32_2 = arith.constant 0 : i32
    return %c0_i32, %c0_i32_0, %c0_i32_1 : i32, i32, i32
  }
  func.func @transform_9(%arg0: i32) -> (i32, i32) {
    %c0_i32 = arith.constant 0 : i32
    %c0_i32_0 = arith.constant 0 : i32
    %c0_i32_1 = arith.constant 0 : i32
    return %c0_i32, %c0_i32_0 : i32, i32
  }
  func.func @transform_10(%arg0: i32) -> (i32, i32, i32) {
    %c0_i32 = arith.constant 0 : i32
    %c0_i32_0 = arith.constant 0 : i32
    %c0_i32_1 = arith.constant 0 : i32
    %c0_i32_2 = arith.constant 0 : i32
    return %c0_i32, %c0_i32_0, %c0_i32_1 : i32, i32, i32
  }
  func.func @transform_11(%arg0: i32) -> (i32, i32) {
    %c0_i32 = arith.constant 0 : i32
    %c0_i32_0 = arith.constant 0 : i32
    %c0_i32_1 = arith.constant 0 : i32
    return %c0_i32, %c0_i32_0 : i32, i32
  }
  func.func @transform_12(%arg0: i32) -> (i32, i32) {
    %c0_i32 = arith.constant 0 : i32
    %c0_i32_0 = arith.constant 0 : i32
    %c0_i32_1 = arith.constant 0 : i32
    return %c0_i32, %c0_i32_0 : i32, i32
  }
  func.func @transform_13(%arg0: i32) -> (i32, i32) {
    %c0_i32 = arith.constant 0 : i32
    %c0_i32_0 = arith.constant 0 : i32
    %c0_i32_1 = arith.constant 0 : i32
    return %c0_i32, %c0_i32_0 : i32, i32
  }
  func.func @transform_14(%arg0: i32) -> (i32, i32, i32) {
    %c0_i32 = arith.constant 0 : i32
    %c0_i32_0 = arith.constant 0 : i32
    %c0_i32_1 = arith.constant 0 : i32
    return %arg0, %c0_i32, %c0_i32_0 : i32, i32, i32
  }
}

</mosaic_0001>

<bundles_post_ra>
// kernel: encoder_forward.1
= control target key start
LH: loop header
LB: loop body
LE: loop exit
PB: predicated region body
PF: predicated region fallthrough
CT: control target
= control target key end

     0   :  { %19 = vsyncpa [#allocation3], 0  ;;  %s9830_s0 = inlined_call_operand.vmem [shape: f32[2,256,8], index: 0, kind: input, shape index: {}]   ;;  %s9831_s1 = inlined_call_operand.vmem [shape: bf16[9,64,256], index: 1, kind: input, shape index: {}]   ;;  %s9832_s2 = inlined_call_operand.vmem [shape: bf16[9,16,64], index: 2, kind: input, shape index: {}]   ;;  %s9833_s3 = inlined_call_operand.vmem [shape: bf16[9,4,16], index: 3, kind: input, shape index: {}]   ;;  %s9834_s4 = inlined_call_operand.vmem [shape: f32[9,8,8], index: 4, kind: input, shape index: {}]   ;;  %s9835_s5 = inlined_call_operand.vmem [shape: f32[1,8], index: 5, kind: input, shape index: {}]   ;;  %s9836_s6 = inlined_call_operand.hbm [shape: f32[9,8,16], index: 6, kind: input, shape index: {}]   ;;  %s9837_s7 = inlined_call_operand.vmem [shape: f32[1,16], index: 7, kind: input, shape index: {}]   ;;  %s9838_s8 = inlined_call_operand.hbm [shape: f32[9,16,32], index: 8, kind: input, shape index: {}]   ;;  %s9839_s9 = inlined_call_operand.vmem [shape: f32[1,32], index: 9, kind: input, shape index: {}]   ;;  %s9840_s10 = inlined_call_operand.hbm [shape: bf16[4,32,1024], index: 10, kind: input, shape index: {}]   ;;  %s9841_s11 = inlined_call_operand.vmem [shape: f32[1,1024], index: 11, kind: input, shape index: {}]   ;;  %s9842_s12 = inlined_call_operand.vmem [shape: bf16[1024,256], index: 12, kind: input, shape index: {}]   ;;  %s9843_s13 = inlined_call_operand.vmem [shape: f32[1,256], index: 13, kind: input, shape index: {}]   ;;  %s9844_s14 = inlined_call_operand.vmem [shape: f32[2,1,256], index: 14, kind: output, shape index: {}]  }
   0x1   :  { %20 = vsyncpa [#allocation5], 0  ;;  %s8338_s29 = smov 0  }
   0x2 LB: > { %s8344_s30 = sadd.s32 4294967295, %s8250_s29   ;;  %p6454_p0 = scmp.ge.s32.totalorder %s8250_s29, 1  ;;  %s8250_s29 = sphi %s8338_s29, %s26_s29  }
   0x3   : > { %p356_p1 = scmp.lt.s32.totalorder %s8250_s29, 3  ;;  %p7824_p2 = scmp.eq.s32.totalorder %s8344_s30, 0 }
   0x4   : > { %s8252_s16 = smov [#allocation4]   ;;  %s8253_s18 = smov [#allocation2]  }
   0x5   : > { %p8349_p3 = pnand %p6454_p0, %p356_p1  ;;  %s399_s17 = sshll.u32 %s8252_s16, 4  ;;  %s400_s17 = int_to_ptr.vmem [resolvable:$true] %s399_s17 }
   0x6   : > { %s383_s19 = sshll.u32 %s8253_s18, 4  ;;  %s8254_s21 = smov [#allocation6]   ;;  %s8355_s19 = int_to_ptr.vmem [resolvable:$true] %s383_s19 }
   0x7   : > { %p7814_p4 = pneg %p8349_p3  ;;  %s415_s22 = sshll.u32 %s8254_s21, 4  ;;  %s8363_s22 = int_to_ptr.vmem [resolvable:$true] %s415_s22 }
   0x8   : > { %s8169_s23 = scalar_lea.vmem %s400_s17, 2304  ;;  %p8177_p10 = scmp.lt.s32.totalorder %s400_s17, %s400_s17 }
   0x9   : > { %p8359_p5 = pnand %p7824_p2, %p7814_p4  ;;  %p8170_p7 = scmp.ne.s32.totalorder %s400_s17, %s8169_s23 }
   0xa   : > { %p8178_p11 = scmp.lt.s32.totalorder %s8169_s23, %s8169_s23 }
   0xb   : > { %p8160_p6 = pneg %p8359_p5 }
   0xc   : > { %p8179_p12 = por %p8178_p11, %p8177_p10 }
   0xd   : > { %p8172_p8 = pnand %p8170_p7, %p8160_p6 }
   0xf   : > { %p8173_p9 = pneg %p8172_p8 }
  0x11   : > { %p8180_p13 = pnand %p8179_p12, %p8173_p9 }
  0x13   : > { %8183 = shalt.err (!%p8180_p13)
}
  0x14   : > { %s8255_s24 = smov 128   ;;  %s8256_s25 = smov 8  }
  0x15   : > { %7820 = dma.hbm_to_vmem [thread:$0]  (!%p8359_p5), %s9838_s8, 2304, %s400_s17, [#allocation5], %s8255_s24, %s8255_s24, %s8256_s25  }
  0x16   : > { %s8195_s28 = scalar_lea.vmem %s8355_s19, 1152  ;;  %p8203_p7 = scmp.lt.s32.totalorder %s8355_s19, %s8355_s19 }
  0x17   : > { %p8196_p0 = scmp.ne.s32.totalorder %s8355_s19, %s8195_s28  ;;  %p8204_p8 = scmp.lt.s32.totalorder %s8195_s28, %s8195_s28 }
  0x19   : > { %p8198_p1 = pnand %p8196_p0, %p8160_p6  ;;  %p8205_p9 = por %p8204_p8, %p8203_p7 }
  0x1b   : > { %p8199_p4 = pneg %p8198_p1 }
  0x1d   : > { %p8206_p10 = pnand %p8205_p9, %p8199_p4 }
  0x1f   : > { %8209 = shalt.err (!%p8206_p10)
}
  0x20   : > { %7817 = dma.hbm_to_vmem [thread:$0]  (!%p8359_p5), %s9836_s6, 1152, %s8355_s19, [#allocation3], %s8255_s24, %s8255_s24, %s8256_s25  }
  0x21   : > { %s8221_s17 = scalar_lea.vmem %s8363_s22, 8192  ;;  %p8229_p0 = scmp.lt.s32.totalorder %s8363_s22, %s8363_s22 }
  0x22   : > { %p8222_p11 = scmp.ne.s32.totalorder %s8363_s22, %s8221_s17  ;;  %p8230_p1 = scmp.lt.s32.totalorder %s8221_s17, %s8221_s17 }
  0x24   : > { %p8224_p12 = pnand %p8222_p11, %p8160_p6  ;;  %p8231_p4 = por %p8230_p1, %p8229_p0 }
  0x26   : > { %p8225_p13 = pneg %p8224_p12 }
  0x28   : > { %p8232_p7 = pnand %p8231_p4, %p8225_p13 }
  0x2a   : > { %8235 = shalt.err (!%p8232_p7)
}
  0x2b   : > { %s8257_s21 = smov 512   ;;  %s8258_s23 = smov 32  }
  0x2c   : > { %7823 = dma.hbm_to_vmem [thread:$0]  (!%p8359_p5), %s9840_s10, 8192, %s8363_s22, [#allocation5], %s8257_s21, %s8257_s21, %s8258_s23  }
  0x2d   : > { %448 = sbr.rel (%p8349_p3) target bundleno = 4709 (0x1265), region = 76 }
  0x32   : > { %8241 = dma.done.wait (%p7824_p2), [#allocation3], 1152  }
  0x33   : > { %8243 = vsyncadd (%p7824_p2), [#allocation3], 4294966144 }
  0x34   : > { %8245 = dma.done.wait (%p7824_p2), [#allocation5], 10496  }
  0x35   : > { %8247 = vsyncadd (%p7824_p2), [#allocation5], 4294956800  ;;  %p501_p6 = scmp.lt.s32.totalorder %s8344_s30, 1  ;;  %v7851_v27 = vld [vmem:[%s9831_s1 + $0x4] ss:$8 sps:$4 sm:$0xff]   ;;  %vm812_vm0 = vcmask 1043456  }
  0x36   : > { %v7854_v31 = vld [vmem:[%s9831_s1 + $0x44] ss:$8 sps:$4 sm:$0xff]   ;;  %639 = vmatprep.mubr.bf16.mxu0 %v7851_v27  ;;  %v7849_v51 = vld [vmem:[%s9831_s1] ss:$8 sps:$4 sm:$0xff]   ;;  %v7855_v54 = vld [vmem:[%s9831_s1 + $0x14] ss:$8 sps:$4 sm:$0xff]  }
  0x37   : > { %s9848_s30 = smov (!%p501_p6, %s8344_s30), 1  ;;  %759 = vmatprep.mubr.bf16.mxu1 %v7854_v31  ;;  %v6490_v48 = vld [vmem:[%s9834_s4 + $0x8] sm:$0xff]  ;;  %v7857_v55 = vld [vmem:[%s9831_s1 + $0x54] ss:$8 sps:$4 sm:$0xff]   ;;  %v7859_v57 = vld [vmem:[%s9831_s1 + $0x10] ss:$8 sps:$4 sm:$0xff]  }
  0x38   : > { %s6928_s15 = sshll.u32 %s9848_s30, 8  ;;  %v7852_v52 = vld [vmem:[%s9831_s1 + $0x40] ss:$8 sps:$4 sm:$0xff]   ;;  %v798_v53 = vpack.c.bf16 %v6490_v48, %v6490_v48  ;;  %v7860_v58 = vld [vmem:[%s9831_s1 + $0x50] ss:$8 sps:$4 sm:$0xff]   ;;  %vm799_vm1 = vcmask 64512  }
  0x39   : > { %s8419_s22 = scalar_lea.vmem %s9830_s0, %s6928_s15  ;;  %v7861_v59 = vld [vmem:[%s9831_s1 + $0x24] ss:$8 sps:$4 sm:$0xff]   ;;  %v7865_v61 = vld [vmem:[%s9831_s1 + $0x20] ss:$8 sps:$4 sm:$0xff]   ;;  %v7867_v63 = vld [vmem:[%s9831_s1 + $0x34] ss:$8 sps:$4 sm:$0xff]  }
  0x3a   : > { %v541_v0 = vld [vmem:[%s8419_s22 + $0xf0] sm:$0xff]  ;;  %v542_v1 = vld [vmem:[%s8419_s22 + $0xf8] sm:$0xff]  ;;  %v539_v5 = vld [vmem:[%s8419_s22 + $0xe0] sm:$0xff]  ;;  %v814_v56 = vsel %vm812_vm0, %v798_v53, 0  ;;  %vm8260_vm2 = vmmov 0   ;;  %vm2458_vm3 = vcmask 523264  }
  0x3b   : > { %v525_v2 = vld [vmem:[%s8419_s22 + $0x70] sm:$0xff]  ;;  %v8424_v3 = vpack.c.bf16 %v542_v1, %v541_v0  ;;  %v526_v4 = vld [vmem:[%s8419_s22 + $0x78] sm:$0xff]  ;;  %v540_v6 = vld [vmem:[%s8419_s22 + $0xe8] sm:$0xff]  ;;  %vm3404_vm4 = vcmask 130048   ;;  %vm4372_vm5 = vcmask 261120   ;;  %s6465_s28 = sshll.u32 %s9848_s30, 1 }
  0x3c   : > { %v8429_v7 = vpack.c.bf16 %v526_v4, %v525_v2  ;;  %v8431_v8 = vpack.c.bf16 %v540_v6, %v539_v5  ;;  %v523_v9 = vld [vmem:[%s8419_s22 + $0x60] sm:$0xff]  ;;  %v524_v10 = vld [vmem:[%s8419_s22 + $0x68] sm:$0xff]  ;;  %v537_v11 = vld [vmem:[%s8419_s22 + $0xd0] sm:$0xff]  ;;  %s509_s17 = scalar_lea.vmem %s9844_s14, %s6465_s28 }
  0x3d   : > { %6929 = vmatprep.subr.bf16.mxu0 %v8424_v3  ;;  %6969 = vmatprep.subr.bf16.mxu1 %v8424_v3  ;;  %v538_v12 = vld [vmem:[%s8419_s22 + $0xd8] sm:$0xff]  ;;  %v8441_v13 = vpack.c.bf16 %v524_v10, %v523_v9  ;;  %v521_v15 = vld [vmem:[%s8419_s22 + $0x50] sm:$0xff]  ;;  %v535_v17 = vld [vmem:[%s8419_s22 + $0xc0] sm:$0xff] }
  0x3e   : > { %6930 = vmatpush3.bf16.msra.mxu0 %v8429_v7  ;;  %6970 = vmatpush3.bf16.msra.mxu1 %v8429_v7  ;;  %v8445_v14 = vpack.c.bf16 %v538_v12, %v537_v11  ;;  %v522_v16 = vld [vmem:[%s8419_s22 + $0x58] sm:$0xff]  ;;  %v536_v18 = vld [vmem:[%s8419_s22 + $0xc8] sm:$0xff]  ;;  %v519_v21 = vld [vmem:[%s8419_s22 + $0x40] sm:$0xff] }
  0x3f   : > { %6931 = vmatprep.subr.bf16.mxu0 %v8431_v8  ;;  %6971 = vmatprep.subr.bf16.mxu1 %v8431_v8  ;;  %v8453_v19 = vpack.c.bf16 %v522_v16, %v521_v15  ;;  %v8457_v20 = vpack.c.bf16 %v536_v18, %v535_v17  ;;  %v520_v22 = vld [vmem:[%s8419_s22 + $0x48] sm:$0xff]  ;;  %v533_v23 = vld [vmem:[%s8419_s22 + $0xb0] sm:$0xff]  ;;  %v534_v24 = vld [vmem:[%s8419_s22 + $0xb8] sm:$0xff] }
  0x40   : > { %v517_v25 = vld [vmem:[%s8419_s22 + $0x30] sm:$0xff]  ;;  %v518_v26 = vld [vmem:[%s8419_s22 + $0x38] sm:$0xff]  ;;  %v8470_v28 = vpack.c.bf16 %v520_v22, %v519_v21  ;;  %v531_v29 = vld [vmem:[%s8419_s22 + $0xa0] sm:$0xff]  ;;  %v8475_v30 = vpack.c.bf16 %v534_v24, %v533_v23 }
  0x41   : > { %v532_v32 = vld [vmem:[%s8419_s22 + $0xa8] sm:$0xff]  ;;  %v8483_v33 = vpack.c.bf16 %v518_v26, %v517_v25  ;;  %v515_v34 = vld [vmem:[%s8419_s22 + $0x20] sm:$0xff]  ;;  %v529_v37 = vld [vmem:[%s8419_s22 + $0x90] sm:$0xff] }
  0x42   : > { %6932 = vmatpush3.bf16.msra.mxu0 %v8441_v13  ;;  %6972 = vmatpush3.bf16.msra.mxu1 %v8441_v13  ;;  %v8488_v35 = vpack.c.bf16 %v532_v32, %v531_v29  ;;  %v516_v36 = vld [vmem:[%s8419_s22 + $0x28] sm:$0xff]  ;;  %v530_v38 = vld [vmem:[%s8419_s22 + $0x98] sm:$0xff]  ;;  %v513_v40 = vld [vmem:[%s8419_s22 + $0x10] sm:$0xff] }
  0x43   : > { %6933 = vmatprep.subr.bf16.mxu0 %v8445_v14  ;;  %6973 = vmatprep.subr.bf16.mxu1 %v8445_v14  ;;  %v8495_v39 = vpack.c.bf16 %v516_v36, %v515_v34  ;;  %v514_v41 = vld [vmem:[%s8419_s22 + $0x18] sm:$0xff]  ;;  %v8501_v42 = vpack.c.bf16 %v530_v38, %v529_v37  ;;  %v527_v43 = vld [vmem:[%s8419_s22 + $0x80] sm:$0xff]  ;;  %v528_v44 = vld [vmem:[%s8419_s22 + $0x88] sm:$0xff] }
  0x44   : > { %v511_v45 = vld [vmem:[%s8419_s22] sm:$0xff]  ;;  %v512_v46 = vld [vmem:[%s8419_s22 + $0x8] sm:$0xff]  ;;  %v8509_v47 = vpack.c.bf16 %v514_v41, %v513_v40  ;;  %v8516_v49 = vpack.c.bf16 %v528_v44, %v527_v43  ;;  %v7869_v0 = vld [vmem:[%s9831_s1 + $0x74] ss:$8 sps:$4 sm:$0xff]  }
  0x45   : > { %v8520_v50 = vpack.c.bf16 %v512_v46, %v511_v45  ;;  %v7863_v60 = vld [vmem:[%s9831_s1 + $0x64] ss:$8 sps:$4 sm:$0xff]   ;;  %v7866_v62 = vld [vmem:[%s9831_s1 + $0x60] ss:$8 sps:$4 sm:$0xff]   ;;  %v7871_v1 = vld [vmem:[%s9831_s1 + $0x30] ss:$8 sps:$4 sm:$0xff]  }
  0x46   : > { %6934 = vmatpush3.bf16.msra.mxu0 %v8453_v19  ;;  %6974 = vmatpush3.bf16.msra.mxu1 %v8453_v19  ;;  %v7872_v2 = vld [vmem:[%s9831_s1 + $0x70] ss:$8 sps:$4 sm:$0xff]   ;;  %v672_v4 = vld [vmem:[%s9834_s4] sm:$0xff] }
  0x47   : > { %6935 = vmatprep.subr.bf16.mxu0 %v8457_v20  ;;  %6975 = vmatprep.subr.bf16.mxu1 %v8457_v20  ;;  %v677_v5 = vpack.c.bf16 %v672_v4, %v672_v4 }
  0x49   : > { %v894_v6 = vsel %vm812_vm0, %v677_v5, 0 }
  0x4a   : > { %6936 = vmatpush3.bf16.msra.mxu0 %v8470_v28  ;;  %6976 = vmatpush3.bf16.msra.mxu1 %v8470_v28 }
  0x4b   : > { %6937 = vmatprep.subr.bf16.mxu0 %v8475_v30  ;;  %6977 = vmatprep.subr.bf16.mxu1 %v8475_v30 }
  0x4e   : > { %6938 = vmatpush3.bf16.msra.mxu0 %v8483_v33  ;;  %6978 = vmatpush3.bf16.msra.mxu1 %v8483_v33 }
  0x4f   : > { %6939 = vmatprep.subr.bf16.mxu0 %v8488_v35  ;;  %6979 = vmatprep.subr.bf16.mxu1 %v8488_v35 }
  0x52   : > { %6940 = vmatpush3.bf16.msra.mxu0 %v8495_v39  ;;  %6980 = vmatpush3.bf16.msra.mxu1 %v8495_v39 }
  0x53   : > { %6941 = vmatprep.subr.bf16.mxu0 %v8501_v42  ;;  %6981 = vmatprep.subr.bf16.mxu1 %v8501_v42 }
  0x56   : > { %6942 = vmatpush3.bf16.msra.mxu0 %v8509_v47  ;;  %6982 = vmatpush3.bf16.msra.mxu1 %v8509_v47 }
  0x57   : > { %6943 = vmatprep.subr.bf16.mxu0 %v8516_v49  ;;  %6983 = vmatprep.subr.bf16.mxu1 %v8516_v49 }
  0x5a   : > { %6944 = vmatpush3.bf16.msra.mxu0 %v8520_v50  ;;  %6984 = vmatpush3.bf16.msra.mxu1 %v8520_v50 }
  0x5b   : > { %7793 = vmatprep.subr.msk.bf16.mxu0 %vm812_vm0, %v798_v53  ;;  %7794 = vmatprep.subr.msk.bf16.mxu1 %vm812_vm0, %v677_v5 }
  0x5d   : > { %640 = vmatmul.mubr.bf16.vlgmr.msra.gmra.mxu0 %v7849_v51  ;;  %760 = vmatmul.mubr.bf16.vlgmr.msra.gmra.mxu1 %v7852_v52 }
  0x5e   : > { %647 = vmatprep.mubr.bf16.mxu0 %v7855_v54  ;;  %767 = vmatprep.mubr.bf16.mxu1 %v7857_v55 }
  0x5f   : > { %7434 = vmatpush3.bf16.msra.mxu0 %v814_v56  ;;  %7444 = vmatpush3.bf16.msra.mxu1 %v894_v6 }
  0x60   : > { %7019 = vmatprep.subr.bf16.mxu0 %v8424_v3 }
  0x65   : > { %648 = vmatmul.mubr.bf16.gmra.mxu0 %v7859_v57  ;;  %768 = vmatmul.mubr.bf16.gmra.mxu1 %v7860_v58 }
  0x66   : > { %655 = vmatprep.mubr.bf16.mxu0 %v7861_v59  ;;  %775 = vmatprep.mubr.bf16.mxu1 %v7863_v60 }
  0x6d   : > { %656 = vmatmul.mubr.bf16.gmra.mxu0 %v7865_v61  ;;  %776 = vmatmul.mubr.bf16.gmra.mxu1 %v7866_v62 }
  0x6e   : > { %663 = vmatprep.mubr.bf16.mxu0 %v7867_v63  ;;  %783 = vmatprep.mubr.bf16.mxu1 %v7869_v0 }
  0x75   : > { %664 = vmatmul.mubr.bf16.gmra.mxu0 %v7871_v1  ;;  %784 = vmatmul.mubr.bf16.gmra.mxu1 %v7872_v2 }
 0x11d   : > { %v6945_v9 = vpop.f32.mrf.mxu0  ;;  %v6985_v10 = vpop.f32.mrf.mxu1 }
 0x11f   : > { %v6946_v11 = vpop.f32.mrf.mxu0  ;;  %v6986_v12 = vpop.f32.mrf.mxu1 }
 0x120   : > { %v6947_v17 = vadd.f32 %v6946_v11, %v6945_v9  ;;  %v6987_v22 = vadd.f32 %v6986_v12, %v6985_v10 }
 0x121   : > { %v6948_v15 = vpop.f32.mrf.mxu0  ;;  %v6988_v16 = vpop.f32.mrf.mxu1 }
 0x123   : > { %v6949_v18 = vpop.f32.mrf.mxu0  ;;  %v6989_v21 = vpop.f32.mrf.mxu1 }
 0x124   : > { %v6950_v23 = vadd.f32 %v6949_v18, %v6948_v15  ;;  %v6990_v24 = vadd.f32 %v6989_v21, %v6988_v16 }
 0x125   : > { %v6951_v25 = vpop.f32.mrf.mxu0  ;;  %v6991_v26 = vpop.f32.mrf.mxu1 }
 0x126   : > { %v673_v27 = vpack.c.bf16 %v6950_v23, %v6947_v17  ;;  %v794_v29 = vpack.c.bf16 %v6990_v24, %v6987_v22  ;;  %v7875_v17 = vld [vmem:[%s9831_s1 + $0x84] ss:$8 sps:$4 sm:$0xff]   ;;  %v7873_v22 = vld [vmem:[%s9831_s1 + $0x80] ss:$8 sps:$4 sm:$0xff]   ;;  %v7876_v23 = vld [vmem:[%s9831_s1 + $0x94] ss:$8 sps:$4 sm:$0xff]  }
 0x127   : > { %v6952_v31 = vpop.f32.mrf.mxu0  ;;  %v6992_v32 = vpop.f32.mrf.mxu1  ;;  %v7878_v24 = vld [vmem:[%s9831_s1 + $0x90] ss:$8 sps:$4 sm:$0xff]  }
 0x128   : > { %7435 = vmatprep.mubr.msk.bf16.mxu0 %vm799_vm1, %v794_v29  ;;  %7445 = vmatprep.mubr.msk.bf16.mxu1 %vm799_vm1, %v673_v27  ;;  %v6953_v37 = vadd.f32 %v6952_v31, %v6951_v25  ;;  %v6993_v41 = vadd.f32 %v6992_v32, %v6991_v26  ;;  %v7879_v25 = vld [vmem:[%s9831_s1 + $0xa4] ss:$8 sps:$4 sm:$0xff]   ;;  %v7881_v26 = vld [vmem:[%s9831_s1 + $0xa0] ss:$8 sps:$4 sm:$0xff]   ;;  %v7882_v27 = vld [vmem:[%s9831_s1 + $0xb4] ss:$8 sps:$4 sm:$0xff]  }
 0x129   : > { %v6954_v34 = vpop.f32.mrf.mxu0  ;;  %v6994_v36 = vpop.f32.mrf.mxu1  ;;  %v7884_v29 = vld [vmem:[%s9831_s1 + $0xb0] ss:$8 sps:$4 sm:$0xff]  }
 0x12a   : > { %v6515_v31 = vld [vmem:[%s9834_s4 + $0x10] sm:$0xff] }
 0x12b   : > { %v6955_v38 = vpop.f32.mrf.mxu0  ;;  %v6995_v40 = vpop.f32.mrf.mxu1  ;;  %v1081_v32 = vpack.c.bf16 %v6515_v31, %v6515_v31 }
 0x12c   : > { %v6956_v43 = vadd.f32 %v6955_v38, %v6954_v34  ;;  %v6996_v44 = vadd.f32 %v6995_v40, %v6994_v36 }
 0x12d   : > { %v6957_v45 = vpop.f32.mrf.mxu0  ;;  %v6997_v46 = vpop.f32.mrf.mxu1  ;;  %7795 = vmatprep.subr.msk.bf16.mxu1 %vm812_vm0, %v1081_v32  ;;  %v1095_v34 = vsel %vm812_vm0, %v1081_v32, 0 }
 0x12e   : > { %v674_v48 = vpack.c.bf16 %v6956_v43, %v6953_v37  ;;  %v795_v51 = vpack.c.bf16 %v6996_v44, %v6993_v41 }
 0x12f   : > { %v6958_v52 = vpop.f32.mrf.mxu0  ;;  %v6998_v53 = vpop.f32.mrf.mxu1 }
 0x130   : > { %7436 = vmatmul.mubr.msk.bf16.vlgmr.msra.gmra.mxu0 %vm799_vm1, %v795_v51  ;;  %7446 = vmatmul.mubr.msk.bf16.vlgmr.msra.gmra.mxu1 %vm799_vm1, %v674_v48  ;;  %v6959_v56 = vadd.f32 %v6958_v52, %v6957_v45  ;;  %v6999_v57 = vadd.f32 %v6998_v53, %v6997_v46 }
 0x131   : > { %7020 = vmatpush3.bf16.msra.mxu0 %v8429_v7  ;;  %v6960_v54 = vpop.f32.mrf.mxu0  ;;  %v7000_v55 = vpop.f32.mrf.mxu1  ;;  %7454 = vmatpush3.bf16.msra.mxu1 %v1095_v34 }
 0x132   : > { %7021 = vmatprep.subr.bf16.mxu0 %v8431_v8  ;;  %7064 = vmatprep.subr.bf16.mxu1 %v8424_v3 }
 0x133   : > { %v6961_v58 = vpop.f32.mrf.mxu0  ;;  %v7001_v59 = vpop.f32.mrf.mxu1 }
 0x134   : > { %v6962_v60 = vadd.f32 %v6961_v58, %v6960_v54  ;;  %v7002_v61 = vadd.f32 %v7001_v59, %v7000_v55 }
 0x135   : > { %7022 = vmatpush3.bf16.msra.mxu0 %v8441_v13  ;;  %v6963_v62 = vpop.f32.mrf.mxu0  ;;  %v7003_v63 = vpop.f32.mrf.mxu1 }
 0x136   : > { %v675_v0 = vpack.c.bf16 %v6962_v60, %v6959_v56  ;;  %v796_v1 = vpack.c.bf16 %v7002_v61, %v6999_v57  ;;  %7023 = vmatprep.subr.bf16.mxu0 %v8445_v14 }
 0x137   : > { %v6964_v2 = vpop.f32.mrf.mxu0  ;;  %v7004_v4 = vpop.f32.mrf.mxu1 }
 0x138   : > { %7439 = vmatprep.mubr.msk.bf16.mxu0 %vm799_vm1, %v796_v1  ;;  %7449 = vmatprep.mubr.msk.bf16.mxu1 %vm799_vm1, %v675_v0  ;;  %v6965_v9 = vadd.f32 %v6964_v2, %v6963_v62  ;;  %v7005_v10 = vadd.f32 %v7004_v4, %v7003_v63 }
 0x139   : > { %7024 = vmatpush3.bf16.msra.mxu0 %v8453_v19  ;;  %v6966_v5 = vpop.f32.mrf.mxu0  ;;  %v7006_v6 = vpop.f32.mrf.mxu1 }
 0x13a   : > { %7025 = vmatprep.subr.bf16.mxu0 %v8457_v20 }
 0x13b   : > { %v6967_v11 = vpop.f32.mrf.mxu0  ;;  %v7007_v12 = vpop.f32.mrf.mxu1 }
 0x13c   : > { %v6968_v15 = vadd.f32 %v6967_v11, %v6966_v5  ;;  %v7008_v16 = vadd.f32 %v7007_v12, %v7006_v6 }
 0x13d   : > { %7026 = vmatpush3.bf16.msra.mxu0 %v8470_v28 }
 0x13e   : > { %v676_v18 = vpack.c.bf16 %v6968_v15, %v6965_v9  ;;  %v797_v21 = vpack.c.bf16 %v7008_v16, %v7005_v10  ;;  %7027 = vmatprep.subr.bf16.mxu0 %v8475_v30 }
 0x140   : > { %7440 = vmatmul.mubr.msk.bf16.gmra.mxu0 %vm799_vm1, %v797_v21  ;;  %7450 = vmatmul.mubr.msk.bf16.gmra.mxu1 %vm799_vm1, %v676_v18 }
 0x141   : > { %7028 = vmatpush3.bf16.msra.mxu0 %v8483_v33  ;;  %1042 = vmatprep.mubr.bf16.mxu0 %v7875_v17 }
 0x142   : > { %7029 = vmatprep.subr.bf16.mxu0 %v8488_v35 }
 0x145   : > { %7030 = vmatpush3.bf16.msra.mxu0 %v8495_v39 }
 0x146   : > { %7031 = vmatprep.subr.bf16.mxu0 %v8501_v42 }
 0x149   : > { %7032 = vmatpush3.bf16.msra.mxu0 %v8509_v47 }
 0x14a   : > { %7033 = vmatprep.subr.bf16.mxu0 %v8516_v49 }
 0x14d   : > { %7034 = vmatpush3.bf16.msra.mxu0 %v8520_v50 }
 0x150   : > { %1043 = vmatmul.mubr.bf16.vlgmr.msra.gmra.mxu0 %v7873_v22 }
 0x151   : > { %1050 = vmatprep.mubr.bf16.mxu0 %v7876_v23 }
 0x158   : > { %1051 = vmatmul.mubr.bf16.gmra.mxu0 %v7878_v24 }
 0x159   : > { %1058 = vmatprep.mubr.bf16.mxu0 %v7879_v25 }
 0x160   : > { %1059 = vmatmul.mubr.bf16.gmra.mxu0 %v7881_v26 }
 0x161   : > { %1066 = vmatprep.mubr.bf16.mxu0 %v7882_v27 }
 0x168   : > { %1067 = vmatmul.mubr.bf16.gmra.mxu0 %v7884_v29 }
 0x1f0   : > { %v7437_v36 = vpop.f32.mrf.mxu0  ;;  %v7447_v37 = vpop.f32.mrf.mxu1 }
 0x1f1   : > { %v8629_v38 = vadd.f32 %v7447_v37, %v7437_v36  ;;  %v7887_v36 = vld [vmem:[%s9831_s1 + $0xc4] ss:$8 sps:$4 sm:$0xff]  }
 0x1f2   : > { %v850_v40 = vpop.f32.mrf.mxu0  ;;  %v930_v41 = vpop.f32.mrf.mxu1 }
 0x1f3   : > { %v8631_v43 = vadd.f32 %v930_v41, %v850_v40  ;;  %v7885_v40 = vld [vmem:[%s9831_s1 + $0xc0] ss:$8 sps:$4 sm:$0xff]   ;;  %v7888_v41 = vld [vmem:[%s9831_s1 + $0xd4] ss:$8 sps:$4 sm:$0xff]  }
 0x1f4   : > { %v7438_v44 = vpop.f32.mrf.mxu0  ;;  %v7448_v45 = vpop.f32.mrf.mxu1 }
 0x1f5   : > { %v8633_v46 = vadd.f32 %v7448_v45, %v7438_v44  ;;  %v7890_v44 = vld [vmem:[%s9831_s1 + $0xd0] ss:$8 sps:$4 sm:$0xff]   ;;  %v7891_v45 = vld [vmem:[%s9831_s1 + $0xe4] ss:$8 sps:$4 sm:$0xff]  }
 0x1f6   : > { %v8635_v48 = vpop.f32.mrf.mxu0  ;;  %v8637_v51 = vpop.f32.mrf.mxu1 }
 0x200   : > { %v7441_v52 = vpop.f32.mrf.mxu0  ;;  %v7451_v53 = vpop.f32.mrf.mxu1 }
 0x201   : > { %v8639_v54 = vadd.f32 %v7451_v53, %v7441_v52  ;;  %v7893_v52 = vld [vmem:[%s9831_s1 + $0xe0] ss:$8 sps:$4 sm:$0xff]   ;;  %v7894_v53 = vld [vmem:[%s9831_s1 + $0xf4] ss:$8 sps:$4 sm:$0xff]  }
 0x202   : > { %v866_v55 = vpop.f32.mrf.mxu0  ;;  %v946_v56 = vpop.f32.mrf.mxu1 }
 0x203   : > { %v8641_v57 = vadd.f32 %v946_v56, %v866_v55  ;;  %v7896_v55 = vld [vmem:[%s9831_s1 + $0xf0] ss:$8 sps:$4 sm:$0xff]   ;;  %v7899_v56 = vld [vmem:[%s9831_s1 + $0x104] ss:$8 sps:$4 sm:$0xff]  }
 0x204   : > { %v7442_v58 = vpop.f32.mrf.mxu0  ;;  %v7452_v59 = vpop.f32.mrf.mxu1 }
 0x205   : > { %v8643_v60 = vadd.f32 %v7452_v59, %v7442_v58  ;;  %v7897_v58 = vld [vmem:[%s9831_s1 + $0x100] ss:$8 sps:$4 sm:$0xff]   ;;  %v7900_v59 = vld [vmem:[%s9831_s1 + $0x114] ss:$8 sps:$4 sm:$0xff]  }
 0x206   : > { %v8645_v61 = vpop.f32.mrf.mxu0 }
 0x210   : > { %v7035_v62 = vpop.f32.mrf.mxu0 }
 0x212   : > { %v7036_v63 = vpop.f32.mrf.mxu0 }
 0x213   : > { %v7037_v2 = vadd.f32 %v7036_v63, %v7035_v62  ;;  %v7902_v62 = vld [vmem:[%s9831_s1 + $0x110] ss:$8 sps:$4 sm:$0xff]   ;;  %v7903_v63 = vld [vmem:[%s9831_s1 + $0x124] ss:$8 sps:$4 sm:$0xff]  }
 0x214   : > { %v7038_v0 = vpop.f32.mrf.mxu0 }
 0x216   : > { %v7039_v1 = vpop.f32.mrf.mxu0 }
 0x217   : > { %v7040_v4 = vadd.f32 %v7039_v1, %v7038_v0  ;;  %v7905_v0 = vld [vmem:[%s9831_s1 + $0x120] ss:$8 sps:$4 sm:$0xff]   ;;  %v7906_v1 = vld [vmem:[%s9831_s1 + $0x134] ss:$8 sps:$4 sm:$0xff]  }
 0x218   : > { %v7041_v5 = vpop.f32.mrf.mxu0 }
 0x219   : > { %v1077_v6 = vpack.c.bf16 %v7040_v4, %v7037_v2  ;;  %v7908_v2 = vld [vmem:[%s9831_s1 + $0x130] ss:$8 sps:$4 sm:$0xff]  }
 0x21a   : > { %v7042_v9 = vpop.f32.mrf.mxu0  ;;  %v6536_v4 = vld [vmem:[%s9834_s4 + $0x18] sm:$0xff] }
 0x21b   : > { %7455 = vmatprep.mubr.msk.bf16.mxu1 %vm799_vm1, %v1077_v6  ;;  %v7043_v12 = vadd.f32 %v7042_v9, %v7041_v5  ;;  %v1290_v5 = vpack.c.bf16 %v6536_v4, %v6536_v4  ;;  %v6557_v9 = vld [vmem:[%s9834_s4 + $0x20] sm:$0xff] }
 0x21c   : > { %v7044_v10 = vpop.f32.mrf.mxu0 }
 0x21d   : > { %7796 = vmatprep.subr.msk.bf16.mxu0 %vm812_vm0, %v1290_v5  ;;  %v1304_v6 = vsel %vm812_vm0, %v1290_v5, 0 }
 0x21e   : > { %v7045_v11 = vpop.f32.mrf.mxu0  ;;  %7464 = vmatpush3.bf16.msra.mxu0 %v1304_v6 }
 0x21f   : > { %v7046_v15 = vadd.f32 %v7045_v11, %v7044_v10  ;;  %v1499_v10 = vpack.c.bf16 %v6557_v9, %v6557_v9  ;;  %v8739_v11 = vpop.f32.mrf.mxu1 }
 0x220   : > { %v7047_v16 = vpop.f32.mrf.mxu0 }
 0x221   : > { %v1078_v17 = vpack.c.bf16 %v7046_v15, %v7043_v12  ;;  %7797 = vmatprep.subr.msk.bf16.mxu0 %vm812_vm0, %v1499_v10 }
 0x222   : > { %v7048_v18 = vpop.f32.mrf.mxu0 }
 0x223   : > { %7456 = vmatmul.mubr.msk.bf16.vlgmr.msra.gmra.mxu1 %vm799_vm1, %v1078_v17  ;;  %v7049_v22 = vadd.f32 %v7048_v18, %v7047_v16 }
 0x224   : > { %7065 = vmatpush3.bf16.msra.mxu1 %v8429_v7  ;;  %v7050_v21 = vpop.f32.mrf.mxu0 }
 0x225   : > { %7066 = vmatprep.subr.bf16.mxu1 %v8431_v8 }
 0x226   : > { %v7051_v23 = vpop.f32.mrf.mxu0 }
 0x227   : > { %v7052_v24 = vadd.f32 %v7051_v23, %v7050_v21 }
 0x228   : > { %7067 = vmatpush3.bf16.msra.mxu1 %v8441_v13  ;;  %v7053_v25 = vpop.f32.mrf.mxu0 }
 0x229   : > { %v1079_v26 = vpack.c.bf16 %v7052_v24, %v7049_v22  ;;  %7068 = vmatprep.subr.bf16.mxu1 %v8445_v14 }
 0x22a   : > { %v7054_v27 = vpop.f32.mrf.mxu0 }
 0x22b   : > { %7459 = vmatprep.mubr.msk.bf16.mxu1 %vm799_vm1, %v1079_v26  ;;  %v7055_v31 = vadd.f32 %v7054_v27, %v7053_v25 }
 0x22c   : > { %7069 = vmatpush3.bf16.msra.mxu1 %v8453_v19  ;;  %v7056_v29 = vpop.f32.mrf.mxu0 }
 0x22d   : > { %7070 = vmatprep.subr.bf16.mxu1 %v8457_v20 }
 0x22e   : > { %v7057_v32 = vpop.f32.mrf.mxu0 }
 0x22f   : > { %v7058_v34 = vadd.f32 %v7057_v32, %v7056_v29 }
 0x230   : > { %7071 = vmatpush3.bf16.msra.mxu1 %v8470_v28 }
 0x231   : > { %v1080_v37 = vpack.c.bf16 %v7058_v34, %v7055_v31  ;;  %7072 = vmatprep.subr.bf16.mxu1 %v8475_v30 }
 0x233   : > { %7460 = vmatmul.mubr.msk.bf16.gmra.mxu1 %vm799_vm1, %v1080_v37 }
 0x234   : > { %7073 = vmatpush3.bf16.msra.mxu1 %v8483_v33  ;;  %1251 = vmatprep.mubr.bf16.mxu1 %v7887_v36 }
 0x235   : > { %7074 = vmatprep.subr.bf16.mxu1 %v8488_v35 }
 0x238   : > { %7075 = vmatpush3.bf16.msra.mxu1 %v8495_v39 }
 0x239   : > { %7076 = vmatprep.subr.bf16.mxu1 %v8501_v42 }
 0x23c   : > { %7077 = vmatpush3.bf16.msra.mxu1 %v8509_v47 }
 0x23d   : > { %7078 = vmatprep.subr.bf16.mxu1 %v8516_v49 }
 0x240   : > { %7079 = vmatpush3.bf16.msra.mxu1 %v8520_v50 }
 0x241   : > { %7109 = vmatprep.subr.bf16.mxu1 %v8424_v3 }
 0x243   : > { %1252 = vmatmul.mubr.bf16.vlgmr.msra.gmra.mxu1 %v7885_v40 }
 0x244   : > { %7110 = vmatpush3.bf16.msra.mxu1 %v8429_v7  ;;  %1259 = vmatprep.mubr.bf16.mxu1 %v7888_v41 }
 0x245   : > { %7111 = vmatprep.subr.bf16.mxu1 %v8431_v8 }
 0x248   : > { %7112 = vmatpush3.bf16.msra.mxu1 %v8441_v13 }
 0x249   : > { %7113 = vmatprep.subr.bf16.mxu1 %v8445_v14 }
 0x24b   : > { %1260 = vmatmul.mubr.bf16.gmra.mxu1 %v7890_v44 }
 0x24c   : > { %7114 = vmatpush3.bf16.msra.mxu1 %v8453_v19  ;;  %1267 = vmatprep.mubr.bf16.mxu1 %v7891_v45 }
 0x24d   : > { %7115 = vmatprep.subr.bf16.mxu1 %v8457_v20 }
 0x250   : > { %7116 = vmatpush3.bf16.msra.mxu1 %v8470_v28 }
 0x251   : > { %7117 = vmatprep.subr.bf16.mxu1 %v8475_v30 }
 0x253   : > { %1268 = vmatmul.mubr.bf16.gmra.mxu1 %v7893_v52 }
 0x254   : > { %7118 = vmatpush3.bf16.msra.mxu1 %v8483_v33  ;;  %1275 = vmatprep.mubr.bf16.mxu1 %v7894_v53  ;;  %v1513_v53 = vsel %vm812_vm0, %v1499_v10, 0 }
 0x255   : > { %7119 = vmatprep.subr.bf16.mxu1 %v8488_v35 }
 0x258   : > { %7120 = vmatpush3.bf16.msra.mxu1 %v8495_v39 }
 0x259   : > { %7121 = vmatprep.subr.bf16.mxu1 %v8501_v42 }
 0x25b   : > { %1276 = vmatmul.mubr.bf16.gmra.mxu1 %v7896_v55 }
 0x25c   : > { %7122 = vmatpush3.bf16.msra.mxu1 %v8509_v47  ;;  %1460 = vmatprep.mubr.bf16.mxu1 %v7899_v56 }
 0x25d   : > { %7123 = vmatprep.subr.bf16.mxu1 %v8516_v49 }
 0x260   : > { %7124 = vmatpush3.bf16.msra.mxu1 %v8520_v50 }
 0x263   : > { %1461 = vmatmul.mubr.bf16.vlgmr.msra.gmra.mxu1 %v7897_v58 }
 0x264   : > { %1468 = vmatprep.mubr.bf16.mxu1 %v7900_v59 }
 0x26b   : > { %1469 = vmatmul.mubr.bf16.gmra.mxu1 %v7902_v62 }
 0x26c   : > { %1476 = vmatprep.mubr.bf16.mxu1 %v7903_v63 }
 0x273   : > { %1477 = vmatmul.mubr.bf16.gmra.mxu1 %v7905_v0 }
 0x274   : > { %1484 = vmatprep.mubr.bf16.mxu1 %v7906_v1 }
 0x27b   : > { %1485 = vmatmul.mubr.bf16.gmra.mxu1 %v7908_v2 }
 0x2e3   : > { %v7457_v12 = vpop.f32.mrf.mxu1 }
 0x2e4   : > { %v8742_v15 = vadd.f32 %v7457_v12, %v8629_v38 }
 0x2e5   : > { %v1131_v16 = vpop.f32.mrf.mxu1 }
 0x2e6   : > { %v8745_v17 = vadd.f32 %v1131_v16, %v8631_v43 }
 0x2e7   : > { %v7458_v18 = vpop.f32.mrf.mxu1 }
 0x2e8   : > { %v8748_v21 = vadd.f32 %v7458_v18, %v8633_v46 }
 0x2e9   : > { %v8750_v22 = vpop.f32.mrf.mxu1 }
 0x2f3   : > { %v7461_v23 = vpop.f32.mrf.mxu1 }
 0x2f4   : > { %v8753_v24 = vadd.f32 %v7461_v23, %v8639_v54 }
 0x2f5   : > { %v1147_v25 = vpop.f32.mrf.mxu1 }
 0x2f6   : > { %v8756_v26 = vadd.f32 %v1147_v25, %v8641_v57 }
 0x2f7   : > { %v7462_v38 = vpop.f32.mrf.mxu1 }
 0x2f8   : > { %v8759_v27 = vadd.f32 %v7462_v38, %v8643_v60 }
 0x2f9   : > { %v8761_v43 = vpop.f32.mrf.mxu1 }
 0x303   : > { %v7080_v29 = vpop.f32.mrf.mxu1 }
 0x305   : > { %v7081_v31 = vpop.f32.mrf.mxu1 }
 0x306   : > { %v7082_v34 = vadd.f32 %v7081_v31, %v7080_v29 }
 0x307   : > { %v7083_v46 = vpop.f32.mrf.mxu1 }
 0x309   : > { %v7084_v32 = vpop.f32.mrf.mxu1 }
 0x30a   : > { %v7085_v36 = vadd.f32 %v7084_v32, %v7083_v46 }
 0x30b   : > { %v7086_v37 = vpop.f32.mrf.mxu1 }
 0x30c   : > { %v1286_v40 = vpack.c.bf16 %v7085_v36, %v7082_v34 }
 0x30d   : > { %v7087_v54 = vpop.f32.mrf.mxu1 }
 0x30e   : > { %7465 = vmatprep.mubr.msk.bf16.mxu0 %vm799_vm1, %v1286_v40  ;;  %v7088_v44 = vadd.f32 %v7087_v54, %v7086_v37 }
 0x30f   : > { %v7089_v41 = vpop.f32.mrf.mxu1 }
 0x311   : > { %v7090_v57 = vpop.f32.mrf.mxu1 }
 0x312   : > { %v7091_v45 = vadd.f32 %v7090_v57, %v7089_v41 }
 0x313   : > { %v7092_v52 = vpop.f32.mrf.mxu1 }
 0x314   : > { %v1287_v60 = vpack.c.bf16 %v7091_v45, %v7088_v44 }
 0x315   : > { %v7093_v55 = vpop.f32.mrf.mxu1 }
 0x316   : > { %7466 = vmatmul.mubr.msk.bf16.vlgmr.msra.gmra.mxu0 %vm799_vm1, %v1287_v60  ;;  %v7094_v59 = vadd.f32 %v7093_v55, %v7092_v52 }
 0x317   : > { %v7095_v56 = vpop.f32.mrf.mxu1  ;;  %7474 = vmatpush3.bf16.msra.mxu0 %v1513_v53 }
 0x318   : > { %7154 = vmatprep.subr.bf16.mxu0 %v8424_v3 }
 0x319   : > { %v7096_v58 = vpop.f32.mrf.mxu1 }
 0x31a   : > { %v7097_v62 = vadd.f32 %v7096_v58, %v7095_v56 }
 0x31b   : > { %v7098_v63 = vpop.f32.mrf.mxu1 }
 0x31c   : > { %v1288_v0 = vpack.c.bf16 %v7097_v62, %v7094_v59  ;;  %v7911_v62 = vld [vmem:[%s9831_s1 + $0x144] ss:$8 sps:$4 sm:$0xff]  }
 0x31d   : > { %v7099_v1 = vpop.f32.mrf.mxu1 }
 0x31e   : > { %7469 = vmatprep.mubr.msk.bf16.mxu0 %vm799_vm1, %v1288_v0  ;;  %v7100_v5 = vadd.f32 %v7099_v1, %v7098_v63  ;;  %v7909_v0 = vld [vmem:[%s9831_s1 + $0x140] ss:$8 sps:$4 sm:$0xff]   ;;  %v7912_v1 = vld [vmem:[%s9831_s1 + $0x154] ss:$8 sps:$4 sm:$0xff]  }
 0x31f   : > { %v7101_v2 = vpop.f32.mrf.mxu1 }
 0x321   : > { %v7102_v4 = vpop.f32.mrf.mxu1 }
 0x322   : > { %v7103_v6 = vadd.f32 %v7102_v4, %v7101_v2  ;;  %v7914_v2 = vld [vmem:[%s9831_s1 + $0x150] ss:$8 sps:$4 sm:$0xff]   ;;  %v7915_v4 = vld [vmem:[%s9831_s1 + $0x164] ss:$8 sps:$4 sm:$0xff]  }
 0x323   : > { %v7125_v9 = vpop.f32.mrf.mxu1 }
 0x324   : > { %v1289_v10 = vpack.c.bf16 %v7103_v6, %v7100_v5  ;;  %v7917_v5 = vld [vmem:[%s9831_s1 + $0x160] ss:$8 sps:$4 sm:$0xff]   ;;  %v7918_v6 = vld [vmem:[%s9831_s1 + $0x174] ss:$8 sps:$4 sm:$0xff]  }
 0x325   : > { %v7126_v12 = vpop.f32.mrf.mxu1 }
 0x326   : > { %7470 = vmatmul.mubr.msk.bf16.gmra.mxu0 %vm799_vm1, %v1289_v10  ;;  %v7127_v23 = vadd.f32 %v7126_v12, %v7125_v9  ;;  %v7920_v9 = vld [vmem:[%s9831_s1 + $0x170] ss:$8 sps:$4 sm:$0xff]   ;;  %v7923_v10 = vld [vmem:[%s9831_s1 + $0x184] ss:$8 sps:$4 sm:$0xff]   ;;  %v7921_v12 = vld [vmem:[%s9831_s1 + $0x180] ss:$8 sps:$4 sm:$0xff]  }
 0x327   : > { %v7128_v16 = vpop.f32.mrf.mxu1 }
 0x329   : > { %v7129_v18 = vpop.f32.mrf.mxu1 }
 0x32a   : > { %v7130_v25 = vadd.f32 %v7129_v18, %v7128_v16  ;;  %v7924_v16 = vld [vmem:[%s9831_s1 + $0x194] ss:$8 sps:$4 sm:$0xff]   ;;  %v7926_v18 = vld [vmem:[%s9831_s1 + $0x190] ss:$8 sps:$4 sm:$0xff]  }
 0x32b   : > { %v7131_v38 = vpop.f32.mrf.mxu1 }
 0x32c   : > { %v1495_v29 = vpack.c.bf16 %v7130_v25, %v7127_v23  ;;  %v7927_v23 = vld [vmem:[%s9831_s1 + $0x1a4] ss:$8 sps:$4 sm:$0xff]   ;;  %v7929_v25 = vld [vmem:[%s9831_s1 + $0x1a0] ss:$8 sps:$4 sm:$0xff]  }
 0x32d   : > { %v7132_v31 = vpop.f32.mrf.mxu1 }
 0x32e   : > { %7475 = vmatprep.mubr.msk.bf16.mxu0 %vm799_vm1, %v1495_v29  ;;  %v7133_v34 = vadd.f32 %v7132_v31, %v7131_v38  ;;  %v7930_v38 = vld [vmem:[%s9831_s1 + $0x1b4] ss:$8 sps:$4 sm:$0xff]   ;;  %v7932_v29 = vld [vmem:[%s9831_s1 + $0x1b0] ss:$8 sps:$4 sm:$0xff]   ;;  %v6578_v31 = vld [vmem:[%s9834_s4 + $0x28] sm:$0xff] }
 0x32f   : > { %v7134_v46 = vpop.f32.mrf.mxu1 }
 0x331   : > { %v7135_v32 = vpop.f32.mrf.mxu1 }
 0x332   : > { %v7136_v36 = vadd.f32 %v7135_v32, %v7134_v46  ;;  %v1708_v46 = vpack.c.bf16 %v6578_v31, %v6578_v31 }
 0x333   : > { %v7137_v37 = vpop.f32.mrf.mxu1 }
 0x334   : > { %v1496_v40 = vpack.c.bf16 %v7136_v36, %v7133_v34  ;;  %7798 = vmatprep.subr.msk.bf16.mxu1 %vm812_vm0, %v1708_v46  ;;  %v1722_v32 = vsel %vm812_vm0, %v1708_v46, 0  ;;  %v6599_v34 = vld [vmem:[%s9834_s4 + $0x30] sm:$0xff] }
 0x335   : > { %v7138_v54 = vpop.f32.mrf.mxu1  ;;  %7484 = vmatpush3.bf16.msra.mxu1 %v1722_v32  ;;  %v1917_v36 = vpack.c.bf16 %v6599_v34, %v6599_v34 }
 0x336   : > { %7476 = vmatmul.mubr.msk.bf16.vlgmr.msra.gmra.mxu0 %vm799_vm1, %v1496_v40  ;;  %v7139_v57 = vadd.f32 %v7138_v54, %v7137_v37 }
 0x337   : > { %7155 = vmatpush3.bf16.msra.mxu0 %v8429_v7  ;;  %v7140_v41 = vpop.f32.mrf.mxu1  ;;  %7799 = vmatprep.subr.msk.bf16.mxu1 %vm812_vm0, %v1917_v36 }
 0x338   : > { %7156 = vmatprep.subr.bf16.mxu0 %v8431_v8 }
 0x339   : > { %v7141_v44 = vpop.f32.mrf.mxu1 }
 0x33a   : > { %v7142_v45 = vadd.f32 %v7141_v44, %v7140_v41 }
 0x33b   : > { %7157 = vmatpush3.bf16.msra.mxu0 %v8441_v13  ;;  %v7143_v52 = vpop.f32.mrf.mxu1 }
 0x33c   : > { %v1497_v60 = vpack.c.bf16 %v7142_v45, %v7139_v57  ;;  %7158 = vmatprep.subr.bf16.mxu0 %v8445_v14 }
 0x33d   : > { %v7144_v53 = vpop.f32.mrf.mxu1 }
 0x33e   : > { %7479 = vmatprep.mubr.msk.bf16.mxu0 %vm799_vm1, %v1497_v60  ;;  %v7145_v56 = vadd.f32 %v7144_v53, %v7143_v52 }
 0x33f   : > { %7159 = vmatpush3.bf16.msra.mxu0 %v8453_v19  ;;  %v7146_v55 = vpop.f32.mrf.mxu1 }
 0x340   : > { %7160 = vmatprep.subr.bf16.mxu0 %v8457_v20 }
 0x341   : > { %v7147_v58 = vpop.f32.mrf.mxu1 }
 0x342   : > { %v7148_v59 = vadd.f32 %v7147_v58, %v7146_v55 }
 0x343   : > { %7161 = vmatpush3.bf16.msra.mxu0 %v8470_v28 }
 0x344   : > { %v1498_v63 = vpack.c.bf16 %v7148_v59, %v7145_v56  ;;  %7162 = vmatprep.subr.bf16.mxu0 %v8475_v30 }
 0x346   : > { %7480 = vmatmul.mubr.msk.bf16.gmra.mxu0 %vm799_vm1, %v1498_v63 }
 0x347   : > { %7163 = vmatpush3.bf16.msra.mxu0 %v8483_v33  ;;  %1669 = vmatprep.mubr.bf16.mxu0 %v7911_v62 }
 0x348   : > { %7164 = vmatprep.subr.bf16.mxu0 %v8488_v35 }
 0x34b   : > { %7165 = vmatpush3.bf16.msra.mxu0 %v8495_v39 }
 0x34c   : > { %7166 = vmatprep.subr.bf16.mxu0 %v8501_v42 }
 0x34f   : > { %7167 = vmatpush3.bf16.msra.mxu0 %v8509_v47 }
 0x350   : > { %7168 = vmatprep.subr.bf16.mxu0 %v8516_v49 }
 0x353   : > { %7169 = vmatpush3.bf16.msra.mxu0 %v8520_v50 }
 0x354   : > { %7199 = vmatprep.subr.bf16.mxu0 %v8424_v3 }
 0x356   : > { %1670 = vmatmul.mubr.bf16.vlgmr.msra.gmra.mxu0 %v7909_v0 }
 0x357   : > { %7200 = vmatpush3.bf16.msra.mxu0 %v8429_v7  ;;  %1677 = vmatprep.mubr.bf16.mxu0 %v7912_v1 }
 0x358   : > { %7201 = vmatprep.subr.bf16.mxu0 %v8431_v8 }
 0x35b   : > { %7202 = vmatpush3.bf16.msra.mxu0 %v8441_v13 }
 0x35c   : > { %7203 = vmatprep.subr.bf16.mxu0 %v8445_v14 }
 0x35e   : > { %1678 = vmatmul.mubr.bf16.gmra.mxu0 %v7914_v2 }
 0x35f   : > { %7204 = vmatpush3.bf16.msra.mxu0 %v8453_v19  ;;  %1685 = vmatprep.mubr.bf16.mxu0 %v7915_v4 }
 0x360   : > { %7205 = vmatprep.subr.bf16.mxu0 %v8457_v20 }
 0x363   : > { %7206 = vmatpush3.bf16.msra.mxu0 %v8470_v28 }
 0x364   : > { %7207 = vmatprep.subr.bf16.mxu0 %v8475_v30 }
 0x366   : > { %1686 = vmatmul.mubr.bf16.gmra.mxu0 %v7917_v5 }
 0x367   : > { %7208 = vmatpush3.bf16.msra.mxu0 %v8483_v33  ;;  %1693 = vmatprep.mubr.bf16.mxu0 %v7918_v6 }
 0x368   : > { %7209 = vmatprep.subr.bf16.mxu0 %v8488_v35 }
 0x36b   : > { %7210 = vmatpush3.bf16.msra.mxu0 %v8495_v39 }
 0x36c   : > { %7211 = vmatprep.subr.bf16.mxu0 %v8501_v42 }
 0x36e   : > { %1694 = vmatmul.mubr.bf16.gmra.mxu0 %v7920_v9 }
 0x36f   : > { %7212 = vmatpush3.bf16.msra.mxu0 %v8509_v47  ;;  %1878 = vmatprep.mubr.bf16.mxu0 %v7923_v10 }
 0x370   : > { %7213 = vmatprep.subr.bf16.mxu0 %v8516_v49 }
 0x373   : > { %7214 = vmatpush3.bf16.msra.mxu0 %v8520_v50 }
 0x376   : > { %1879 = vmatmul.mubr.bf16.vlgmr.msra.gmra.mxu0 %v7921_v12 }
 0x377   : > { %1886 = vmatprep.mubr.bf16.mxu0 %v7924_v16 }
 0x37e   : > { %1887 = vmatmul.mubr.bf16.gmra.mxu0 %v7926_v18 }
 0x37f   : > { %1894 = vmatprep.mubr.bf16.mxu0 %v7927_v23 }
 0x386   : > { %1895 = vmatmul.mubr.bf16.gmra.mxu0 %v7929_v25 }
 0x387   : > { %1902 = vmatprep.mubr.bf16.mxu0 %v7930_v38 }
 0x38e   : > { %1903 = vmatmul.mubr.bf16.gmra.mxu0 %v7932_v29 }
 0x3d6   : > { %v7467_v37 = vpop.f32.mrf.mxu0 }
 0x3d7   : > { %v1373_v40 = vadd.f32 %v7467_v37, %v8742_v15 }
 0x3d8   : > { %v1340_v54 = vpop.f32.mrf.mxu0 }
 0x3d9   : > { %v1371_v41 = vadd.f32 %v1340_v54, %v8745_v17  ;;  %v1931_v54 = vsel %vm812_vm0, %v1917_v36, 0 }
 0x3da   : > { %v7468_v57 = vpop.f32.mrf.mxu0 }
 0x3db   : > { %v1374_v44 = vadd.f32 %v7468_v57, %v8748_v21 }
 0x3dc   : > { %v8864_v45 = vpop.f32.mrf.mxu0 }
 0x3e6   : > { %v7471_v52 = vpop.f32.mrf.mxu0 }
 0x3e7   : > { %v1377_v60 = vadd.f32 %v7471_v52, %v8753_v24 }
 0x3e8   : > { %v1356_v53 = vpop.f32.mrf.mxu0 }
 0x3e9   : > { %v1375_v55 = vadd.f32 %v1356_v53, %v8756_v26 }
 0x3ea   : > { %v7472_v56 = vpop.f32.mrf.mxu0 }
 0x3eb   : > { %v1378_v58 = vadd.f32 %v7472_v56, %v8759_v27 }
 0x3ec   : > { %v8869_v59 = vpop.f32.mrf.mxu0 }
 0x3f6   : > { %v7477_v15 = vpop.f32.mrf.mxu0 }
 0x3f7   : > { %v8871_v62 = vadd.f32 %v7477_v15, %v1373_v40 }
 0x3f8   : > { %v1549_v17 = vpop.f32.mrf.mxu0 }
 0x3f9   : > { %v8873_v63 = vadd.f32 %v1549_v17, %v1371_v41 }
 0x3fa   : > { %v7478_v21 = vpop.f32.mrf.mxu0 }
 0x3fb   : > { %v8875_v0 = vadd.f32 %v7478_v21, %v1374_v44 }
 0x3fc   : > { %v8877_v1 = vpop.f32.mrf.mxu0 }
 0x406   : > { %v7481_v24 = vpop.f32.mrf.mxu0 }
 0x407   : > { %v8879_v2 = vadd.f32 %v7481_v24, %v1377_v60 }
 0x408   : > { %v1565_v26 = vpop.f32.mrf.mxu0 }
 0x409   : > { %v8881_v4 = vadd.f32 %v1565_v26, %v1375_v55 }
 0x40a   : > { %v7482_v27 = vpop.f32.mrf.mxu0 }
 0x40b   : > { %v8883_v5 = vadd.f32 %v7482_v27, %v1378_v58 }
 0x40c   : > { %v8885_v6 = vpop.f32.mrf.mxu0 }
 0x416   : > { %v7170_v9 = vpop.f32.mrf.mxu0 }
 0x418   : > { %v7171_v10 = vpop.f32.mrf.mxu0 }
 0x419   : > { %v7172_v18 = vadd.f32 %v7171_v10, %v7170_v9 }
 0x41a   : > { %v7173_v12 = vpop.f32.mrf.mxu0 }
 0x41c   : > { %v7174_v16 = vpop.f32.mrf.mxu0 }
 0x41d   : > { %v7175_v23 = vadd.f32 %v7174_v16, %v7173_v12 }
 0x41e   : > { %v7176_v25 = vpop.f32.mrf.mxu0 }
 0x41f   : > { %v1704_v38 = vpack.c.bf16 %v7175_v23, %v7172_v18 }
 0x420   : > { %v7177_v29 = vpop.f32.mrf.mxu0 }
 0x421   : > { %7485 = vmatprep.mubr.msk.bf16.mxu1 %vm799_vm1, %v1704_v38  ;;  %v7178_v32 = vadd.f32 %v7177_v29, %v7176_v25 }
 0x422   : > { %v7179_v31 = vpop.f32.mrf.mxu0 }
 0x424   : > { %v7180_v46 = vpop.f32.mrf.mxu0 }
 0x425   : > { %v7181_v34 = vadd.f32 %v7180_v46, %v7179_v31 }
 0x426   : > { %v7182_v37 = vpop.f32.mrf.mxu0 }
 0x427   : > { %v1705_v40 = vpack.c.bf16 %v7181_v34, %v7178_v32 }
 0x428   : > { %v7183_v41 = vpop.f32.mrf.mxu0 }
 0x429   : > { %7486 = vmatmul.mubr.msk.bf16.vlgmr.msra.gmra.mxu1 %vm799_vm1, %v1705_v40  ;;  %v7184_v52 = vadd.f32 %v7183_v41, %v7182_v37 }
 0x42a   : > { %v7185_v57 = vpop.f32.mrf.mxu0  ;;  %7494 = vmatpush3.bf16.msra.mxu1 %v1931_v54 }
 0x42b   : > { %7244 = vmatprep.subr.bf16.mxu1 %v8424_v3 }
 0x42c   : > { %v7186_v44 = vpop.f32.mrf.mxu0 }
 0x42d   : > { %v7187_v60 = vadd.f32 %v7186_v44, %v7185_v57 }
 0x42e   : > { %v7188_v53 = vpop.f32.mrf.mxu0 }
 0x42f   : > { %v1706_v55 = vpack.c.bf16 %v7187_v60, %v7184_v52 }
 0x430   : > { %v7189_v56 = vpop.f32.mrf.mxu0 }
 0x431   : > { %7489 = vmatprep.mubr.msk.bf16.mxu1 %vm799_vm1, %v1706_v55  ;;  %v7190_v17 = vadd.f32 %v7189_v56, %v7188_v53 }
 0x432   : > { %v7191_v58 = vpop.f32.mrf.mxu0 }
 0x434   : > { %v7192_v15 = vpop.f32.mrf.mxu0 }
 0x435   : > { %v7193_v21 = vadd.f32 %v7192_v15, %v7191_v58  ;;  %v7935_v58 = vld [vmem:[%s9831_s1 + $0x1c4] ss:$8 sps:$4 sm:$0xff]  }
 0x436   : > { %v7215_v36 = vpop.f32.mrf.mxu0 }
 0x437   : > { %v1707_v24 = vpack.c.bf16 %v7193_v21, %v7190_v17  ;;  %v7933_v17 = vld [vmem:[%s9831_s1 + $0x1c0] ss:$8 sps:$4 sm:$0xff]   ;;  %v7936_v21 = vld [vmem:[%s9831_s1 + $0x1d4] ss:$8 sps:$4 sm:$0xff]  }
 0x438   : > { %v7216_v26 = vpop.f32.mrf.mxu0 }
 0x439   : > { %7490 = vmatmul.mubr.msk.bf16.gmra.mxu1 %vm799_vm1, %v1707_v24  ;;  %v7217_v10 = vadd.f32 %v7216_v26, %v7215_v36  ;;  %v7938_v36 = vld [vmem:[%s9831_s1 + $0x1d0] ss:$8 sps:$4 sm:$0xff]   ;;  %v7939_v24 = vld [vmem:[%s9831_s1 + $0x1e4] ss:$8 sps:$4 sm:$0xff]  }
 0x43a   : > { %v7218_v27 = vpop.f32.mrf.mxu0 }
 0x43c   : > { %v7219_v9 = vpop.f32.mrf.mxu0 }
 0x43d   : > { %v7220_v12 = vadd.f32 %v7219_v9, %v7218_v27 }
 0x43e   : > { %v7221_v16 = vpop.f32.mrf.mxu0 }
 0x43f   : > { %v1913_v18 = vpack.c.bf16 %v7220_v12, %v7217_v10 }
 0x440   : > { %v7222_v23 = vpop.f32.mrf.mxu0 }
 0x441   : > { %7495 = vmatprep.mubr.msk.bf16.mxu1 %vm799_vm1, %v1913_v18  ;;  %v7223_v29 = vadd.f32 %v7222_v23, %v7221_v16 }
 0x442   : > { %v7224_v25 = vpop.f32.mrf.mxu0 }
 0x444   : > { %v7225_v38 = vpop.f32.mrf.mxu0 }
 0x445   : > { %v7226_v31 = vadd.f32 %v7225_v38, %v7224_v25 }
 0x446   : > { %v7227_v46 = vpop.f32.mrf.mxu0 }
 0x447   : > { %v1914_v32 = vpack.c.bf16 %v7226_v31, %v7223_v29 }
 0x448   : > { %v7228_v34 = vpop.f32.mrf.mxu0 }
 0x449   : > { %7496 = vmatmul.mubr.msk.bf16.vlgmr.msra.gmra.mxu1 %vm799_vm1, %v1914_v32  ;;  %v7229_v40 = vadd.f32 %v7228_v34, %v7227_v46 }
 0x44a   : > { %7245 = vmatpush3.bf16.msra.mxu1 %v8429_v7  ;;  %v7230_v37 = vpop.f32.mrf.mxu0 }
 0x44b   : > { %7246 = vmatprep.subr.bf16.mxu1 %v8431_v8 }
 0x44c   : > { %v7231_v54 = vpop.f32.mrf.mxu0 }
 0x44d   : > { %v7232_v41 = vadd.f32 %v7231_v54, %v7230_v37 }
 0x44e   : > { %7247 = vmatpush3.bf16.msra.mxu1 %v8441_v13  ;;  %v7233_v57 = vpop.f32.mrf.mxu0 }
 0x44f   : > { %v1915_v44 = vpack.c.bf16 %v7232_v41, %v7229_v40  ;;  %7248 = vmatprep.subr.bf16.mxu1 %v8445_v14 }
 0x450   : > { %v7234_v52 = vpop.f32.mrf.mxu0 }
 0x451   : > { %7499 = vmatprep.mubr.msk.bf16.mxu1 %vm799_vm1, %v1915_v44  ;;  %v7235_v53 = vadd.f32 %v7234_v52, %v7233_v57 }
 0x452   : > { %7249 = vmatpush3.bf16.msra.mxu1 %v8453_v19  ;;  %v7236_v60 = vpop.f32.mrf.mxu0 }
 0x453   : > { %7250 = vmatprep.subr.bf16.mxu1 %v8457_v20 }
 0x454   : > { %v7237_v55 = vpop.f32.mrf.mxu0 }
 0x455   : > { %v7238_v56 = vadd.f32 %v7237_v55, %v7236_v60 }
 0x456   : > { %7251 = vmatpush3.bf16.msra.mxu1 %v8470_v28 }
 0x457   : > { %v1916_v15 = vpack.c.bf16 %v7238_v56, %v7235_v53  ;;  %7252 = vmatprep.subr.bf16.mxu1 %v8475_v30 }
 0x459   : > { %7500 = vmatmul.mubr.msk.bf16.gmra.mxu1 %vm799_vm1, %v1916_v15 }
 0x45a   : > { %7253 = vmatpush3.bf16.msra.mxu1 %v8483_v33  ;;  %2087 = vmatprep.mubr.bf16.mxu1 %v7935_v58 }
 0x45b   : > { %7254 = vmatprep.subr.bf16.mxu1 %v8488_v35 }
 0x45e   : > { %7255 = vmatpush3.bf16.msra.mxu1 %v8495_v39 }
 0x45f   : > { %7256 = vmatprep.subr.bf16.mxu1 %v8501_v42 }
 0x462   : > { %7257 = vmatpush3.bf16.msra.mxu1 %v8509_v47 }
 0x463   : > { %7258 = vmatprep.subr.bf16.mxu1 %v8516_v49 }
 0x466   : > { %7259 = vmatpush3.bf16.msra.mxu1 %v8520_v50 }
 0x467   : > { %7289 = vmatprep.subr.bf16.mxu1 %v8424_v3  ;;  %v7941_v3 = vld [vmem:[%s9831_s1 + $0x1e0] ss:$8 sps:$4 sm:$0xff]  }
 0x469   : > { %2088 = vmatmul.mubr.bf16.vlgmr.msra.gmra.mxu1 %v7933_v17 }
 0x46a   : > { %7290 = vmatpush3.bf16.msra.mxu1 %v8429_v7  ;;  %2095 = vmatprep.mubr.bf16.mxu1 %v7936_v21  ;;  %v7942_v7 = vld [vmem:[%s9831_s1 + $0x1f4] ss:$8 sps:$4 sm:$0xff]  }
 0x46b   : > { %7291 = vmatprep.subr.bf16.mxu1 %v8431_v8  ;;  %v7944_v8 = vld [vmem:[%s9831_s1 + $0x1f0] ss:$8 sps:$4 sm:$0xff]  }
 0x46e   : > { %7292 = vmatpush3.bf16.msra.mxu1 %v8441_v13  ;;  %v7947_v13 = vld [vmem:[%s9831_s1 + $0x204] ss:$8 sps:$4 sm:$0xff]  }
 0x46f   : > { %7293 = vmatprep.subr.bf16.mxu1 %v8445_v14  ;;  %v7945_v14 = vld [vmem:[%s9831_s1 + $0x200] ss:$8 sps:$4 sm:$0xff]  }
 0x471   : > { %2096 = vmatmul.mubr.bf16.gmra.mxu1 %v7938_v36 }
 0x472   : > { %7294 = vmatpush3.bf16.msra.mxu1 %v8453_v19  ;;  %2103 = vmatprep.mubr.bf16.mxu1 %v7939_v24  ;;  %v7948_v19 = vld [vmem:[%s9831_s1 + $0x214] ss:$8 sps:$4 sm:$0xff]  }
 0x473   : > { %7295 = vmatprep.subr.bf16.mxu1 %v8457_v20  ;;  %v7950_v20 = vld [vmem:[%s9831_s1 + $0x210] ss:$8 sps:$4 sm:$0xff]  }
 0x476   : > { %7296 = vmatpush3.bf16.msra.mxu1 %v8470_v28  ;;  %v7951_v28 = vld [vmem:[%s9831_s1 + $0x224] ss:$8 sps:$4 sm:$0xff]  }
 0x477   : > { %7297 = vmatprep.subr.bf16.mxu1 %v8475_v30  ;;  %v7953_v30 = vld [vmem:[%s9831_s1 + $0x220] ss:$8 sps:$4 sm:$0xff]  }
 0x479   : > { %2104 = vmatmul.mubr.bf16.gmra.mxu1 %v7941_v3 }
 0x47a   : > { %7298 = vmatpush3.bf16.msra.mxu1 %v8483_v33  ;;  %2111 = vmatprep.mubr.bf16.mxu1 %v7942_v7  ;;  %v7954_v33 = vld [vmem:[%s9831_s1 + $0x234] ss:$8 sps:$4 sm:$0xff]  }
 0x47b   : > { %7299 = vmatprep.subr.bf16.mxu1 %v8488_v35  ;;  %v7956_v35 = vld [vmem:[%s9831_s1 + $0x230] ss:$8 sps:$4 sm:$0xff]  }
 0x47e   : > { %7300 = vmatpush3.bf16.msra.mxu1 %v8495_v39  ;;  %v6620_v39 = vld [vmem:[%s9834_s4 + $0x38] sm:$0xff] }
 0x47f   : > { %7301 = vmatprep.subr.bf16.mxu1 %v8501_v42  ;;  %v2126_v42 = vpack.c.bf16 %v6620_v39, %v6620_v39 }
 0x481   : > { %2112 = vmatmul.mubr.bf16.gmra.mxu1 %v7944_v8  ;;  %7800 = vmatprep.subr.msk.bf16.mxu0 %vm812_vm0, %v2126_v42 }
 0x482   : > { %7302 = vmatpush3.bf16.msra.mxu1 %v8509_v47  ;;  %2296 = vmatprep.mubr.bf16.mxu1 %v7947_v13  ;;  %v2140_v47 = vsel %vm812_vm0, %v2126_v42, 0 }
 0x483   : > { %7303 = vmatprep.subr.bf16.mxu1 %v8516_v49  ;;  %7504 = vmatpush3.bf16.msra.mxu0 %v2140_v47  ;;  %v6641_v49 = vld [vmem:[%s9834_s4 + $0x40] sm:$0xff] }
 0x486   : > { %7304 = vmatpush3.bf16.msra.mxu1 %v8520_v50  ;;  %v2335_v50 = vpack.c.bf16 %v6641_v49, %v6641_v49 }
 0x488   : > { %7801 = vmatprep.subr.msk.bf16.mxu0 %vm812_vm0, %v2335_v50 }
 0x489   : > { %2297 = vmatmul.mubr.bf16.vlgmr.msra.gmra.mxu1 %v7945_v14 }
 0x48a   : > { %2304 = vmatprep.mubr.bf16.mxu1 %v7948_v19  ;;  %v2349_v19 = vsel %vm812_vm0, %v2335_v50, 0 }
 0x491   : > { %2305 = vmatmul.mubr.bf16.gmra.mxu1 %v7950_v20 }
 0x492   : > { %2312 = vmatprep.mubr.bf16.mxu1 %v7951_v28 }
 0x499   : > { %2313 = vmatmul.mubr.bf16.gmra.mxu1 %v7953_v30 }
 0x49a   : > { %2320 = vmatprep.mubr.bf16.mxu1 %v7954_v33 }
 0x4a1   : > { %2321 = vmatmul.mubr.bf16.gmra.mxu1 %v7956_v35 }
 0x4e9   : > { %v7487_v26 = vpop.f32.mrf.mxu1 }
 0x4ea   : > { %v1791_v27 = vadd.f32 %v7487_v26, %v8871_v62 }
 0x4eb   : > { %v1758_v9 = vpop.f32.mrf.mxu1 }
 0x4ec   : > { %v1789_v10 = vadd.f32 %v1758_v9, %v8873_v63 }
 0x4ed   : > { %v7488_v12 = vpop.f32.mrf.mxu1 }
 0x4ee   : > { %v1792_v16 = vadd.f32 %v7488_v12, %v8875_v0 }
 0x4ef   : > { %v8988_v18 = vpop.f32.mrf.mxu1 }
 0x4f9   : > { %v7491_v23 = vpop.f32.mrf.mxu1 }
 0x4fa   : > { %v1795_v25 = vadd.f32 %v7491_v23, %v8879_v2 }
 0x4fb   : > { %v1774_v38 = vpop.f32.mrf.mxu1 }
 0x4fc   : > { %v1793_v29 = vadd.f32 %v1774_v38, %v8881_v4 }
 0x4fd   : > { %v7492_v31 = vpop.f32.mrf.mxu1 }
 0x4fe   : > { %v1796_v46 = vadd.f32 %v7492_v31, %v8883_v5 }
 0x4ff   : > { %v8993_v32 = vpop.f32.mrf.mxu1 }
 0x509   : > { %v7497_v62 = vpop.f32.mrf.mxu1 }
 0x50a   : > { %v8995_v34 = vadd.f32 %v7497_v62, %v1791_v27 }
 0x50b   : > { %v1967_v63 = vpop.f32.mrf.mxu1 }
 0x50c   : > { %v8997_v37 = vadd.f32 %v1967_v63, %v1789_v10 }
 0x50d   : > { %v7498_v0 = vpop.f32.mrf.mxu1 }
 0x50e   : > { %v8999_v40 = vadd.f32 %v7498_v0, %v1792_v16 }
 0x50f   : > { %v9001_v54 = vpop.f32.mrf.mxu1 }
 0x519   : > { %v7501_v2 = vpop.f32.mrf.mxu1 }
 0x51a   : > { %v9003_v41 = vadd.f32 %v7501_v2, %v1795_v25 }
 0x51b   : > { %v1983_v4 = vpop.f32.mrf.mxu1 }
 0x51c   : > { %v9005_v57 = vadd.f32 %v1983_v4, %v1793_v29 }
 0x51d   : > { %v7502_v5 = vpop.f32.mrf.mxu1 }
 0x51e   : > { %v9007_v44 = vadd.f32 %v7502_v5, %v1796_v46 }
 0x51f   : > { %v9009_v52 = vpop.f32.mrf.mxu1 }
 0x529   : > { %v7260_v60 = vpop.f32.mrf.mxu1 }
 0x52b   : > { %v7261_v53 = vpop.f32.mrf.mxu1 }
 0x52c   : > { %v7262_v58 = vadd.f32 %v7261_v53, %v7260_v60 }
 0x52d   : > { %v7263_v55 = vpop.f32.mrf.mxu1 }
 0x52f   : > { %v7264_v56 = vpop.f32.mrf.mxu1 }
 0x530   : > { %v7265_v15 = vadd.f32 %v7264_v56, %v7263_v55 }
 0x531   : > { %v7266_v17 = vpop.f32.mrf.mxu1 }
 0x532   : > { %v2122_v21 = vpack.c.bf16 %v7265_v15, %v7262_v58 }
 0x533   : > { %v7267_v36 = vpop.f32.mrf.mxu1 }
 0x534   : > { %7505 = vmatprep.mubr.msk.bf16.mxu0 %vm799_vm1, %v2122_v21  ;;  %v7268_v7 = vadd.f32 %v7267_v36, %v7266_v17 }
 0x535   : > { %v7269_v24 = vpop.f32.mrf.mxu1 }
 0x537   : > { %v7270_v3 = vpop.f32.mrf.mxu1 }
 0x538   : > { %v7271_v8 = vadd.f32 %v7270_v3, %v7269_v24 }
 0x539   : > { %v7272_v13 = vpop.f32.mrf.mxu1 }
 0x53a   : > { %v2123_v14 = vpack.c.bf16 %v7271_v8, %v7268_v7 }
 0x53b   : > { %v7273_v20 = vpop.f32.mrf.mxu1 }
 0x53c   : > { %7506 = vmatmul.mubr.msk.bf16.vlgmr.msra.gmra.mxu0 %vm799_vm1, %v2123_v14  ;;  %v7274_v33 = vadd.f32 %v7273_v20, %v7272_v13  ;;  %v8259_v13 = vmov 0.0   ;;  %v2559_v14 = vld [vmem:[#allocation2 + $0x8] sm:$0xff] }
 0x53d   : > { %v7275_v28 = vpop.f32.mrf.mxu1  ;;  %7514 = vmatpush3.bf16.msra.mxu0 %v2349_v19  ;;  %7547 = vmatprep.subr.bf16.mxu1 %v8259_v13  ;;  %v2561_v19 = vpack.c.bf16 %v2559_v14, %v2559_v14 }
 0x53e   : > { %7523 = vmatprep.subr.bf16.mxu0 %v8259_v13  ;;  %7549 = vmatprep.mubr.msk.bf16.mxu1 %vm8260_vm2, %v8259_v13 }
 0x53f   : > { %v7276_v30 = vpop.f32.mrf.mxu1  ;;  %v2566_v20 = vsel %vm812_vm0, %v2561_v19, 0 }
 0x540   : > { %v7277_v35 = vadd.f32 %v7276_v30, %v7275_v28  ;;  %7548 = vmatpush3.bf16.msra.mxu1 %v2566_v20 }
 0x541   : > { %v7278_v39 = vpop.f32.mrf.mxu1  ;;  %7559 = vmatprep.subr.bf16.mxu1 %v8259_v13 }
 0x542   : > { %v2124_v42 = vpack.c.bf16 %v7277_v35, %v7274_v33 }
 0x543   : > { %v7279_v47 = vpop.f32.mrf.mxu1 }
 0x544   : > { %7509 = vmatprep.mubr.msk.bf16.mxu0 %vm799_vm1, %v2124_v42  ;;  %v7280_v27 = vadd.f32 %v7279_v47, %v7278_v39 }
 0x545   : > { %v7281_v49 = vpop.f32.mrf.mxu1 }
 0x547   : > { %v7282_v26 = vpop.f32.mrf.mxu1 }
 0x548   : > { %v7283_v9 = vadd.f32 %v7282_v26, %v7281_v49 }
 0x549   : > { %v7305_v10 = vpop.f32.mrf.mxu1 }
 0x54a   : > { %v2125_v12 = vpack.c.bf16 %v7283_v9, %v7280_v27 }
 0x54b   : > { %v7306_v50 = vpop.f32.mrf.mxu1 }
 0x54c   : > { %7510 = vmatmul.mubr.msk.bf16.gmra.mxu0 %vm799_vm1, %v2125_v12  ;;  %v7307_v25 = vadd.f32 %v7306_v50, %v7305_v10  ;;  %v6646_v10 = vld [vmem:[%s9835_s5] ss:$0 sm:$0xff] }
 0x54d   : > { %v7308_v16 = vpop.f32.mrf.mxu1 }
 0x54f   : > { %v7309_v23 = vpop.f32.mrf.mxu1 }
 0x550   : > { %v7310_v38 = vadd.f32 %v7309_v23, %v7308_v16 }
 0x551   : > { %v7311_v29 = vpop.f32.mrf.mxu1 }
 0x552   : > { %v2331_v31 = vpack.c.bf16 %v7310_v38, %v7307_v25 }
 0x553   : > { %v7312_v46 = vpop.f32.mrf.mxu1 }
 0x554   : > { %7515 = vmatprep.mubr.msk.bf16.mxu0 %vm799_vm1, %v2331_v31  ;;  %v7313_v0 = vadd.f32 %v7312_v46, %v7311_v29  ;;  %v950_v29 = vadd.f32 %v8739_v11, %v8645_v61 }
 0x555   : > { %v7314_v62 = vpop.f32.mrf.mxu1 }
 0x557   : > { %v7315_v63 = vpop.f32.mrf.mxu1 }
 0x558   : > { %v7316_v2 = vadd.f32 %v7315_v63, %v7314_v62  ;;  %v934_v63 = vadd.f32 %v8637_v51, %v8635_v48 }
 0x559   : > { %v7317_v4 = vpop.f32.mrf.mxu1 }
 0x55a   : > { %v2332_v5 = vpack.c.bf16 %v7316_v2, %v7313_v0 }
 0x55b   : > { %v7318_v60 = vpop.f32.mrf.mxu1 }
 0x55c   : > { %7516 = vmatmul.mubr.msk.bf16.vlgmr.msra.gmra.mxu0 %vm799_vm1, %v2332_v5  ;;  %v7319_v56 = vadd.f32 %v7318_v60, %v7317_v4 }
 0x55d   : > { %v7320_v53 = vpop.f32.mrf.mxu1 }
 0x55f   : > { %v7321_v55 = vpop.f32.mrf.mxu1 }
 0x560   : > { %v7322_v58 = vadd.f32 %v7321_v55, %v7320_v53 }
 0x561   : > { %v7323_v15 = vpop.f32.mrf.mxu1 }
 0x562   : > { %v2333_v17 = vpack.c.bf16 %v7322_v58, %v7319_v56 }
 0x563   : > { %v7324_v21 = vpop.f32.mrf.mxu1 }
 0x564   : > { %7519 = vmatprep.mubr.msk.bf16.mxu0 %vm799_vm1, %v2333_v17  ;;  %v7325_v3 = vadd.f32 %v7324_v21, %v7323_v15 }
 0x565   : > { %v7326_v36 = vpop.f32.mrf.mxu1 }
 0x567   : > { %v7327_v24 = vpop.f32.mrf.mxu1 }
 0x568   : > { %v7328_v7 = vadd.f32 %v7327_v24, %v7326_v36 }
 0x56a   : > { %v2334_v8 = vpack.c.bf16 %v7328_v7, %v7325_v3 }
 0x56c   : > { %7520 = vmatmul.mubr.msk.bf16.gmra.mxu0 %vm799_vm1, %v2334_v8 }
 0x56d   : > { %7531 = vmatprep.mubr.msk.bf16.mxu0 %vm8260_vm2, %v8259_v13 }
 0x5fc   : > { %v7507_v28 = vpop.f32.mrf.mxu0 }
 0x5fd   : > { %v2209_v26 = vadd.f32 %v7507_v28, %v8995_v34  ;;  %v1167_v34 = vadd.f32 %v8761_v43, %v950_v29  ;;  %v2709_v29 = vld [vmem:[#allocation2 + $0x10] sm:$0xff] }
 0x5fe   : > { %v2176_v30 = vpop.f32.mrf.mxu0 }
 0x5ff   : > { %v1376_v0 = vadd.f32 %v8869_v59, %v1167_v34 }
 0x600   : > { %v7508_v33 = vpop.f32.mrf.mxu0 }
 0x601   : > { %v2210_v50 = vadd.f32 %v7508_v33, %v8999_v40  ;;  %v1163_v40 = vadd.f32 %v8750_v22, %v934_v63  ;;  %v1585_v4 = vadd.f32 %v8885_v6, %v1376_v0  ;;  %v7957_v33 = vld [vmem:[%s9832_s2] sm:$0xff]  }
 0x602   : > { %v2179_v35 = vpop.f32.mrf.mxu0 }
 0x603   : > { %v1372_v61 = vadd.f32 %v8864_v45, %v1163_v40  ;;  %v1794_v60 = vadd.f32 %v8993_v32, %v1585_v4 }
 0x605   : > { %v1581_v53 = vadd.f32 %v8877_v1, %v1372_v61  ;;  %v2003_v48 = vadd.f32 %v9009_v52, %v1794_v60 }
 0x607   : > { %v1790_v59 = vadd.f32 %v8988_v18, %v1581_v53 }
 0x609   : > { %v1999_v15 = vadd.f32 %v9001_v54, %v1790_v59  ;;  %v2814_v59 = vld [vmem:[#allocation2 + $0x18] sm:$0xff] }
 0x60b   : > { %v2208_v1 = vadd.f32 %v2179_v35, %v1999_v15  ;;  %v7958_v35 = vld [vmem:[%s9832_s2 + $0x8] sm:$0xff]  }
 0x60c   : > { %v7511_v39 = vpop.f32.mrf.mxu0 }
 0x60d   : > { %v2213_v5 = vadd.f32 %v7511_v39, %v9003_v41  ;;  %v2503_v39 = vld [vmem:[#allocation2] sm:$0xff] }
 0x60e   : > { %v2192_v42 = vpop.f32.mrf.mxu0 }
 0x60f   : > { %v2211_v51 = vadd.f32 %v2192_v42, %v9005_v57  ;;  %v2207_v57 = vadd.f32 %v2176_v30, %v8997_v37  ;;  %v2505_v42 = vpack.c.bf16 %v2503_v39, %v2503_v39 }
 0x610   : > { %v7512_v47 = vpop.f32.mrf.mxu0 }
 0x611   : > { %v2214_v22 = vadd.f32 %v7512_v47, %v9007_v44  ;;  %v2613_v47 = vsel %vm812_vm0, %v2505_v42, 0 }
 0x612   : > { %v2195_v49 = vpop.f32.mrf.mxu0 }
 0x613   : > { %v2212_v56 = vadd.f32 %v2195_v49, %v2003_v48 }
 0x61c   : > { %v7517_v27 = vpop.f32.mrf.mxu0 }
 0x61d   : > { %v2418_v9 = vadd.f32 %v7517_v27, %v2209_v26 }
 0x61e   : > { %v2385_v12 = vpop.f32.mrf.mxu0 }
 0x61f   : > { %v2433_v23 = vadd.f32 %v6646_v10, %v2418_v9  ;;  %v2416_v8 = vadd.f32 %v2385_v12, %v2207_v57  ;;  %v2919_v57 = vld [vmem:[#allocation2 + $0x20] sm:$0xff] }
 0x620   : > { %v7518_v16 = vpop.f32.mrf.mxu0 }
 0x621   : > { %v2419_v25 = vadd.f32 %v7518_v16, %v2210_v50  ;;  %v2441_v31 = vmax.f32 %v2433_v23, 0.0  ;;  %v2431_v20 = vadd.f32 %v6646_v10, %v2416_v8 }
 0x622   : > { %v2388_v2 = vpop.f32.mrf.mxu0 }
 0x623   : > { %v2434_v38 = vadd.f32 %v6646_v10, %v2419_v25  ;;  %v2417_v44 = vadd.f32 %v2388_v2, %v2208_v1  ;;  %v2439_v37 = vmax.f32 %v2431_v20, 0.0 }
 0x625   : > { %v2442_v46 = vmax.f32 %v2434_v38, 0.0  ;;  %v2432_v54 = vadd.f32 %v6646_v10, %v2417_v44  ;;  %v7959_v38 = vld [vmem:[%s9832_s2 + $0x10] sm:$0xff]   ;;  %v2921_v44 = vpack.c.bf16 %v2919_v57, %v2919_v57  ;;  %v7965_v57 = vld [vmem:[%s9832_s2 + $0x40] sm:$0xff]  }
 0x627   : > { %v9036_v62 = vpack.c.bf16 %v2442_v46, %v2441_v31  ;;  %v2440_v28 = vmax.f32 %v2432_v54, 0.0  ;;  %v2711_v31 = vpack.c.bf16 %v2709_v29, %v2709_v29 }
 0x629   : > { %v9063_v30 = vpack.c.bf16 %v2440_v28, %v2439_v37  ;;  %v2716_v46 = vsel %vm812_vm0, %v2711_v31, 0 }
 0x62c   : > { %v7521_v11 = vpop.f32.mrf.mxu0 }
 0x62d   : > { %v2422_v43 = vadd.f32 %v7521_v11, %v2213_v5 }
 0x62e   : > { %v2401_v55 = vpop.f32.mrf.mxu0 }
 0x62f   : > { %v2437_v41 = vadd.f32 %v6646_v10, %v2422_v43  ;;  %v2420_v58 = vadd.f32 %v2401_v55, %v2211_v51 }
 0x630   : > { %v7522_v6 = vpop.f32.mrf.mxu0 }
 0x631   : > { %v2423_v45 = vadd.f32 %v7522_v6, %v2214_v22  ;;  %v2445_v36 = vmax.f32 %v2437_v41, 0.0  ;;  %v2435_v24 = vadd.f32 %v6646_v10, %v2420_v58  ;;  %v7960_v22 = vld [vmem:[%s9832_s2 + $0x18] sm:$0xff]   ;;  %v2816_v6 = vpack.c.bf16 %v2814_v59, %v2814_v59 }
 0x632   : > { %v2404_v32 = vpop.f32.mrf.mxu0  ;;  %v7964_v59 = vld [vmem:[%s9832_s2 + $0x38] sm:$0xff]  }
 0x633   : > { %v2438_v17 = vadd.f32 %v6646_v10, %v2423_v45  ;;  %v2421_v21 = vadd.f32 %v2404_v32, %v2212_v56  ;;  %v2443_v14 = vmax.f32 %v2435_v24, 0.0  ;;  %v2821_v56 = vsel %vm812_vm0, %v2816_v6, 0  ;;  %v3234_v6 = vld [vmem:[#allocation2 + $0x38] sm:$0xff] }
 0x635   : > { %v2446_v52 = vmax.f32 %v2438_v17, 0.0  ;;  %v2436_v3 = vadd.f32 %v6646_v10, %v2421_v21 }
 0x637   : > { %v9053_v7 = vpack.c.bf16 %v2446_v52, %v2445_v36  ;;  %v2444_v18 = vmax.f32 %v2436_v3, 0.0  ;;  %v7961_v3 = vld [vmem:[%s9832_s2 + $0x20] sm:$0xff]  }
 0x639   : > { %7524 = vmatpush3.bf16.msra.mxu0 %v9053_v7  ;;  %v9057_v19 = vpack.c.bf16 %v2444_v18, %v2443_v14  ;;  %v2926_v18 = vsel %vm812_vm0, %v2921_v44, 0 }
 0x63a   : > { %7525 = vmatprep.subr.bf16.mxu0 %v8259_v13 }
 0x63d   : > { %7526 = vmatpush3.bf16.msra.mxu0 %v9057_v19 }
 0x63e   : > { %7527 = vmatprep.subr.bf16.mxu0 %v8259_v13 }
 0x641   : > { %7528 = vmatpush3.bf16.msra.mxu0 %v9036_v62 }
 0x642   : > { %7529 = vmatprep.subr.bf16.mxu0 %v8259_v13 }
 0x645   : > { %7530 = vmatpush3.bf16.msra.mxu0 %v9063_v30 }
 0x646   : > { %7535 = vmatprep.subr.bf16.mxu0 %v8259_v13 }
 0x648   : > { %7532 = vmatmul.mubr.msk.bf16.vlgmr.msra.gmra.mxu0 %vm2458_vm3, %v7957_v33 }
 0x649   : > { %7536 = vmatpush3.bf16.msra.mxu0 %v9053_v7  ;;  %7543 = vmatprep.mubr.msk.bf16.mxu0 %vm8260_vm2, %v8259_v13 }
 0x64a   : > { %7537 = vmatprep.subr.bf16.mxu0 %v8259_v13 }
 0x64d   : > { %7538 = vmatpush3.bf16.msra.mxu0 %v9057_v19 }
 0x64e   : > { %7539 = vmatprep.subr.bf16.mxu0 %v8259_v13 }
 0x651   : > { %7540 = vmatpush3.bf16.msra.mxu0 %v9036_v62 }
 0x652   : > { %7541 = vmatprep.subr.bf16.mxu0 %v8259_v13 }
 0x655   : > { %7542 = vmatpush3.bf16.msra.mxu0 %v9063_v30 }
 0x656   : > { %7553 = vmatprep.subr.bf16.mxu0 %v8259_v13 }
 0x658   : > { %7544 = vmatmul.mubr.msk.bf16.vlgmr.msra.gmra.mxu0 %vm2458_vm3, %v7958_v35 }
 0x659   : > { %7555 = vmatprep.mubr.msk.bf16.mxu0 %vm8260_vm2, %v8259_v13  ;;  %7554 = vmatpush3.bf16.msra.mxu0 %v2613_v47 }
 0x65a   : > { %7571 = vmatprep.subr.bf16.mxu0 %v8259_v13 }
 0x708   : > { %v2496_v49 = vpop.f32.mrf.mxu0 }
 0x70a   : > { %v7533_v26 = vpop.f32.mrf.mxu0 }
 0x70b   : > { %v3024_v26 = vld [vmem:[#allocation2 + $0x28] sm:$0xff] }
 0x70c   : > { %v2499_v27 = vpop.f32.mrf.mxu0 }
 0x70d   : > { %v2504_v9 = vpack.c.bf16 %v2499_v27, %v2496_v49  ;;  %v7962_v49 = vld [vmem:[%s9832_s2 + $0x28] sm:$0xff]   ;;  %v3026_v27 = vpack.c.bf16 %v3024_v26, %v3024_v26 }
 0x70e   : > { %v7534_v10 = vpop.f32.mrf.mxu0 }
 0x70f   : > { %7556 = vmatmul.mubr.msk.bf16.vlgmr.msra.gmra.mxu0 %vm799_vm1, %v2504_v9  ;;  %v3031_v9 = vsel %vm812_vm0, %v3026_v27, 0 }
 0x710   : > { %7573 = vmatprep.mubr.msk.bf16.mxu0 %vm8260_vm2, %v8259_v13  ;;  %7572 = vmatpush3.bf16.msra.mxu0 %v2716_v46 }
 0x711   : > { %7577 = vmatprep.subr.bf16.mxu0 %v8259_v13 }
 0x718   : > { %v2551_v12 = vpop.f32.mrf.mxu0 }
 0x71a   : > { %v7545_v50 = vpop.f32.mrf.mxu0 }
 0x71c   : > { %v2554_v16 = vpop.f32.mrf.mxu0 }
 0x71d   : > { %v2560_v23 = vpack.c.bf16 %v2554_v16, %v2551_v12 }
 0x71e   : > { %v7546_v25 = vpop.f32.mrf.mxu0 }
 0x71f   : > { %7550 = vmatmul.mubr.msk.bf16.vlgmr.msra.gmra.mxu1 %vm799_vm1, %v2560_v23 }
 0x720   : > { %7560 = vmatpush3.bf16.msra.mxu1 %v9053_v7  ;;  %7567 = vmatprep.mubr.msk.bf16.mxu1 %vm8260_vm2, %v8259_v13 }
 0x721   : > { %7561 = vmatprep.subr.bf16.mxu1 %v8259_v13 }
 0x724   : > { %7562 = vmatpush3.bf16.msra.mxu1 %v9057_v19 }
 0x725   : > { %7563 = vmatprep.subr.bf16.mxu1 %v8259_v13 }
 0x728   : > { %7564 = vmatpush3.bf16.msra.mxu1 %v9036_v62 }
 0x729   : > { %7565 = vmatprep.subr.bf16.mxu1 %v8259_v13 }
 0x72c   : > { %7566 = vmatpush3.bf16.msra.mxu1 %v9063_v30 }
 0x72d   : > { %7589 = vmatprep.subr.bf16.mxu1 %v8259_v13 }
 0x72f   : > { %7568 = vmatmul.mubr.msk.bf16.vlgmr.msra.gmra.mxu1 %vm2458_vm3, %v7959_v38 }
 0x730   : > { %7591 = vmatprep.mubr.msk.bf16.mxu1 %vm8260_vm2, %v8259_v13  ;;  %7590 = vmatpush3.bf16.msra.mxu1 %v2821_v56  ;;  %v3236_v56 = vpack.c.bf16 %v3234_v6, %v3234_v6  ;;  %v6708_v6 = vld [vmem:[%s9833_s3 + $0xc] sm:$0x3] }
 0x731   : > { %7595 = vmatprep.subr.bf16.mxu1 %v8259_v13 }
 0x7cf   : > { %v2649_v34 = vpop.f32.mrf.mxu0 }
 0x7d1   : > { %v7557_v63 = vpop.f32.mrf.mxu0 }
 0x7d2   : > { %v7963_v63 = vld [vmem:[%s9832_s2 + $0x30] sm:$0xff]  }
 0x7d3   : > { %v2652_v0 = vpop.f32.mrf.mxu0 }
 0x7d5   : > { %v7558_v40 = vpop.f32.mrf.mxu0 }
 0x7df   : > { %v2602_v2 = vpop.f32.mrf.mxu1 }
 0x7e0   : > { %v2650_v4 = vadd.f32 %v2649_v34, %v2602_v2 }
 0x7e1   : > { %v7551_v5 = vpop.f32.mrf.mxu1 }
 0x7e3   : > { %v2605_v61 = vpop.f32.mrf.mxu1 }
 0x7e4   : > { %v2653_v11 = vadd.f32 %v2652_v0, %v2605_v61  ;;  %v3129_v0 = vld [vmem:[#allocation2 + $0x30] sm:$0xff] }
 0x7e5   : > { %v7552_v60 = vpop.f32.mrf.mxu1  ;;  %v3131_v40 = vpack.c.bf16 %v3129_v0, %v3129_v0 }
 0x7e7   : > { %v3136_v2 = vsel %vm812_vm0, %v3131_v40, 0 }
 0x7ef   : > { %v2701_v43 = vpop.f32.mrf.mxu1 }
 0x7f1   : > { %v7569_v53 = vpop.f32.mrf.mxu1 }
 0x7f3   : > { %v2704_v55 = vpop.f32.mrf.mxu1 }
 0x7f4   : > { %v2710_v48 = vpack.c.bf16 %v2704_v55, %v2701_v43 }
 0x7f5   : > { %v7570_v51 = vpop.f32.mrf.mxu1 }
 0x7f6   : > { %7574 = vmatmul.mubr.msk.bf16.vlgmr.msra.gmra.mxu0 %vm799_vm1, %v2710_v48 }
 0x7f7   : > { %7578 = vmatpush3.bf16.msra.mxu0 %v9053_v7  ;;  %7585 = vmatprep.mubr.msk.bf16.mxu0 %vm8260_vm2, %v8259_v13 }
 0x7f8   : > { %7579 = vmatprep.subr.bf16.mxu0 %v8259_v13 }
 0x7fb   : > { %7580 = vmatpush3.bf16.msra.mxu0 %v9057_v19 }
 0x7fc   : > { %7581 = vmatprep.subr.bf16.mxu0 %v8259_v13 }
 0x7ff   : > { %7582 = vmatpush3.bf16.msra.mxu0 %v9036_v62 }
 0x800   : > { %7583 = vmatprep.subr.bf16.mxu0 %v8259_v13 }
 0x803   : > { %7584 = vmatpush3.bf16.msra.mxu0 %v9063_v30 }
 0x804   : > { %7607 = vmatprep.subr.bf16.mxu0 %v8259_v13 }
 0x806   : > { %7586 = vmatmul.mubr.msk.bf16.vlgmr.msra.gmra.mxu0 %vm2458_vm3, %v7960_v22 }
 0x807   : > { %7609 = vmatprep.mubr.msk.bf16.mxu0 %vm8260_vm2, %v8259_v13  ;;  %7608 = vmatpush3.bf16.msra.mxu0 %v2926_v18 }
 0x808   : > { %7613 = vmatprep.subr.bf16.mxu0 %v8259_v13 }
 0x8b6   : > { %v2752_v41 = vpop.f32.mrf.mxu0 }
 0x8b7   : > { %v2759_v58 = vadd.f32 %v2752_v41, %v2650_v4  ;;  %v3241_v41 = vsel %vm812_vm0, %v3236_v56, 0  ;;  %v6711_v56 = vld [vmem:[%s9833_s3 + $0xe] sm:$0x3] }
 0x8b8   : > { %v7575_v45 = vpop.f32.mrf.mxu0 }
 0x8ba   : > { %v2755_v15 = vpop.f32.mrf.mxu0 }
 0x8bb   : > { %v2760_v32 = vadd.f32 %v2755_v15, %v2653_v11 }
 0x8bc   : > { %v7576_v17 = vpop.f32.mrf.mxu0 }
 0x8c6   : > { %v2806_v21 = vpop.f32.mrf.mxu0 }
 0x8c8   : > { %v7587_v1 = vpop.f32.mrf.mxu0 }
 0x8ca   : > { %v2809_v36 = vpop.f32.mrf.mxu0 }
 0x8cb   : > { %v2815_v24 = vpack.c.bf16 %v2809_v36, %v2806_v21 }
 0x8cc   : > { %v7588_v52 = vpop.f32.mrf.mxu0 }
 0x8cd   : > { %7592 = vmatmul.mubr.msk.bf16.vlgmr.msra.gmra.mxu1 %vm799_vm1, %v2815_v24 }
 0x8ce   : > { %7596 = vmatpush3.bf16.msra.mxu1 %v9053_v7  ;;  %7603 = vmatprep.mubr.msk.bf16.mxu1 %vm8260_vm2, %v8259_v13 }
 0x8cf   : > { %7597 = vmatprep.subr.bf16.mxu1 %v8259_v13 }
 0x8d2   : > { %7598 = vmatpush3.bf16.msra.mxu1 %v9057_v19 }
 0x8d3   : > { %7599 = vmatprep.subr.bf16.mxu1 %v8259_v13 }
 0x8d6   : > { %7600 = vmatpush3.bf16.msra.mxu1 %v9036_v62 }
 0x8d7   : > { %7601 = vmatprep.subr.bf16.mxu1 %v8259_v13 }
 0x8da   : > { %7602 = vmatpush3.bf16.msra.mxu1 %v9063_v30 }
 0x8db   : > { %7625 = vmatprep.subr.bf16.mxu1 %v8259_v13 }
 0x8dd   : > { %7604 = vmatmul.mubr.msk.bf16.vlgmr.msra.gmra.mxu1 %vm2458_vm3, %v7961_v3 }
 0x8de   : > { %7627 = vmatprep.mubr.msk.bf16.mxu1 %vm8260_vm2, %v8259_v13  ;;  %7626 = vmatpush3.bf16.msra.mxu1 %v3031_v9 }
 0x8df   : > { %7631 = vmatprep.subr.bf16.mxu1 %v8259_v13 }
 0x98d   : > { %v2857_v8 = vpop.f32.mrf.mxu1 }
 0x98e   : > { %v2864_v14 = vadd.f32 %v2857_v8, %v2759_v58 }
 0x98f   : > { %v7593_v54 = vpop.f32.mrf.mxu1 }
 0x991   : > { %v2860_v20 = vpop.f32.mrf.mxu1 }
 0x992   : > { %v2865_v28 = vadd.f32 %v2860_v20, %v2760_v32 }
 0x993   : > { %v7594_v37 = vpop.f32.mrf.mxu1 }
 0x99d   : > { %v2911_v33 = vpop.f32.mrf.mxu1 }
 0x99f   : > { %v7605_v35 = vpop.f32.mrf.mxu1 }
 0x9a1   : > { %v2914_v39 = vpop.f32.mrf.mxu1 }
 0x9a2   : > { %v2920_v42 = vpack.c.bf16 %v2914_v39, %v2911_v33 }
 0x9a3   : > { %v7606_v47 = vpop.f32.mrf.mxu1 }
 0x9a4   : > { %7610 = vmatmul.mubr.msk.bf16.vlgmr.msra.gmra.mxu0 %vm799_vm1, %v2920_v42  ;;  %v6690_v47 = vld [vmem:[%s9837_s7] ss:$0 sm:$0xff] }
 0x9a5   : > { %7614 = vmatpush3.bf16.msra.mxu0 %v9053_v7  ;;  %7621 = vmatprep.mubr.msk.bf16.mxu0 %vm8260_vm2, %v8259_v13 }
 0x9a6   : > { %7615 = vmatprep.subr.bf16.mxu0 %v8259_v13 }
 0x9a9   : > { %7616 = vmatpush3.bf16.msra.mxu0 %v9057_v19 }
 0x9aa   : > { %7617 = vmatprep.subr.bf16.mxu0 %v8259_v13 }
 0x9ad   : > { %7618 = vmatpush3.bf16.msra.mxu0 %v9036_v62 }
 0x9ae   : > { %7619 = vmatprep.subr.bf16.mxu0 %v8259_v13 }
 0x9b1   : > { %7620 = vmatpush3.bf16.msra.mxu0 %v9063_v30 }
 0x9b2   : > { %7643 = vmatprep.subr.bf16.mxu0 %v8259_v13 }
 0x9b4   : > { %7622 = vmatmul.mubr.msk.bf16.vlgmr.msra.gmra.mxu0 %vm2458_vm3, %v7962_v49 }
 0x9b5   : > { %7645 = vmatprep.mubr.msk.bf16.mxu0 %vm8260_vm2, %v8259_v13  ;;  %7644 = vmatpush3.bf16.msra.mxu0 %v3136_v2 }
 0x9b6   : > { %7649 = vmatprep.subr.bf16.mxu0 %v8259_v13 }
 0xa64   : > { %v2962_v10 = vpop.f32.mrf.mxu0 }
 0xa65   : > { %v2969_v12 = vadd.f32 %v2962_v10, %v2864_v14 }
 0xa66   : > { %v7611_v50 = vpop.f32.mrf.mxu0 }
 0xa68   : > { %v2965_v16 = vpop.f32.mrf.mxu0 }
 0xa69   : > { %v2970_v23 = vadd.f32 %v2965_v16, %v2865_v28 }
 0xa6a   : > { %v7612_v25 = vpop.f32.mrf.mxu0 }
 0xa6b   : > { %v3499_v25 = vld [vmem:[#allocation4 + $0x18] sm:$0xff] }
 0xa74   : > { %v3016_v38 = vpop.f32.mrf.mxu0 }
 0xa76   : > { %v7623_v29 = vpop.f32.mrf.mxu0 }
 0xa77   : > { %v6692_v29 = vld [vmem:[%s9833_s3 + $0x2] sm:$0x3] }
 0xa78   : > { %v3019_v31 = vpop.f32.mrf.mxu0 }
 0xa79   : > { %v3025_v46 = vpack.c.bf16 %v3019_v31, %v3016_v38  ;;  %v3402_v31 = vld [vmem:[%s9833_s3] sm:$0x3] }
 0xa7a   : > { %v7624_v34 = vpop.f32.mrf.mxu0 }
 0xa7b   : > { %7628 = vmatmul.mubr.msk.bf16.vlgmr.msra.gmra.mxu1 %vm799_vm1, %v3025_v46  ;;  %v3448_v34 = vld [vmem:[#allocation4] sm:$0xff] }
 0xa7c   : > { %7632 = vmatpush3.bf16.msra.mxu1 %v9053_v7  ;;  %7639 = vmatprep.mubr.msk.bf16.mxu1 %vm8260_vm2, %v8259_v13 }
 0xa7d   : > { %7633 = vmatprep.subr.bf16.mxu1 %v8259_v13 }
 0xa80   : > { %7634 = vmatpush3.bf16.msra.mxu1 %v9057_v19 }
 0xa81   : > { %7635 = vmatprep.subr.bf16.mxu1 %v8259_v13 }
 0xa84   : > { %7636 = vmatpush3.bf16.msra.mxu1 %v9036_v62 }
 0xa85   : > { %7637 = vmatprep.subr.bf16.mxu1 %v8259_v13 }
 0xa88   : > { %7638 = vmatpush3.bf16.msra.mxu1 %v9063_v30 }
 0xa89   : > { %7661 = vmatprep.subr.bf16.mxu1 %v8259_v13 }
 0xa8b   : > { %7640 = vmatmul.mubr.msk.bf16.vlgmr.msra.gmra.mxu1 %vm2458_vm3, %v7963_v63  ;;  %v3449_v63 = vld [vmem:[#allocation4 + $0x8] sm:$0xff] }
 0xa8c   : > { %7663 = vmatprep.mubr.msk.bf16.mxu1 %vm8260_vm2, %v8259_v13  ;;  %7662 = vmatpush3.bf16.msra.mxu1 %v3241_v41  ;;  %v3451_v0 = vpack.c.bf16 %v3449_v63, %v3448_v34  ;;  %v6714_v41 = vld [vmem:[%s9833_s3 + $0x10] sm:$0x3]  ;;  %v4104_v34 = vld [vmem:[#allocation4 + $0x70] sm:$0xff]  ;;  %v4105_v63 = vld [vmem:[#allocation4 + $0x78] sm:$0xff] }
 0xa8d   : > { %7667 = vmatprep.subr.bf16.mxu1 %v8259_v13 }
 0xb3b   : > { %v3067_v4 = vpop.f32.mrf.mxu1 }
 0xb3c   : > { %v3074_v5 = vadd.f32 %v3067_v4, %v2969_v12 }
 0xb3d   : > { %v7629_v61 = vpop.f32.mrf.mxu1 }
 0xb3f   : > { %v3070_v11 = vpop.f32.mrf.mxu1 }
 0xb40   : > { %v3075_v60 = vadd.f32 %v3070_v11, %v2970_v23  ;;  %v3498_v23 = vld [vmem:[#allocation4 + $0x10] sm:$0xff] }
 0xb41   : > { %v7630_v43 = vpop.f32.mrf.mxu1  ;;  %v3501_v46 = vpack.c.bf16 %v3499_v25, %v3498_v23 }
 0xb4b   : > { %v3121_v53 = vpop.f32.mrf.mxu1 }
 0xb4d   : > { %v7641_v55 = vpop.f32.mrf.mxu1 }
 0xb4f   : > { %v3124_v48 = vpop.f32.mrf.mxu1 }
 0xb50   : > { %v3130_v51 = vpack.c.bf16 %v3124_v48, %v3121_v53  ;;  %v6696_v48 = vld [vmem:[%s9833_s3 + $0x4] sm:$0x3] }
 0xb51   : > { %v7642_v22 = vpop.f32.mrf.mxu1 }
 0xb52   : > { %7646 = vmatmul.mubr.msk.bf16.vlgmr.msra.gmra.mxu0 %vm799_vm1, %v3130_v51  ;;  %v6699_v51 = vld [vmem:[%s9833_s3 + $0x6] sm:$0x3]  ;;  %v6702_v22 = vld [vmem:[%s9833_s3 + $0x8] sm:$0x3] }
 0xb53   : > { %7650 = vmatpush3.bf16.msra.mxu0 %v9053_v7  ;;  %7657 = vmatprep.mubr.msk.bf16.mxu0 %vm8260_vm2, %v8259_v13 }
 0xb54   : > { %7651 = vmatprep.subr.bf16.mxu0 %v8259_v13 }
 0xb57   : > { %7652 = vmatpush3.bf16.msra.mxu0 %v9057_v19 }
 0xb58   : > { %7653 = vmatprep.subr.bf16.mxu0 %v8259_v13 }
 0xb5b   : > { %7654 = vmatpush3.bf16.msra.mxu0 %v9036_v62 }
 0xb5c   : > { %7655 = vmatprep.subr.bf16.mxu0 %v8259_v13 }
 0xb5f   : > { %7656 = vmatpush3.bf16.msra.mxu0 %v9063_v30 }
 0xb60   : > { %7679 = vmatprep.subr.bf16.mxu0 %v8259_v13 }
 0xb62   : > { %7658 = vmatmul.mubr.msk.bf16.vlgmr.msra.gmra.mxu0 %vm2458_vm3, %v7964_v59  ;;  %v6705_v59 = vld [vmem:[%s9833_s3 + $0xa] sm:$0x3] }
 0xb63   : > { %7681 = vmatprep.mubr.msk.bf16.mxu0 %vm8260_vm2, %v8259_v13 }
 0xc12   : > { %v3172_v58 = vpop.f32.mrf.mxu0 }
 0xc13   : > { %v3179_v45 = vadd.f32 %v3172_v58, %v3074_v5  ;;  %v3634_v58 = vld [vmem:[#allocation4 + $0x20] sm:$0xff] }
 0xc14   : > { %v7647_v15 = vpop.f32.mrf.mxu0 }
 0xc16   : > { %v3175_v32 = vpop.f32.mrf.mxu0 }
 0xc17   : > { %v3180_v17 = vadd.f32 %v3175_v32, %v3075_v60 }
 0xc18   : > { %v7648_v21 = vpop.f32.mrf.mxu0 }
 0xc22   : > { %v3226_v1 = vpop.f32.mrf.mxu0 }
 0xc24   : > { %v7659_v36 = vpop.f32.mrf.mxu0 }
 0xc26   : > { %v3229_v24 = vpop.f32.mrf.mxu0 }
 0xc27   : > { %v3235_v52 = vpack.c.bf16 %v3229_v24, %v3226_v1 }
 0xc28   : > { %v7660_v3 = vpop.f32.mrf.mxu0 }
 0xc29   : > { %7664 = vmatmul.mubr.msk.bf16.vlgmr.msra.gmra.mxu1 %vm799_vm1, %v3235_v52  ;;  %v3728_v3 = vld [vmem:[#allocation4 + $0x30] sm:$0xff] }
 0xc2a   : > { %7668 = vmatpush3.bf16.msra.mxu1 %v9053_v7  ;;  %7675 = vmatprep.mubr.msk.bf16.mxu1 %vm8260_vm2, %v8259_v13  ;;  %v3339_v7 = vld [vmem:[#allocation2 + $0x40] sm:$0xff] }
 0xc2b   : > { %7669 = vmatprep.subr.bf16.mxu1 %v8259_v13 }
 0xc2e   : > { %7670 = vmatpush3.bf16.msra.mxu1 %v9057_v19  ;;  %v3341_v19 = vpack.c.bf16 %v3339_v7, %v3339_v7 }
 0xc2f   : > { %7671 = vmatprep.subr.bf16.mxu1 %v8259_v13 }
 0xc30   : > { %v3346_v44 = vsel %vm812_vm0, %v3341_v19, 0 }
 0xc31   : > { %7680 = vmatpush3.bf16.msra.mxu0 %v3346_v44 }
 0xc32   : > { %7672 = vmatpush3.bf16.msra.mxu1 %v9036_v62  ;;  %7685 = vmatprep.subr.bf16.mxu0 %v8259_v13 }
 0xc33   : > { %7673 = vmatprep.subr.bf16.mxu1 %v8259_v13 }
 0xc36   : > { %7674 = vmatpush3.bf16.msra.mxu1 %v9063_v30 }
 0xc37   : > { %7691 = vmatprep.subr.bf16.mxu1 %v8259_v13 }
 0xc39   : > { %7676 = vmatmul.mubr.msk.bf16.vlgmr.msra.gmra.mxu1 %vm2458_vm3, %v7965_v57  ;;  %v3729_v57 = vld [vmem:[#allocation4 + $0x38] sm:$0xff] }
 0xc3a   : > { %7693 = vmatprep.mubr.msk.bf16.mxu1 %vm8260_vm2, %v8259_v13 }
 0xce9   : > { %v3277_v62 = vpop.f32.mrf.mxu1 }
 0xcea   : > { %v3284_v18 = vadd.f32 %v3277_v62, %v3179_v45  ;;  %v3635_v45 = vld [vmem:[#allocation4 + $0x28] sm:$0xff]  ;;  %v3731_v62 = vpack.c.bf16 %v3729_v57, %v3728_v3  ;;  %v4277_v57 = vld [vmem:[#allocation6 + $0xa0] sm:$0xff] }
 0xceb   : > { %v7665_v8 = vpop.f32.mrf.mxu1  ;;  %v3637_v15 = vpack.c.bf16 %v3635_v45, %v3634_v58 }
 0xced   : > { %v3280_v14 = vpop.f32.mrf.mxu1 }
 0xcee   : > { %v3285_v54 = vadd.f32 %v3280_v14, %v3180_v17 }
 0xcef   : > { %v7666_v30 = vpop.f32.mrf.mxu1 }
 0xcf0   : > { %v3823_v30 = vld [vmem:[#allocation4 + $0x48] sm:$0xff] }
 0xcf9   : > { %v3331_v20 = vpop.f32.mrf.mxu1 }
 0xcfb   : > { %v7677_v28 = vpop.f32.mrf.mxu1 }
 0xcfd   : > { %v3334_v37 = vpop.f32.mrf.mxu1 }
 0xcfe   : > { %v3340_v33 = vpack.c.bf16 %v3334_v37, %v3331_v20 }
 0xcff   : > { %v7678_v35 = vpop.f32.mrf.mxu1 }
 0xd00   : > { %7682 = vmatmul.mubr.msk.bf16.vlgmr.msra.gmra.mxu0 %vm799_vm1, %v3340_v33 }
 0xd01   : > { %7687 = vmatprep.mubr.msk.bf16.mxu0 %vm8260_vm2, %v8259_v13 }
 0xdc0   : > { %v3382_v39 = vpop.f32.mrf.mxu0 }
 0xdc1   : > { %v3389_v42 = vadd.f32 %v3382_v39, %v3284_v18 }
 0xdc2   : > { %v7683_v49 = vpop.f32.mrf.mxu0 }
 0xdc3   : > { %v3398_v27 = vadd.f32 %v6690_v47, %v3389_v42  ;;  %v3916_v42 = vld [vmem:[#allocation4 + $0x50] sm:$0xff] }
 0xdc4   : > { %v3385_v26 = vpop.f32.mrf.mxu0 }
 0xdc5   : > { %v3390_v9 = vadd.f32 %v3385_v26, %v3285_v54  ;;  %v3400_v50 = vmax.f32 %v3398_v27, 0.0  ;;  %v3822_v54 = vld [vmem:[#allocation4 + $0x40] sm:$0xff] }
 0xdc6   : > { %v7684_v10 = vpop.f32.mrf.mxu0  ;;  %v3825_v37 = vpack.c.bf16 %v3823_v30, %v3822_v54  ;;  %v9338_v54 = vld [vmem:[#allocation6 + $0xd0] sm:$0xff] }
 0xdc7   : > { %v3399_v12 = vadd.f32 %v6690_v47, %v3390_v9  ;;  %v3917_v47 = vld [vmem:[#allocation4 + $0x58] sm:$0xff]  ;;  %v9340_v30 = vld [vmem:[#allocation6 + $0xf0] sm:$0xff] }
 0xdc8   : > { %v3919_v27 = vpack.c.bf16 %v3917_v47, %v3916_v42 }
 0xdc9   : > { %v3401_v16 = vmax.f32 %v3399_v12, 0.0 }
 0xdcb   : > { %v9231_v38 = vpack.c.bf16 %v3401_v16, %v3400_v50  ;;  %v4010_v50 = vld [vmem:[#allocation4 + $0x60] sm:$0xff]  ;;  %v4011_v16 = vld [vmem:[#allocation4 + $0x68] sm:$0xff] }
 0xdcd   : > { %7686 = vmatpush3.bf16.msra.mxu0 %v9231_v38  ;;  %7692 = vmatpush3.bf16.msra.mxu1 %v9231_v38 }
 0xdce   : > { %7697 = vmatprep.subr.bf16.mxu0 %v8259_v13  ;;  %7703 = vmatprep.subr.bf16.mxu1 %v8259_v13 }
 0xdd0   : > { %7694 = vmatmul.mubr.msk.bf16.vlgmr.msra.gmra.mxu1 %vm3404_vm4, %v6692_v29  ;;  %7688 = vmatmul.mubr.msk.bf16.vlgmr.msra.gmra.mxu0 %vm3404_vm4, %v3402_v31 }
 0xdd1   : > { %7698 = vmatpush3.bf16.msra.mxu0 %v3501_v46  ;;  %7699 = vmatprep.mubr.msk.bf16.mxu0 %vm8260_vm2, %v8259_v13 }
 0xdd2   : > { %7709 = vmatprep.subr.bf16.mxu0 %v8259_v13  ;;  %7705 = vmatprep.mubr.msk.bf16.mxu1 %vm8260_vm2, %v8259_v13 }
 0xdd3   : > { %7704 = vmatpush3.bf16.msra.mxu1 %v3451_v0 }
 0xdd4   : > { %7715 = vmatprep.subr.bf16.mxu1 %v8259_v13 }
 0xe90   : > { %v3491_v40 = vpop.f32.mrf.mxu1  ;;  %v3442_v2 = vpop.f32.mrf.mxu0 }
 0xe91   : > { %v3500_v4 = vpack.c.bf16 %v3491_v40, %v3491_v40  ;;  %v3450_v5 = vpack.c.bf16 %v3442_v2, %v3442_v2  ;;  %v4107_v2 = vpack.c.bf16 %v4105_v63, %v4104_v34 }
 0xe92   : > { %v7695_v61 = vpop.f32.mrf.mxu1  ;;  %v7689_v11 = vpop.f32.mrf.mxu0 }
 0xe93   : > { %7700 = vmatmul.mubr.msk.bf16.vlgmr.msra.gmra.mxu0 %vm3404_vm4, %v3500_v4  ;;  %7706 = vmatmul.mubr.msk.bf16.vlgmr.msra.gmra.mxu1 %vm3404_vm4, %v3450_v5  ;;  %v4198_v11 = vld [vmem:[#allocation4 + $0x80] sm:$0xff] }
 0xe94   : > { %7710 = vmatpush3.bf16.msra.mxu0 %v9231_v38  ;;  %v3494_v60 = vpop.f32.mrf.mxu1  ;;  %7711 = vmatprep.mubr.msk.bf16.mxu0 %vm8260_vm2, %v8259_v13  ;;  %v3445_v43 = vpop.f32.mrf.mxu0 }
 0xe95   : > { %7721 = vmatprep.subr.bf16.mxu0 %v8259_v13  ;;  %7717 = vmatprep.mubr.msk.bf16.mxu1 %vm8260_vm2, %v8259_v13  ;;  %v4199_v60 = vld [vmem:[#allocation4 + $0x88] sm:$0xff] }
 0xe96   : > { %v7696_v53 = vpop.f32.mrf.mxu1  ;;  %v7690_v55 = vpop.f32.mrf.mxu0  ;;  %7716 = vmatpush3.bf16.msra.mxu1 %v3637_v15  ;;  %v4281_v15 = vld [vmem:[#allocation6 + $0xc0] sm:$0xff] }
 0xe97   : > { %7727 = vmatprep.subr.bf16.mxu1 %v8259_v13  ;;  %v4201_v55 = vpack.c.bf16 %v4199_v60, %v4198_v11 }
 0xe9b   : > { %7712 = vmatmul.mubr.msk.bf16.vlgmr.msra.gmra.mxu0 %vm3404_vm4, %v6696_v48 }
 0xe9c   : > { %7722 = vmatpush3.bf16.msra.mxu0 %v9231_v38  ;;  %7723 = vmatprep.mubr.msk.bf16.mxu0 %vm8260_vm2, %v8259_v13 }
 0xe9d   : > { %7733 = vmatprep.subr.bf16.mxu0 %v8259_v13 }
 0xea3   : > { %7724 = vmatmul.mubr.msk.bf16.vlgmr.msra.gmra.mxu0 %vm3404_vm4, %v6699_v51 }
 0xea4   : > { %7734 = vmatpush3.bf16.msra.mxu0 %v9231_v38  ;;  %7735 = vmatprep.mubr.msk.bf16.mxu0 %vm8260_vm2, %v8259_v13 }
 0xea5   : > { %7745 = vmatprep.subr.bf16.mxu0 %v8259_v13 }
 0xeab   : > { %7736 = vmatmul.mubr.msk.bf16.vlgmr.msra.gmra.mxu0 %vm3404_vm4, %v6702_v22 }
 0xeac   : > { %7746 = vmatpush3.bf16.msra.mxu0 %v9231_v38  ;;  %7747 = vmatprep.mubr.msk.bf16.mxu0 %vm8260_vm2, %v8259_v13 }
 0xead   : > { %7757 = vmatprep.subr.bf16.mxu0 %v8259_v13 }
 0xeb3   : > { %7748 = vmatmul.mubr.msk.bf16.vlgmr.msra.gmra.mxu0 %vm3404_vm4, %v6705_v59 }
 0xeb4   : > { %7758 = vmatpush3.bf16.msra.mxu0 %v9231_v38  ;;  %7759 = vmatprep.mubr.msk.bf16.mxu0 %vm8260_vm2, %v8259_v13 }
 0xeb5   : > { %7769 = vmatprep.subr.bf16.mxu0 %v8259_v13 }
 0xebb   : > { %7760 = vmatmul.mubr.msk.bf16.vlgmr.msra.gmra.mxu0 %vm3404_vm4, %v6708_v6 }
 0xebc   : > { %7770 = vmatpush3.bf16.msra.mxu0 %v9231_v38  ;;  %7771 = vmatprep.mubr.msk.bf16.mxu0 %vm8260_vm2, %v8259_v13 }
 0xebd   : > { %7781 = vmatprep.subr.bf16.mxu0 %v8259_v13 }
 0xec3   : > { %7772 = vmatmul.mubr.msk.bf16.vlgmr.msra.gmra.mxu0 %vm3404_vm4, %v6711_v56 }
 0xec4   : > { %7782 = vmatpush3.bf16.msra.mxu0 %v9231_v38  ;;  %7783 = vmatprep.mubr.msk.bf16.mxu0 %vm8260_vm2, %v8259_v13  ;;  %v4013_v38 = vpack.c.bf16 %v4011_v16, %v4010_v50 }
 0xecb   : > { %7784 = vmatmul.mubr.msk.bf16.vlgmr.msra.gmra.mxu0 %vm3404_vm4, %v6714_v41 }
 0xf53   : > { %v3539_v32 = vpop.f32.mrf.mxu0  ;;  %v3582_v17 = vpop.f32.mrf.mxu1 }
 0xf54   : > { %v9311_v21 = vadd.f32 %v3582_v17, %v3539_v32  ;;  %v4285_v32 = vld [vmem:[#allocation6 + $0xe0] sm:$0xff] }
 0xf55   : > { %v7701_v1 = vpop.f32.mrf.mxu0  ;;  %v7707_v36 = vpop.f32.mrf.mxu1  ;;  %v6727_v17 = vcombine.high %v4281_v15, %v4285_v32 }
 0xf56   : > { %v4282_v1 = vld [vmem:[#allocation6 + $0xc8] sm:$0xff] }
 0xf57   : > { %v3542_v24 = vpop.f32.mrf.mxu0  ;;  %v3585_v52 = vpop.f32.mrf.mxu1  ;;  %v4286_v36 = vld [vmem:[#allocation6 + $0xe8] sm:$0xff]  ;;  %4388 = vmatprep.subr.bf16.mxu0 %v6727_v17  ;;  %v4280_v17 = vld [vmem:[#allocation6 + $0xb8] sm:$0xff] }
 0xf58   : > { %v6726_v24 = vcombine.low %v4281_v15, %v4285_v32  ;;  %v6728_v52 = vcombine.low %v4282_v1, %v4286_v36  ;;  %v6729_v3 = vcombine.high %v4282_v1, %v4286_v36  ;;  %v4279_v15 = vld [vmem:[#allocation6 + $0xb0] sm:$0xff]  ;;  %v4276_v32 = vld [vmem:[#allocation6 + $0x98] sm:$0xff] }
 0xf59   : > { %v7702_v7 = vpop.f32.mrf.mxu0  ;;  %v7708_v19 = vpop.f32.mrf.mxu1 }
 0xf5a   : > { %4389 = vmatpush1.bf16.msra.mxu0 %v6726_v24  ;;  %v4274_v7 = vld [vmem:[#allocation6 + $0x88] sm:$0xff] }
 0xf5b   : > { %v3627_v44 = vpop.f32.mrf.mxu0 }
 0xf5c   : > { %v3636_v18 = vpack.c.bf16 %v3627_v44, %v3627_v44  ;;  %v4278_v44 = vld [vmem:[#allocation6 + $0xa8] sm:$0xff] }
 0xf5d   : > { %v7713_v8 = vpop.f32.mrf.mxu0 }
 0xf5e   : > { %7718 = vmatmul.mubr.msk.bf16.vlgmr.msra.gmra.mxu1 %vm3404_vm4, %v3636_v18  ;;  %v6720_v18 = vcombine.low %v4274_v7, %v4278_v44  ;;  %v6721_v8 = vcombine.high %v4274_v7, %v4278_v44  ;;  %v4268_v7 = vld [vmem:[#allocation6 + $0x68] sm:$0xff]  ;;  %v6724_v44 = vcombine.low %v4276_v32, %v4280_v17 }
 0xf5f   : > { %v3630_v14 = vpop.f32.mrf.mxu0  ;;  %7728 = vmatpush3.bf16.msra.mxu1 %v3731_v62  ;;  %7729 = vmatprep.mubr.msk.bf16.mxu1 %vm8260_vm2, %v8259_v13 }
 0xf60   : > { %7739 = vmatprep.subr.bf16.mxu1 %v8259_v13  ;;  %v8261_v14 = vmov 0  }
 0xf61   : > { %v7714_v20 = vpop.f32.mrf.mxu0  ;;  %4408 = vmatprep.mubr.bf16.mxu0 %v8261_v14 }
 0xf62   : > { %v9342_v20 = vld [vmem:[#allocation6 + $0xd8] sm:$0xff] }
 0xf63   : > { %v3721_v28 = vpop.f32.mrf.mxu0 }
 0xf64   : > { %v3730_v33 = vpack.c.bf16 %v3721_v28, %v3721_v28  ;;  %v6731_v28 = vcombine.high %v9338_v54, %v9340_v30 }
 0xf65   : > { %v7725_v35 = vpop.f32.mrf.mxu0 }
 0xf66   : > { %7730 = vmatmul.mubr.msk.bf16.vlgmr.msra.gmra.mxu1 %vm3404_vm4, %v3730_v33  ;;  %v6730_v33 = vcombine.low %v9338_v54, %v9340_v30  ;;  %v4259_v54 = vld [vmem:[#allocation6 + $0x20] sm:$0xff]  ;;  %v4256_v30 = vld [vmem:[#allocation6 + $0x8] sm:$0xff] }
 0xf67   : > { %v3724_v39 = vpop.f32.mrf.mxu0  ;;  %7740 = vmatpush3.bf16.msra.mxu1 %v3825_v37  ;;  %7741 = vmatprep.mubr.msk.bf16.mxu1 %vm8260_vm2, %v8259_v13  ;;  %v4288_v37 = vld [vmem:[#allocation6 + $0xf8] sm:$0xff] }
 0xf68   : > { %7751 = vmatprep.subr.bf16.mxu1 %v8259_v13  ;;  %v6732_v35 = vcombine.low %v9342_v20, %v4288_v37  ;;  %v6733_v39 = vcombine.high %v9342_v20, %v4288_v37  ;;  %v4260_v20 = vld [vmem:[#allocation6 + $0x28] sm:$0xff] }
 0xf69   : > { %v7726_v49 = vpop.f32.mrf.mxu0 }
 0xf6b   : > { %v3815_v26 = vpop.f32.mrf.mxu0 }
 0xf6c   : > { %v3824_v9 = vpack.c.bf16 %v3815_v26, %v3815_v26 }
 0xf6d   : > { %v7737_v10 = vpop.f32.mrf.mxu0 }
 0xf6e   : > { %7742 = vmatmul.mubr.msk.bf16.vlgmr.msra.gmra.mxu1 %vm3404_vm4, %v3824_v9 }
 0xf6f   : > { %v3818_v12 = vpop.f32.mrf.mxu0  ;;  %7752 = vmatpush3.bf16.msra.mxu1 %v3919_v27  ;;  %7753 = vmatprep.mubr.msk.bf16.mxu1 %vm8260_vm2, %v8259_v13 }
 0xf70   : > { %7763 = vmatprep.subr.bf16.mxu1 %v8259_v13 }
 0xf71   : > { %v7738_v23 = vpop.f32.mrf.mxu0 }
 0xf73   : > { %v3909_v25 = vpop.f32.mrf.mxu0 }
 0xf74   : > { %v3918_v29 = vpack.c.bf16 %v3909_v25, %v3909_v25 }
 0xf75   : > { %v7749_v31 = vpop.f32.mrf.mxu0 }
 0xf76   : > { %7754 = vmatmul.mubr.msk.bf16.vlgmr.msra.gmra.mxu1 %vm3404_vm4, %v3918_v29 }
 0xf77   : > { %v3912_v46 = vpop.f32.mrf.mxu0  ;;  %7764 = vmatpush3.bf16.msra.mxu1 %v4013_v38  ;;  %7765 = vmatprep.mubr.msk.bf16.mxu1 %vm8260_vm2, %v8259_v13 }
 0xf78   : > { %7775 = vmatprep.subr.bf16.mxu1 %v8259_v13 }
 0xf79   : > { %v7750_v0 = vpop.f32.mrf.mxu0 }
 0xf7b   : > { %v4003_v40 = vpop.f32.mrf.mxu0 }
 0xf7c   : > { %v4012_v4 = vpack.c.bf16 %v4003_v40, %v4003_v40 }
 0xf7d   : > { %v7761_v5 = vpop.f32.mrf.mxu0 }
 0xf7e   : > { %7766 = vmatmul.mubr.msk.bf16.vlgmr.msra.gmra.mxu1 %vm3404_vm4, %v4012_v4 }
 0xf7f   : > { %v4006_v61 = vpop.f32.mrf.mxu0  ;;  %7776 = vmatpush3.bf16.msra.mxu1 %v4107_v2  ;;  %7777 = vmatprep.mubr.msk.bf16.mxu1 %vm8260_vm2, %v8259_v13 }
 0xf80   : > { %7787 = vmatprep.subr.bf16.mxu1 %v8259_v13 }
 0xf81   : > { %v7762_v43 = vpop.f32.mrf.mxu0 }
 0xf83   : > { %v4097_v53 = vpop.f32.mrf.mxu0 }
 0xf84   : > { %v4106_v48 = vpack.c.bf16 %v4097_v53, %v4097_v53 }
 0xf85   : > { %v7773_v51 = vpop.f32.mrf.mxu0 }
 0xf86   : > { %7778 = vmatmul.mubr.msk.bf16.vlgmr.msra.gmra.mxu1 %vm3404_vm4, %v4106_v48 }
 0xf87   : > { %v4100_v22 = vpop.f32.mrf.mxu0  ;;  %7788 = vmatpush3.bf16.msra.mxu1 %v4201_v55  ;;  %7789 = vmatprep.mubr.msk.bf16.mxu1 %vm8260_vm2, %v8259_v13  ;;  %v4273_v13 = vld [vmem:[#allocation6 + $0x80] sm:$0xff] }
 0xf88   : > { %4429 = vmatprep.subr.bf16.mxu1 %v6729_v3  ;;  %v6719_v19 = vcombine.high %v4273_v13, %v4277_v57  ;;  %v6718_v62 = vcombine.low %v4273_v13, %v4277_v57  ;;  %v6717_v22 = vld [vmem:[%s9839_s9] ss:$0 sm:$0xff]  ;;  %v4263_v3 = vld [vmem:[#allocation6 + $0x40] sm:$0xff] }
 0xf89   : > { %v7774_v59 = vpop.f32.mrf.mxu0  ;;  %v4267_v13 = vld [vmem:[#allocation6 + $0x60] sm:$0xff]  ;;  %v4264_v57 = vld [vmem:[#allocation6 + $0x48] sm:$0xff] }
 0xf8a   : > { %4390 = vmatprep.subr.bf16.mxu0 %v6719_v19  ;;  %v6748_v37 = vcombine.low %v4264_v57, %v4268_v7 }
 0xf8b   : > { %v4191_v6 = vpop.f32.mrf.mxu0  ;;  %4391 = vmatpush1.bf16.msra.mxu0 %v6718_v62  ;;  %v6747_v62 = vcombine.high %v4263_v3, %v4267_v13 }
 0xf8c   : > { %v4200_v56 = vpack.c.bf16 %v4191_v6, %v4191_v6  ;;  %4470 = vmatprep.subr.bf16.mxu0 %v6731_v28  ;;  %v6746_v28 = vcombine.low %v4263_v3, %v4267_v13 }
 0xf8d   : > { %v7785_v41 = vpop.f32.mrf.mxu0 }
 0xf8e   : > { %7790 = vmatmul.mubr.msk.bf16.vlgmr.msra.gmra.mxu1 %vm3404_vm4, %v4200_v56 }
 0xf8f   : > { %v4194_v58 = vpop.f32.mrf.mxu0  ;;  %4430 = vmatpush1.bf16.msra.mxu1 %v6728_v52  ;;  %4449 = vmatprep.mubr.bf16.mxu1 %v8261_v14  ;;  %v6725_v52 = vcombine.high %v4276_v32, %v4280_v17  ;;  %v4793_v32 = vld [vmem:[#allocation6 + $0x130] sm:$0xff]  ;;  %v4790_v17 = vld [vmem:[#allocation6 + $0x118] sm:$0xff] }
 0xf90   : > { %4431 = vmatprep.subr.bf16.mxu1 %v6721_v8  ;;  %v4275_v58 = vld [vmem:[#allocation6 + $0x90] sm:$0xff]  ;;  %v4255_v8 = vld [vmem:[#allocation6] sm:$0xff] }
 0xf91   : > { %v7786_v45 = vpop.f32.mrf.mxu0  ;;  %v6723_v24 = vcombine.high %v4275_v58, %v4279_v15  ;;  %v6722_v19 = vcombine.low %v4275_v58, %v4279_v15  ;;  %v4789_v15 = vld [vmem:[#allocation6 + $0x110] sm:$0xff] }
 0xf93   : > { %4432 = vmatpush1.bf16.msra.mxu1 %v6720_v18  ;;  %v6749_v18 = vcombine.high %v4264_v57, %v4268_v7  ;;  %v6763_v57 = vcombine.high %v4789_v15, %v4793_v32 }
 0xf94   : > { %4511 = vmatprep.subr.bf16.mxu1 %v6733_v39  ;;  %v4265_v39 = vld [vmem:[#allocation6 + $0x50] sm:$0xff] }
0x101e   : > { %v3675_v42 = vpop.f32.mrf.mxu1 }
0x101f   : > { %v3681_v40 = vadd.f32 %v3675_v42, %v9311_v21  ;;  %v4269_v42 = vld [vmem:[#allocation6 + $0x70] sm:$0xff] }
0x1020   : > { %v7719_v47 = vpop.f32.mrf.mxu1 }
0x1021   : > { %v4266_v47 = vld [vmem:[#allocation6 + $0x58] sm:$0xff] }
0x1022   : > { %v3678_v49 = vpop.f32.mrf.mxu1 }
0x1023   : > { %v4270_v49 = vld [vmem:[#allocation6 + $0x78] sm:$0xff] }
0x1024   : > { %v7720_v26 = vpop.f32.mrf.mxu1 }
0x1025   : > { %v6738_v26 = vcombine.low %v4255_v8, %v4259_v54 }
0x1026   : > { %v3769_v27 = vpop.f32.mrf.mxu1 }
0x1027   : > { %v3775_v4 = vadd.f32 %v3769_v27, %v3681_v40  ;;  %v6740_v27 = vcombine.low %v4256_v30, %v4260_v20 }
0x1028   : > { %v7731_v9 = vpop.f32.mrf.mxu1 }
0x1029   : > { %v6751_v9 = vcombine.high %v4265_v39, %v4269_v42 }
0x102a   : > { %v3772_v10 = vpop.f32.mrf.mxu1 }
0x102b   : > { %v6753_v10 = vcombine.high %v4266_v47, %v4270_v49 }
0x102c   : > { %v7732_v12 = vpop.f32.mrf.mxu1 }
0x102d   : > { %v4257_v12 = vld [vmem:[#allocation6 + $0x10] sm:$0xff] }
0x102e   : > { %v3863_v50 = vpop.f32.mrf.mxu1 }
0x102f   : > { %v3869_v61 = vadd.f32 %v3863_v50, %v3775_v4  ;;  %v4261_v50 = vld [vmem:[#allocation6 + $0x30] sm:$0xff] }
0x1030   : > { %v7743_v16 = vpop.f32.mrf.mxu1  ;;  %v6742_v40 = vcombine.low %v4257_v12, %v4261_v50 }
0x1031   : > { %v4258_v16 = vld [vmem:[#allocation6 + $0x18] sm:$0xff] }
0x1032   : > { %v3866_v23 = vpop.f32.mrf.mxu1 }
0x1033   : > { %v4262_v23 = vld [vmem:[#allocation6 + $0x38] sm:$0xff] }
0x1034   : > { %v7744_v25 = vpop.f32.mrf.mxu1 }
0x1035   : > { %v6750_v25 = vcombine.low %v4265_v39, %v4269_v42 }
0x1036   : > { %v3957_v38 = vpop.f32.mrf.mxu1 }
0x1037   : > { %v3963_v60 = vadd.f32 %v3957_v38, %v3869_v61  ;;  %v6752_v38 = vcombine.low %v4266_v47, %v4270_v49  ;;  %v4787_v61 = vld [vmem:[#allocation6 + $0x100] sm:$0xff]  ;;  %v5071_v49 = vld [vmem:[#allocation6 + $0x1d0] sm:$0xff] }
0x1038   : > { %v7755_v29 = vpop.f32.mrf.mxu1 }
0x1039   : > { %v6743_v29 = vcombine.high %v4257_v12, %v4261_v50 }
0x103a   : > { %v3960_v31 = vpop.f32.mrf.mxu1 }
0x103b   : > { %v6745_v31 = vcombine.high %v4258_v16, %v4262_v23 }
0x103c   : > { %v7756_v46 = vpop.f32.mrf.mxu1 }
0x103d   : > { %v4795_v46 = vld [vmem:[#allocation6 + $0x140] sm:$0xff] }
0x103e   : > { %v4051_v34 = vpop.f32.mrf.mxu1 }
0x103f   : > { %v4057_v53 = vadd.f32 %v4051_v34, %v3963_v60  ;;  %v4799_v34 = vld [vmem:[#allocation6 + $0x160] sm:$0xff]  ;;  %v4788_v60 = vld [vmem:[#allocation6 + $0x108] sm:$0xff] }
0x1040   : > { %v7767_v63 = vpop.f32.mrf.mxu1  ;;  %v6767_v4 = vcombine.high %v4795_v46, %v4799_v34 }
0x1041   : > { %v4796_v63 = vld [vmem:[#allocation6 + $0x148] sm:$0xff] }
0x1042   : > { %v4054_v0 = vpop.f32.mrf.mxu1 }
0x1043   : > { %v4800_v0 = vld [vmem:[#allocation6 + $0x168] sm:$0xff] }
0x1044   : > { %v7768_v2 = vpop.f32.mrf.mxu1 }
0x1045   : > { %v6744_v2 = vcombine.low %v4258_v16, %v4262_v23  ;;  %v5063_v23 = vld [vmem:[#allocation6 + $0x190] sm:$0xff] }
0x1046   : > { %v4145_v5 = vpop.f32.mrf.mxu1 }
0x1047   : > { %v4151_v48 = vadd.f32 %v4145_v5, %v4057_v53  ;;  %v6769_v5 = vcombine.high %v4796_v63, %v4800_v0  ;;  %v6766_v53 = vcombine.low %v4795_v46, %v4799_v34 }
0x1048   : > { %v7779_v11 = vpop.f32.mrf.mxu1 }
0x1049   : > { %v4791_v11 = vld [vmem:[#allocation6 + $0x120] sm:$0xff] }
0x104a   : > { %v4148_v43 = vpop.f32.mrf.mxu1 }
0x104b   : > { %v4792_v43 = vld [vmem:[#allocation6 + $0x128] sm:$0xff] }
0x104c   : > { %v7780_v55 = vpop.f32.mrf.mxu1 }
0x104d   : > { %v6768_v55 = vcombine.low %v4796_v63, %v4800_v0 }
0x104e   : > { %v4239_v51 = vpop.f32.mrf.mxu1 }
0x104f   : > { %v4245_v59 = vadd.f32 %v4239_v51, %v4151_v48  ;;  %v6759_v48 = vcombine.high %v4787_v61, %v4791_v11  ;;  %v6761_v51 = vcombine.high %v4788_v60, %v4792_v43 }
0x1050   : > { %v7791_v6 = vpop.f32.mrf.mxu1 }
0x1051   : > { %v4253_v56 = vadd.f32 %v6717_v22, %v4245_v59  ;;  %v4797_v22 = vld [vmem:[#allocation6 + $0x150] sm:$0xff]  ;;  %v4798_v6 = vld [vmem:[#allocation6 + $0x158] sm:$0xff] }
0x1052   : > { %v4242_v41 = vpop.f32.mrf.mxu1  ;;  %v4801_v59 = vld [vmem:[#allocation6 + $0x170] sm:$0xff] }
0x1053   : > { %v4254_v21 = vmax.f32 %v4253_v56, 0.0  ;;  %v4802_v56 = vld [vmem:[#allocation6 + $0x178] sm:$0xff]  ;;  %v6758_v41 = vcombine.low %v4787_v61, %v4791_v11  ;;  %v6771_v58 = vcombine.high %v4797_v22, %v4801_v59  ;;  %v7974_v11 = vld [vmem:[%s9842_s12 + $0x64] ss:$8 sps:$4 sm:$0xff]  }
0x1054   : > { %v7792_v45 = vpop.f32.mrf.mxu1  ;;  %v6772_v3 = vcombine.low %v4798_v6, %v4802_v56  ;;  %v7969_v61 = vld [vmem:[%s9842_s12 + $0x170] ss:$8 sps:$4 sm:$0xff]  }
0x1055   : > { %v9355_v1 = vpack.c.bf16 %v4254_v21, %v4254_v21  ;;  %v6760_v21 = vcombine.low %v4788_v60, %v4792_v43  ;;  %v6773_v45 = vcombine.high %v4798_v6, %v4802_v56  ;;  %v7972_v60 = vld [vmem:[%s9842_s12 + $0x60] ss:$8 sps:$4 sm:$0xff]   ;;  %v7989_v56 = vld [vmem:[%s9842_s12 + $0x144] ss:$8 sps:$4 sm:$0xff]  }
0x1056   : > { %v7975_v43 = vld [vmem:[%s9842_s12 + $0x160] ss:$8 sps:$4 sm:$0xff]  }
0x1057   : > { %v9358_v36 = vshrl.u32 %v9355_v1, 16  ;;  %v4804_v13 = vrot.slane %v9355_v1, 1  ;;  %v7987_v6 = vld [vmem:[%s9842_s12 + $0x140] ss:$8 sps:$4 sm:$0xff]  }
0x1059   : > { %6734 = vmatmul.mubr.msk.bf16.vlgmr.msra.gmra.mxu0 %vm4372_vm5, %v9358_v36  ;;  %6735 = vmatmul.mubr.msk.bf16.vlgmr.msra.gmra.mxu1 %vm4372_vm5, %v9358_v36  ;;  %v5077_v34 = vrot.slane %v9358_v36, 1 }
0x105a   : > { %4471 = vmatpush1.bf16.msra.mxu0 %v6730_v33  ;;  %4512 = vmatpush1.bf16.msra.mxu1 %v6732_v35  ;;  %v6739_v33 = vcombine.high %v4255_v8, %v4259_v54  ;;  %v6741_v35 = vcombine.high %v4256_v30, %v4260_v20  ;;  %v6762_v8 = vcombine.low %v4789_v15, %v4793_v32  ;;  %v5061_v20 = vld [vmem:[#allocation6 + $0x180] sm:$0xff]  ;;  %v7996_v15 = vld [vmem:[%s9842_s12 + $0x20] ss:$8 sps:$4 sm:$0xff]   ;;  %v7998_v32 = vld [vmem:[%s9842_s12 + $0x24] ss:$8 sps:$4 sm:$0xff]  }
0x105b   : > { %4472 = vmatprep.subr.bf16.mxu0 %v6723_v24  ;;  %4513 = vmatprep.subr.bf16.mxu1 %v6725_v52  ;;  %v4794_v24 = vld [vmem:[#allocation6 + $0x138] sm:$0xff]  ;;  %v6770_v52 = vcombine.low %v4797_v22, %v4801_v59  ;;  %v7984_v22 = vld [vmem:[%s9842_s12 + $0x40] ss:$8 sps:$4 sm:$0xff]   ;;  %v7986_v59 = vld [vmem:[%s9842_s12 + $0x44] ss:$8 sps:$4 sm:$0xff]  }
0x105c   : > { %4490 = vmatprep.mubr.bf16.mxu0 %v8261_v14  ;;  %4531 = vmatprep.mubr.bf16.mxu1 %v8261_v14  ;;  %v6765_v7 = vcombine.high %v4790_v17, %v4794_v24  ;;  %v6764_v54 = vcombine.low %v4790_v17, %v4794_v24  ;;  %v7999_v17 = vld [vmem:[%s9842_s12 + $0x120] ss:$8 sps:$4 sm:$0xff]   ;;  %v8001_v24 = vld [vmem:[%s9842_s12 + $0x124] ss:$8 sps:$4 sm:$0xff]  }
0x105e   : > { %4473 = vmatpush1.bf16.msra.mxu0 %v6722_v19  ;;  %4514 = vmatpush1.bf16.msra.mxu1 %v6724_v44  ;;  %v5069_v19 = vld [vmem:[#allocation6 + $0x1c0] sm:$0xff] }
0x105f   : > { %4634 = vmatprep.subr.bf16.mxu0 %v6747_v62  ;;  %4675 = vmatprep.subr.bf16.mxu1 %v6749_v18  ;;  %v5073_v44 = vld [vmem:[#allocation6 + $0x1e0] sm:$0xff]  ;;  %v5070_v62 = vld [vmem:[#allocation6 + $0x1c8] sm:$0xff] }
0x1060   : > { %v5074_v18 = vld [vmem:[#allocation6 + $0x1e8] sm:$0xff]  ;;  %v6787_v30 = vcombine.high %v5069_v19, %v5073_v44 }
0x1061   : > { %6736 = vmatmul.mubr.msk.bf16.vlgmr.msra.gmra.mxu0 %vm4372_vm5, %v9358_v36  ;;  %6737 = vmatmul.mubr.msk.bf16.vlgmr.msra.gmra.mxu1 %vm4372_vm5, %v9358_v36  ;;  %v6788_v39 = vcombine.low %v5070_v62, %v5074_v18  ;;  %v7971_v36 = vld [vmem:[%s9842_s12 + $0x174] ss:$8 sps:$4 sm:$0xff]  }
0x1062   : > { %4635 = vmatpush1.bf16.msra.mxu0 %v6746_v28  ;;  %4676 = vmatpush1.bf16.msra.mxu1 %v6748_v37  ;;  %v5065_v28 = vld [vmem:[#allocation6 + $0x1a0] sm:$0xff]  ;;  %v5062_v37 = vld [vmem:[#allocation6 + $0x188] sm:$0xff] }
0x1063   : > { %4636 = vmatprep.subr.bf16.mxu0 %v6739_v33  ;;  %4677 = vmatprep.subr.bf16.mxu1 %v6741_v35  ;;  %v5066_v33 = vld [vmem:[#allocation6 + $0x1a8] sm:$0xff]  ;;  %v6786_v35 = vcombine.low %v5069_v19, %v5073_v44  ;;  %v6779_v42 = vcombine.high %v5061_v20, %v5065_v28 }
0x1064   : > { %4654 = vmatprep.mubr.bf16.mxu0 %v8261_v14  ;;  %4695 = vmatprep.mubr.bf16.mxu1 %v8261_v14  ;;  %v6781_v47 = vcombine.high %v5062_v37, %v5066_v33  ;;  %v6780_v12 = vcombine.low %v5062_v37, %v5066_v33  ;;  %v8010_v19 = vld [vmem:[%s9842_s12 + $0x4] ss:$8 sps:$4 sm:$0xff]   ;;  %v8011_v44 = vld [vmem:[%s9842_s12 + $0x100] ss:$8 sps:$4 sm:$0xff]   ;;  %v8028_v33 = vld [vmem:[%s9842_s12 + $0xd4] ss:$8 sps:$4 sm:$0xff]  }
0x1065   : > { %v8025_v37 = vld [vmem:[%s9842_s12 + $0x1e4] ss:$8 sps:$4 sm:$0xff]  }
0x1066   : > { %4637 = vmatpush1.bf16.msra.mxu0 %v6738_v26  ;;  %4678 = vmatpush1.bf16.msra.mxu1 %v6740_v27  ;;  %v5075_v26 = vld [vmem:[#allocation6 + $0x1f0] sm:$0xff]  ;;  %v5072_v27 = vld [vmem:[#allocation6 + $0x1d8] sm:$0xff] }
0x1067   : > { %4716 = vmatprep.subr.bf16.mxu0 %v6751_v9  ;;  %4757 = vmatprep.subr.bf16.mxu1 %v6753_v10  ;;  %v5076_v9 = vld [vmem:[#allocation6 + $0x1f8] sm:$0xff]  ;;  %v6778_v10 = vcombine.low %v5061_v20, %v5065_v28  ;;  %v6791_v50 = vcombine.high %v5071_v49, %v5075_v26  ;;  %v8022_v20 = vld [vmem:[%s9842_s12 + $0xe4] ss:$8 sps:$4 sm:$0xff]   ;;  %v8023_v28 = vld [vmem:[%s9842_s12 + $0x1e0] ss:$8 sps:$4 sm:$0xff]  }
0x1068   : > { %v6793_v16 = vcombine.high %v5072_v27, %v5076_v9  ;;  %v6792_v46 = vcombine.low %v5072_v27, %v5076_v9  ;;  %v8037_v27 = vld [vmem:[%s9842_s12 + $0x1c4] ss:$8 sps:$4 sm:$0xff]   ;;  %v8040_v9 = vld [vmem:[%s9842_s12 + $0xb4] ss:$8 sps:$4 sm:$0xff]  }
0x1069   : > { %6754 = vmatmul.mubr.msk.bf16.vlgmr.msra.gmra.mxu0 %vm4372_vm5, %v9355_v1  ;;  %6755 = vmatmul.mubr.msk.bf16.vlgmr.msra.gmra.mxu1 %vm4372_vm5, %v9355_v1 }
0x106a   : > { %4717 = vmatpush1.bf16.msra.mxu0 %v6750_v25  ;;  %4758 = vmatpush1.bf16.msra.mxu1 %v6752_v38  ;;  %v5067_v25 = vld [vmem:[#allocation6 + $0x1b0] sm:$0xff]  ;;  %v5064_v38 = vld [vmem:[#allocation6 + $0x198] sm:$0xff] }
0x106b   : > { %4718 = vmatprep.subr.bf16.mxu0 %v6743_v29  ;;  %4759 = vmatprep.subr.bf16.mxu1 %v6745_v31  ;;  %v5068_v29 = vld [vmem:[#allocation6 + $0x1b8] sm:$0xff]  ;;  %v6790_v31 = vcombine.low %v5071_v49, %v5075_v26  ;;  %v6783_v63 = vcombine.high %v5063_v23, %v5067_v25  ;;  %v8034_v49 = vld [vmem:[%s9842_s12 + $0xc4] ss:$8 sps:$4 sm:$0xff]   ;;  %v8035_v26 = vld [vmem:[%s9842_s12 + $0x1c0] ss:$8 sps:$4 sm:$0xff]  }
0x106c   : > { %4736 = vmatprep.mubr.bf16.mxu0 %v8261_v14  ;;  %4777 = vmatprep.mubr.bf16.mxu1 %v8261_v14  ;;  %v6785_v0 = vcombine.high %v5064_v38, %v5068_v29 }
0x106e   : > { %4719 = vmatpush1.bf16.msra.mxu0 %v6742_v40  ;;  %4760 = vmatpush1.bf16.msra.mxu1 %v6744_v2  ;;  %v6782_v40 = vcombine.low %v5063_v23, %v5067_v25  ;;  %v6784_v2 = vcombine.low %v5064_v38, %v5068_v29  ;;  %v8046_v23 = vld [vmem:[%s9842_s12 + $0xa4] ss:$8 sps:$4 sm:$0xff]   ;;  %v8047_v25 = vld [vmem:[%s9842_s12 + $0x1a0] ss:$8 sps:$4 sm:$0xff]   ;;  %v8052_v29 = vld [vmem:[%s9842_s12 + $0x94] ss:$8 sps:$4 sm:$0xff]  }
0x106f   : > { %4900 = vmatprep.subr.bf16.mxu0 %v6767_v4  ;;  %4941 = vmatprep.subr.bf16.mxu1 %v6769_v5  ;;  %v7968_v4 = vld [vmem:[%s9842_s12 + $0x74] ss:$8 sps:$4 sm:$0xff]   ;;  %v7966_v5 = vld [vmem:[%s9842_s12 + $0x70] ss:$8 sps:$4 sm:$0xff]   ;;  %v8049_v38 = vld [vmem:[%s9842_s12 + $0x1a4] ss:$8 sps:$4 sm:$0xff]  }
0x1071   : > { %6756 = vmatmul.mubr.msk.bf16.vlgmr.msra.gmra.mxu0 %vm4372_vm5, %v9355_v1  ;;  %6757 = vmatmul.mubr.msk.bf16.vlgmr.msra.gmra.mxu1 %vm4372_vm5, %v9355_v1  ;;  %v6789_v1 = vcombine.high %v5070_v62, %v5074_v18  ;;  %v8013_v62 = vld [vmem:[%s9842_s12 + $0x104] ss:$8 sps:$4 sm:$0xff]   ;;  %v8016_v18 = vld [vmem:[%s9842_s12 + $0xf4] ss:$8 sps:$4 sm:$0xff]  }
0x1072   : > { %4901 = vmatpush1.bf16.msra.mxu0 %v6766_v53  ;;  %4942 = vmatpush1.bf16.msra.mxu1 %v6768_v55  ;;  %v7978_v53 = vld [vmem:[%s9842_s12 + $0x50] ss:$8 sps:$4 sm:$0xff]   ;;  %v7980_v55 = vld [vmem:[%s9842_s12 + $0x54] ss:$8 sps:$4 sm:$0xff]  }
0x1073   : > { %4902 = vmatprep.subr.bf16.mxu0 %v6759_v48  ;;  %4943 = vmatprep.subr.bf16.mxu1 %v6761_v51  ;;  %v7981_v48 = vld [vmem:[%s9842_s12 + $0x150] ss:$8 sps:$4 sm:$0xff]   ;;  %v7983_v51 = vld [vmem:[%s9842_s12 + $0x154] ss:$8 sps:$4 sm:$0xff]  }
0x1074   : > { %4920 = vmatprep.mubr.bf16.mxu0 %v8261_v14  ;;  %4961 = vmatprep.mubr.bf16.mxu1 %v8261_v14 }
0x1076   : > { %4903 = vmatpush1.bf16.msra.mxu0 %v6758_v41  ;;  %4944 = vmatpush1.bf16.msra.mxu1 %v6760_v21  ;;  %v7990_v41 = vld [vmem:[%s9842_s12 + $0x30] ss:$8 sps:$4 sm:$0xff]   ;;  %v7992_v21 = vld [vmem:[%s9842_s12 + $0x34] ss:$8 sps:$4 sm:$0xff]  }
0x1077   : > { %4982 = vmatprep.subr.bf16.mxu0 %v6771_v58  ;;  %5023 = vmatprep.subr.bf16.mxu1 %v6773_v45  ;;  %v7993_v58 = vld [vmem:[%s9842_s12 + $0x130] ss:$8 sps:$4 sm:$0xff]   ;;  %v7995_v45 = vld [vmem:[%s9842_s12 + $0x134] ss:$8 sps:$4 sm:$0xff]  }
0x1079   : > { %6774 = vmatmul.mubr.msk.bf16.vlgmr.msra.gmra.mxu0 %vm4372_vm5, %v4804_v13  ;;  %6775 = vmatmul.mubr.msk.bf16.vlgmr.msra.gmra.mxu1 %vm4372_vm5, %v4804_v13 }
0x107a   : > { %4983 = vmatpush1.bf16.msra.mxu0 %v6770_v52  ;;  %5024 = vmatpush1.bf16.msra.mxu1 %v6772_v3  ;;  %v8004_v52 = vld [vmem:[%s9842_s12 + $0x14] ss:$8 sps:$4 sm:$0xff]  }
0x107b   : > { %4984 = vmatprep.subr.bf16.mxu0 %v6763_v57  ;;  %5025 = vmatprep.subr.bf16.mxu1 %v6765_v7  ;;  %v8007_v3 = vld [vmem:[%s9842_s12 + $0x114] ss:$8 sps:$4 sm:$0xff]   ;;  %v8005_v57 = vld [vmem:[%s9842_s12 + $0x110] ss:$8 sps:$4 sm:$0xff]   ;;  %v8008_v7 = vld [vmem:[%s9842_s12] ss:$8 sps:$4 sm:$0xff]  }
0x107c   : > { %5002 = vmatprep.mubr.bf16.mxu0 %v8261_v14  ;;  %5043 = vmatprep.mubr.bf16.mxu1 %v8261_v14 }
0x107e   : > { %4985 = vmatpush1.bf16.msra.mxu0 %v6762_v8  ;;  %5026 = vmatpush1.bf16.msra.mxu1 %v6764_v54  ;;  %v8019_v8 = vld [vmem:[%s9842_s12 + $0x1f4] ss:$8 sps:$4 sm:$0xff]   ;;  %v8014_v54 = vld [vmem:[%s9842_s12 + $0xf0] ss:$8 sps:$4 sm:$0xff]  }
0x107f   : > { %5173 = vmatprep.subr.bf16.mxu0 %v6787_v30  ;;  %5214 = vmatprep.subr.bf16.mxu1 %v6789_v1  ;;  %v8017_v30 = vld [vmem:[%s9842_s12 + $0x1f0] ss:$8 sps:$4 sm:$0xff]   ;;  %v8020_v1 = vld [vmem:[%s9842_s12 + $0xe0] ss:$8 sps:$4 sm:$0xff]  }
0x1081   : > { %6776 = vmatmul.mubr.msk.bf16.vlgmr.msra.gmra.mxu0 %vm4372_vm5, %v4804_v13  ;;  %6777 = vmatmul.mubr.msk.bf16.vlgmr.msra.gmra.mxu1 %vm4372_vm5, %v4804_v13  ;;  %v8002_v13 = vld [vmem:[%s9842_s12 + $0x10] ss:$8 sps:$4 sm:$0xff]  }
0x1082   : > { %5174 = vmatpush1.bf16.msra.mxu0 %v6786_v35  ;;  %5215 = vmatpush1.bf16.msra.mxu1 %v6788_v39  ;;  %v8031_v35 = vld [vmem:[%s9842_s12 + $0x1d4] ss:$8 sps:$4 sm:$0xff]   ;;  %v8026_v39 = vld [vmem:[%s9842_s12 + $0xd0] ss:$8 sps:$4 sm:$0xff]  }
0x1083   : > { %5175 = vmatprep.subr.bf16.mxu0 %v6779_v42  ;;  %5216 = vmatprep.subr.bf16.mxu1 %v6781_v47  ;;  %v8029_v42 = vld [vmem:[%s9842_s12 + $0x1d0] ss:$8 sps:$4 sm:$0xff]   ;;  %v8032_v47 = vld [vmem:[%s9842_s12 + $0xc0] ss:$8 sps:$4 sm:$0xff]  }
0x1084   : > { %5193 = vmatprep.mubr.bf16.mxu0 %v8261_v14  ;;  %5234 = vmatprep.mubr.bf16.mxu1 %v8261_v14 }
0x1086   : > { %5176 = vmatpush1.bf16.msra.mxu0 %v6778_v10  ;;  %5217 = vmatpush1.bf16.msra.mxu1 %v6780_v12  ;;  %v8043_v10 = vld [vmem:[%s9842_s12 + $0x1b4] ss:$8 sps:$4 sm:$0xff]   ;;  %v8038_v12 = vld [vmem:[%s9842_s12 + $0xb0] ss:$8 sps:$4 sm:$0xff]  }
0x1087   : > { %5255 = vmatprep.subr.bf16.mxu0 %v6791_v50  ;;  %5296 = vmatprep.subr.bf16.mxu1 %v6793_v16  ;;  %v8041_v50 = vld [vmem:[%s9842_s12 + $0x1b0] ss:$8 sps:$4 sm:$0xff]   ;;  %v8044_v16 = vld [vmem:[%s9842_s12 + $0xa0] ss:$8 sps:$4 sm:$0xff]  }
0x1089   : > { %6794 = vmatmul.mubr.msk.bf16.vlgmr.msra.gmra.mxu0 %vm4372_vm5, %v5077_v34  ;;  %6795 = vmatmul.mubr.msk.bf16.vlgmr.msra.gmra.mxu1 %vm4372_vm5, %v5077_v34 }
0x108a   : > { %5256 = vmatpush1.bf16.msra.mxu0 %v6790_v31  ;;  %5297 = vmatpush1.bf16.msra.mxu1 %v6792_v46  ;;  %v8055_v31 = vld [vmem:[%s9842_s12 + $0x194] ss:$8 sps:$4 sm:$0xff]   ;;  %v8050_v46 = vld [vmem:[%s9842_s12 + $0x90] ss:$8 sps:$4 sm:$0xff]  }
0x108b   : > { %5257 = vmatprep.subr.bf16.mxu0 %v6783_v63  ;;  %5298 = vmatprep.subr.bf16.mxu1 %v6785_v0  ;;  %v8058_v63 = vld [vmem:[%s9842_s12 + $0x84] ss:$8 sps:$4 sm:$0xff]  }
0x108c   : > { %5275 = vmatprep.mubr.bf16.mxu0 %v8261_v14  ;;  %5316 = vmatprep.mubr.bf16.mxu1 %v8261_v14  ;;  %v7977_v14 = vld [vmem:[%s9842_s12 + $0x164] ss:$8 sps:$4 sm:$0xff]  }
0x108d   : > { %v8061_v0 = vld [vmem:[%s9842_s12 + $0x184] ss:$8 sps:$4 sm:$0xff]  }
0x108e   : > { %5258 = vmatpush1.bf16.msra.mxu0 %v6782_v40  ;;  %5299 = vmatpush1.bf16.msra.mxu1 %v6784_v2  ;;  %v8056_v40 = vld [vmem:[%s9842_s12 + $0x80] ss:$8 sps:$4 sm:$0xff]  }
0x108f   : > { %6179 = vmatprep.subr.bf16.mxu0 %v7968_v4  ;;  %6220 = vmatprep.subr.bf16.mxu1 %v7971_v36  ;;  %v8059_v2 = vld [vmem:[%s9842_s12 + $0x180] ss:$8 sps:$4 sm:$0xff]   ;;  %v8064_v4 = vld [vmem:[%s9842_s12 + $0x274] ss:$8 sps:$4 sm:$0xff]  }
0x1090   : > { %v8067_v36 = vld [vmem:[%s9842_s12 + $0x374] ss:$8 sps:$4 sm:$0xff]  }
0x1091   : > { %6796 = vmatmul.mubr.msk.bf16.vlgmr.msra.gmra.mxu0 %vm4372_vm5, %v5077_v34  ;;  %6797 = vmatmul.mubr.msk.bf16.vlgmr.msra.gmra.mxu1 %vm4372_vm5, %v5077_v34  ;;  %v8053_v34 = vld [vmem:[%s9842_s12 + $0x190] ss:$8 sps:$4 sm:$0xff]  }
0x1092   : > { %6180 = vmatpush1.bf16.msra.mxu0 %v7966_v5  ;;  %6221 = vmatpush1.bf16.msra.mxu1 %v7969_v61 }
0x1093   : > { %6181 = vmatprep.subr.bf16.mxu0 %v7974_v11  ;;  %6222 = vmatprep.subr.bf16.mxu1 %v7977_v14 }
0x1096   : > { %6182 = vmatpush1.bf16.msra.mxu0 %v7972_v60  ;;  %6223 = vmatpush1.bf16.msra.mxu1 %v7975_v43 }
0x1097   : > { %6183 = vmatprep.subr.bf16.mxu0 %v7980_v55  ;;  %6224 = vmatprep.subr.bf16.mxu1 %v7983_v51 }
0x109a   : > { %6184 = vmatpush1.bf16.msra.mxu0 %v7978_v53  ;;  %6225 = vmatpush1.bf16.msra.mxu1 %v7981_v48 }
0x109b   : > { %6185 = vmatprep.subr.bf16.mxu0 %v7986_v59  ;;  %6226 = vmatprep.subr.bf16.mxu1 %v7989_v56 }
0x109e   : > { %6186 = vmatpush1.bf16.msra.mxu0 %v7984_v22  ;;  %6227 = vmatpush1.bf16.msra.mxu1 %v7987_v6 }
0x109f   : > { %6187 = vmatprep.subr.bf16.mxu0 %v7992_v21  ;;  %6228 = vmatprep.subr.bf16.mxu1 %v7995_v45 }
0x10a2   : > { %6188 = vmatpush1.bf16.msra.mxu0 %v7990_v41  ;;  %6229 = vmatpush1.bf16.msra.mxu1 %v7993_v58 }
0x10a3   : > { %6189 = vmatprep.subr.bf16.mxu0 %v7998_v32  ;;  %6230 = vmatprep.subr.bf16.mxu1 %v8001_v24 }
0x10a6   : > { %6190 = vmatpush1.bf16.msra.mxu0 %v7996_v15  ;;  %6231 = vmatpush1.bf16.msra.mxu1 %v7999_v17 }
0x10a7   : > { %6191 = vmatprep.subr.bf16.mxu0 %v8004_v52  ;;  %6232 = vmatprep.subr.bf16.mxu1 %v8007_v3 }
0x10aa   : > { %6192 = vmatpush1.bf16.msra.mxu0 %v8002_v13  ;;  %6233 = vmatpush1.bf16.msra.mxu1 %v8005_v57 }
0x10ab   : > { %6193 = vmatprep.subr.bf16.mxu0 %v8010_v19  ;;  %6234 = vmatprep.subr.bf16.mxu1 %v8013_v62 }
0x10ae   : > { %6194 = vmatpush1.bf16.msra.mxu0 %v8008_v7  ;;  %6235 = vmatpush1.bf16.msra.mxu1 %v8011_v44 }
0x10af   : > { %6195 = vmatprep.subr.bf16.mxu0 %v8016_v18  ;;  %6236 = vmatprep.subr.bf16.mxu1 %v8019_v8 }
0x10b2   : > { %6196 = vmatpush2.bf16.msra.mxu0 %v8014_v54  ;;  %6237 = vmatpush2.bf16.msra.mxu1 %v8017_v30 }
0x10b3   : > { %6197 = vmatprep.subr.bf16.mxu0 %v8022_v20  ;;  %6238 = vmatprep.subr.bf16.mxu1 %v8025_v37 }
0x10b6   : > { %6198 = vmatpush2.bf16.msra.mxu0 %v8020_v1  ;;  %6239 = vmatpush2.bf16.msra.mxu1 %v8023_v28 }
0x10b7   : > { %6199 = vmatprep.subr.bf16.mxu0 %v8028_v33  ;;  %6240 = vmatprep.subr.bf16.mxu1 %v8031_v35  ;;  %v5335_v33 = vlaneseq }
0x10b9   : > { %vm6365_vm6 = vcmp.lt.s32.totalorder %v5335_v33, 256 }
0x10ba   : > { %6200 = vmatpush2.bf16.msra.mxu0 %v8026_v39  ;;  %6241 = vmatpush2.bf16.msra.mxu1 %v8029_v42 }
0x10bb   : > { %6201 = vmatprep.subr.bf16.mxu0 %v8034_v49  ;;  %6242 = vmatprep.subr.bf16.mxu1 %v8037_v27  ;;  %v9603_v49 = vshrl.u32 %v5335_v33, 7 }
0x10be   : > { %6202 = vmatpush2.bf16.msra.mxu0 %v8032_v47  ;;  %6243 = vmatpush2.bf16.msra.mxu1 %v8035_v26 }
0x10bf   : > { %6203 = vmatprep.subr.bf16.mxu0 %v8040_v9  ;;  %6244 = vmatprep.subr.bf16.mxu1 %v8043_v10 }
0x10c2   : > { %6204 = vmatpush2.bf16.msra.mxu0 %v8038_v12  ;;  %6245 = vmatpush2.bf16.msra.mxu1 %v8041_v50 }
0x10c3   : > { %6205 = vmatprep.subr.bf16.mxu0 %v8046_v23  ;;  %6246 = vmatprep.subr.bf16.mxu1 %v8049_v38  ;;  %v5345_v23 = vsub.s32 2, %v9603_v49 }
0x10c6   : > { %6206 = vmatpush2.bf16.msra.mxu0 %v8044_v16  ;;  %6247 = vmatpush2.bf16.msra.mxu1 %v8047_v25  ;;  %v5337_v16 = vsub.s32 0, %v9603_v49  ;;  %v5333_v25 = vld [vmem:[%s9841_s11] sm:$0xff] }
0x10c7   : > { %6207 = vmatprep.subr.bf16.mxu0 %v8052_v29  ;;  %6248 = vmatprep.subr.bf16.mxu1 %v8055_v31  ;;  %v5341_v31 = vsub.s32 1, %v9603_v49 }
0x10ca   : > { %6208 = vmatpush2.bf16.msra.mxu0 %v8050_v46  ;;  %6249 = vmatpush2.bf16.msra.mxu1 %v8053_v34  ;;  %v5349_v46 = vsub.s32 3, %v9603_v49 }
0x10cb   : > { %6209 = vmatprep.subr.bf16.mxu0 %v8058_v63  ;;  %6250 = vmatprep.subr.bf16.mxu1 %v8061_v0 }
0x10ce   : > { %6210 = vmatpush2.bf16.msra.mxu0 %v8056_v40  ;;  %6251 = vmatpush2.bf16.msra.mxu1 %v8059_v2  ;;  %v5338_v2 = vrot.slane %v5333_v25, %v5337_v16 }
0x10cf   : > { %6261 = vmatprep.subr.bf16.mxu0 %v8064_v4  ;;  %6302 = vmatprep.subr.bf16.mxu1 %v8067_v36  ;;  %v5346_v4 = vrot.slane %v5333_v25, %v5345_v23 }
0x1119   : > { %v4410_v5 = vpop.f32.mrf.mxu0  ;;  %v4451_v61 = vpop.f32.mrf.mxu1 }
0x111b   : > { %v4412_v11 = vpop.f32.mrf.mxu0  ;;  %v4453_v14 = vpop.f32.mrf.mxu1 }
0x111d   : > { %v4414_v60 = vpop.f32.mrf.mxu0  ;;  %v4455_v43 = vpop.f32.mrf.mxu1 }
0x111f   : > { %v4415_v53 = vpop.f32.mrf.mxu0  ;;  %v4456_v55 = vpop.f32.mrf.mxu1 }
0x1121   : > { %v4492_v48 = vpop.f32.mrf.mxu0  ;;  %v4533_v51 = vpop.f32.mrf.mxu1 }
0x1123   : > { %v9598_v22 = vpop.f32.mrf.mxu0  ;;  %v9600_v59 = vpop.f32.mrf.mxu1 }
0x1125   : > { %v4496_v6 = vpop.f32.mrf.mxu0  ;;  %v4537_v56 = vpop.f32.mrf.mxu1 }
0x1126   : > { %v5350_v6 = vrot.slane %v5333_v25, %v5349_v46 }
0x1127   : > { %v4497_v41 = vpop.f32.mrf.mxu0  ;;  %v4538_v21 = vpop.f32.mrf.mxu1 }
0x1129   : > { %v4656_v58 = vpop.f32.mrf.mxu0  ;;  %v4697_v45 = vpop.f32.mrf.mxu1 }
0x112a   : > { %v4657_v34 = vadd.f32 %v4656_v58, %v4410_v5  ;;  %v4698_v63 = vadd.f32 %v4697_v45, %v4451_v61  ;;  %v5353_v45 = vsub.s32 4, %v9603_v49 }
0x112b   : > { %v4658_v15 = vpop.f32.mrf.mxu0  ;;  %v4699_v32 = vpop.f32.mrf.mxu1 }
0x112c   : > { %v4659_v36 = vadd.f32 %v4658_v15, %v4412_v11  ;;  %v4700_v60 = vadd.f32 %v4699_v32, %v4453_v14 }
0x112d   : > { %v4660_v17 = vpop.f32.mrf.mxu0  ;;  %v4701_v24 = vpop.f32.mrf.mxu1 }
0x112e   : > { %v5361_v17 = vsub.s32 6, %v9603_v49 }
0x112f   : > { %v4661_v52 = vpop.f32.mrf.mxu0  ;;  %v4702_v3 = vpop.f32.mrf.mxu1 }
0x1130   : > { %v5357_v3 = vsub.s32 5, %v9603_v49 }
0x1131   : > { %v4738_v13 = vpop.f32.mrf.mxu0  ;;  %v4779_v57 = vpop.f32.mrf.mxu1 }
0x1132   : > { %v4739_v7 = vadd.f32 %v4738_v13, %v4492_v48  ;;  %v4780_v19 = vadd.f32 %v4779_v57, %v4533_v51  ;;  %v5342_v51 = vrot.slane %v5333_v25, %v5341_v31  ;;  %v5365_v13 = vsub.s32 7, %v9603_v49 }
0x1133   : > { %v4740_v44 = vpop.f32.mrf.mxu0  ;;  %v4781_v62 = vpop.f32.mrf.mxu1 }
0x1134   : > { %v5366_v23 = vrot.slane %v5333_v25, %v5365_v13  ;;  %v8097_v13 = vld [vmem:[%s9842_s12 + $0x324] ss:$8 sps:$4 sm:$0xff]  }
0x1135   : > { %v4742_v18 = vpop.f32.mrf.mxu0  ;;  %v4783_v8 = vpop.f32.mrf.mxu1 }
0x1136   : > { %v4782_v18 = vadd.f32 %v4781_v62, %v9600_v59  ;;  %v8062_v59 = vld [vmem:[%s9842_s12 + $0x270] ss:$8 sps:$4 sm:$0xff]  }
0x1137   : > { %v4743_v54 = vpop.f32.mrf.mxu0  ;;  %v4784_v30 = vpop.f32.mrf.mxu1 }
0x1139   : > { %v4922_v1 = vpop.f32.mrf.mxu0  ;;  %v4963_v20 = vpop.f32.mrf.mxu1 }
0x113a   : > { %v5052_v43 = vadd.f32 %v4922_v1, %v4657_v34  ;;  %v5054_v53 = vadd.f32 %v4963_v20, %v4698_v63 }
0x113b   : > { %v4924_v28 = vpop.f32.mrf.mxu0  ;;  %v4965_v37 = vpop.f32.mrf.mxu1 }
0x113c   : > { %v5053_v56 = vadd.f32 %v4924_v28, %v4659_v36  ;;  %v5055_v41 = vadd.f32 %v4965_v37, %v4700_v60  ;;  %v5354_v37 = vrot.slane %v5333_v25, %v5353_v45  ;;  %v8082_v45 = vld [vmem:[%s9842_s12 + $0x244] ss:$8 sps:$4 sm:$0xff]  }
0x113d   : > { %v4926_v35 = vpop.f32.mrf.mxu0  ;;  %v4967_v39 = vpop.f32.mrf.mxu1 }
0x113e   : > { %v5362_v35 = vrot.slane %v5333_v25, %v5361_v17  ;;  %v8085_v17 = vld [vmem:[%s9842_s12 + $0x344] ss:$8 sps:$4 sm:$0xff]  }
0x113f   : > { %v4927_v42 = vpop.f32.mrf.mxu0  ;;  %v4968_v47 = vpop.f32.mrf.mxu1 }
0x1141   : > { %v5004_v26 = vpop.f32.mrf.mxu0  ;;  %v5045_v27 = vpop.f32.mrf.mxu1 }
0x1142   : > { %v5056_v9 = vadd.f32 %v5004_v26, %v4739_v7  ;;  %v5058_v10 = vadd.f32 %v5045_v27, %v4780_v19  ;;  %v4741_v19 = vadd.f32 %v4740_v44, %v9598_v22  ;;  %v5358_v27 = vrot.slane %v5333_v25, %v5357_v3  ;;  %v8094_v3 = vld [vmem:[%s9842_s12 + $0x224] ss:$8 sps:$4 sm:$0xff]  }
0x1143   : > { %v5006_v12 = vpop.f32.mrf.mxu0  ;;  %v5047_v50 = vpop.f32.mrf.mxu1 }
0x1144   : > { %v5057_v39 = vadd.f32 %v5006_v12, %v4741_v19  ;;  %v5059_v42 = vadd.f32 %v5047_v50, %v4782_v18  ;;  %v8065_v12 = vld [vmem:[%s9842_s12 + $0x370] ss:$8 sps:$4 sm:$0xff]   ;;  %v8070_v50 = vld [vmem:[%s9842_s12 + $0x264] ss:$8 sps:$4 sm:$0xff]   ;;  %v8100_v19 = vld [vmem:[%s9842_s12 + $0x214] ss:$8 sps:$4 sm:$0xff]  }
0x1145   : > { %v5008_v38 = vpop.f32.mrf.mxu0  ;;  %v5049_v29 = vpop.f32.mrf.mxu1  ;;  %v8103_v18 = vld [vmem:[%s9842_s12 + $0x314] ss:$8 sps:$4 sm:$0xff]  }
0x1147   : > { %v5009_v0 = vpop.f32.mrf.mxu0  ;;  %v5050_v40 = vpop.f32.mrf.mxu1 }
0x1148   : > { %v8073_v40 = vld [vmem:[%s9842_s12 + $0x364] ss:$8 sps:$4 sm:$0xff]  }
0x1149   : > { %v5195_v55 = vpop.f32.mrf.mxu0  ;;  %v5236_v48 = vpop.f32.mrf.mxu1 }
0x114a   : > { %v5325_v5 = vadd.f32 %v5195_v55, %v5052_v43  ;;  %v5327_v61 = vadd.f32 %v5236_v48, %v5054_v53  ;;  %v8068_v43 = vld [vmem:[%s9842_s12 + $0x260] ss:$8 sps:$4 sm:$0xff]  }
0x114b   : > { %v5197_v21 = vpop.f32.mrf.mxu0  ;;  %v5238_v58 = vpop.f32.mrf.mxu1  ;;  %v8071_v48 = vld [vmem:[%s9842_s12 + $0x360] ss:$8 sps:$4 sm:$0xff]  }
0x114c   : > { %v5375_v11 = vadd.f32 %v5338_v2, %v5325_v5  ;;  %v5377_v14 = vadd.f32 %v5346_v4, %v5327_v61  ;;  %v5326_v15 = vadd.f32 %v5197_v21, %v5053_v56  ;;  %v5328_v32 = vadd.f32 %v5238_v58, %v5055_v41  ;;  %v8079_v41 = vld [vmem:[%s9842_s12 + $0x354] ss:$8 sps:$4 sm:$0xff]   ;;  %v8074_v21 = vld [vmem:[%s9842_s12 + $0x250] ss:$8 sps:$4 sm:$0xff]  }
0x114d   : > { %v5199_v24 = vpop.f32.mrf.mxu0  ;;  %v5240_v52 = vpop.f32.mrf.mxu1  ;;  %v8077_v58 = vld [vmem:[%s9842_s12 + $0x350] ss:$8 sps:$4 sm:$0xff]  }
0x114e   : > { %v5376_v57 = vadd.f32 %v5342_v51, %v5326_v15  ;;  %v5378_v7 = vadd.f32 %v5350_v6, %v5328_v32  ;;  %v5383_v8 = vmax.f32 %v5375_v11, 0.0  ;;  %v5385_v54 = vmax.f32 %v5377_v14, 0.0  ;;  %v8076_v51 = vld [vmem:[%s9842_s12 + $0x254] ss:$8 sps:$4 sm:$0xff]   ;;  %v8080_v11 = vld [vmem:[%s9842_s12 + $0x240] ss:$8 sps:$4 sm:$0xff]  }
0x114f   : > { %v5200_v30 = vpop.f32.mrf.mxu0  ;;  %v5241_v1 = vpop.f32.mrf.mxu1  ;;  %v8083_v14 = vld [vmem:[%s9842_s12 + $0x340] ss:$8 sps:$4 sm:$0xff]   ;;  %v8088_v15 = vld [vmem:[%s9842_s12 + $0x234] ss:$8 sps:$4 sm:$0xff]   ;;  %v8086_v24 = vld [vmem:[%s9842_s12 + $0x230] ss:$8 sps:$4 sm:$0xff]  }
0x1150   : > { %v5384_v20 = vmax.f32 %v5376_v57, 0.0  ;;  %v5386_v28 = vmax.f32 %v5378_v7, 0.0  ;;  %v5519_v44 = vpack.c.bf16 %v5383_v8, %v5383_v8  ;;  %v5521_v62 = vpack.c.bf16 %v5385_v54, %v5385_v54  ;;  %v8091_v32 = vld [vmem:[%s9842_s12 + $0x334] ss:$8 sps:$4 sm:$0xff]   ;;  %v8089_v52 = vld [vmem:[%s9842_s12 + $0x330] ss:$8 sps:$4 sm:$0xff]  }
0x1151   : > { %v5277_v47 = vpop.f32.mrf.mxu0  ;;  %v5318_v26 = vpop.f32.mrf.mxu1  ;;  %v8092_v57 = vld [vmem:[%s9842_s12 + $0x220] ss:$8 sps:$4 sm:$0xff]   ;;  %v8098_v8 = vld [vmem:[%s9842_s12 + $0x210] ss:$8 sps:$4 sm:$0xff]   ;;  %v8106_v30 = vld [vmem:[%s9842_s12 + $0x204] ss:$8 sps:$4 sm:$0xff]  }
0x1152   : > { %v5520_v38 = vpack.c.bf16 %v5384_v20, %v5384_v20  ;;  %v5522_v29 = vpack.c.bf16 %v5386_v28, %v5386_v28  ;;  %v5329_v46 = vadd.f32 %v5277_v47, %v5056_v9  ;;  %v5331_v22 = vadd.f32 %v5318_v26, %v5058_v10  ;;  %v8095_v7 = vld [vmem:[%s9842_s12 + $0x320] ss:$8 sps:$4 sm:$0xff]   ;;  %v8101_v54 = vld [vmem:[%s9842_s12 + $0x310] ss:$8 sps:$4 sm:$0xff]   ;;  %v8109_v1 = vld [vmem:[%s9842_s12 + $0x304] ss:$8 sps:$4 sm:$0xff]  }
0x1153   : > { %v5279_v34 = vpop.f32.mrf.mxu0  ;;  %v5320_v63 = vpop.f32.mrf.mxu1  ;;  %v8104_v20 = vld [vmem:[%s9842_s12 + $0x200] ss:$8 sps:$4 sm:$0xff]   ;;  %v8118_v47 = vld [vmem:[%s9842_s12 + $0x2e4] ss:$8 sps:$4 sm:$0xff]  }
0x1154   : > { %v9631_v25 = vadd.f32 %v5354_v37, %v5329_v46  ;;  %v9633_v9 = vadd.f32 %v5362_v35, %v5331_v22  ;;  %v5330_v10 = vadd.f32 %v5279_v34, %v5057_v39  ;;  %v5332_v0 = vadd.f32 %v5320_v63, %v5059_v42  ;;  %6211 = vmatprep.mubr.bf16.mxu0 %v5520_v38  ;;  %v8107_v28 = vld [vmem:[%s9842_s12 + $0x300] ss:$8 sps:$4 sm:$0xff]   ;;  %v8112_v37 = vld [vmem:[%s9842_s12 + $0x2f4] ss:$8 sps:$4 sm:$0xff]   ;;  %v8110_v39 = vld [vmem:[%s9842_s12 + $0x2f0] ss:$8 sps:$4 sm:$0xff]  }
0x1155   : > { %6252 = vmatprep.mubr.bf16.mxu1 %v5522_v29  ;;  %v5281_v2 = vpop.f32.mrf.mxu0  ;;  %v5322_v4 = vpop.f32.mrf.mxu1  ;;  %6212 = vmatmul.mubr.bf16.vlgmr.msra.gmra.mxu0 %v5519_v44  ;;  %v8115_v35 = vld [vmem:[%s9842_s12 + $0x3f4] ss:$8 sps:$4 sm:$0xff]   ;;  %v8113_v42 = vld [vmem:[%s9842_s12 + $0x3f0] ss:$8 sps:$4 sm:$0xff]   ;;  %v8121_v26 = vld [vmem:[%s9842_s12 + $0x3e4] ss:$8 sps:$4 sm:$0xff]  }
0x1156   : > { %v5380_v36 = vadd.f32 %v5358_v27, %v5330_v10  ;;  %v5382_v60 = vadd.f32 %v5366_v23, %v5332_v0  ;;  %6253 = vmatmul.mubr.bf16.vlgmr.msra.gmra.mxu1 %v5521_v62  ;;  %6262 = vmatpush1.bf16.msra.mxu0 %v8062_v59  ;;  %v8116_v27 = vld [vmem:[%s9842_s12 + $0x2e0] ss:$8 sps:$4 sm:$0xff]   ;;  %v8124_v38 = vld [vmem:[%s9842_s12 + $0x2d4] ss:$8 sps:$4 sm:$0xff]   ;;  %v8122_v46 = vld [vmem:[%s9842_s12 + $0x2d0] ss:$8 sps:$4 sm:$0xff]  }
0x1157   : > { %6303 = vmatpush1.bf16.msra.mxu1 %v8065_v12  ;;  %v5282_v53 = vpop.f32.mrf.mxu0  ;;  %v5323_v55 = vpop.f32.mrf.mxu1  ;;  %6263 = vmatprep.subr.bf16.mxu0 %v8070_v50  ;;  %v8119_v23 = vld [vmem:[%s9842_s12 + $0x3e0] ss:$8 sps:$4 sm:$0xff]   ;;  %v8127_v29 = vld [vmem:[%s9842_s12 + $0x3d4] ss:$8 sps:$4 sm:$0xff]   ;;  %v8125_v22 = vld [vmem:[%s9842_s12 + $0x3d0] ss:$8 sps:$4 sm:$0xff]  }
0x1158   : > { %v5388_v6 = vmax.f32 %v5380_v36, 0.0  ;;  %v5390_v56 = vmax.f32 %v5382_v60, 0.0  ;;  %6304 = vmatprep.subr.bf16.mxu1 %v8073_v40  ;;  %v8130_v59 = vld [vmem:[%s9842_s12 + $0x2c4] ss:$8 sps:$4 sm:$0xff]   ;;  %v8128_v62 = vld [vmem:[%s9842_s12 + $0x2c0] ss:$8 sps:$4 sm:$0xff]  }
0x1159   : > { %v8133_v44 = vld [vmem:[%s9842_s12 + $0x3c4] ss:$8 sps:$4 sm:$0xff]   ;;  %v8131_v34 = vld [vmem:[%s9842_s12 + $0x3c0] ss:$8 sps:$4 sm:$0xff]   ;;  %v8136_v63 = vld [vmem:[%s9842_s12 + $0x2b4] ss:$8 sps:$4 sm:$0xff]  }
0x115a   : > { %v5524_v5 = vpack.c.bf16 %v5388_v6, %v5388_v6  ;;  %v5526_v61 = vpack.c.bf16 %v5390_v56, %v5390_v56  ;;  %6264 = vmatpush1.bf16.msra.mxu0 %v8068_v43  ;;  %v8139_v12 = vld [vmem:[%s9842_s12 + $0x3b4] ss:$8 sps:$4 sm:$0xff]   ;;  %v8134_v50 = vld [vmem:[%s9842_s12 + $0x2b0] ss:$8 sps:$4 sm:$0xff]   ;;  %v8142_v0 = vld [vmem:[%s9842_s12 + $0x2a4] ss:$8 sps:$4 sm:$0xff]  }
0x115b   : > { %6305 = vmatpush1.bf16.msra.mxu1 %v8071_v48  ;;  %6265 = vmatprep.subr.bf16.mxu0 %v8076_v51  ;;  %v8137_v10 = vld [vmem:[%s9842_s12 + $0x3b0] ss:$8 sps:$4 sm:$0xff]   ;;  %v8145_v40 = vld [vmem:[%s9842_s12 + $0x3a4] ss:$8 sps:$4 sm:$0xff]   ;;  %v8140_v2 = vld [vmem:[%s9842_s12 + $0x2a0] ss:$8 sps:$4 sm:$0xff]  }
0x115c   : > { %6293 = vmatprep.mubr.bf16.mxu0 %v5524_v5  ;;  %6306 = vmatprep.subr.bf16.mxu1 %v8079_v41  ;;  %v8143_v4 = vld [vmem:[%s9842_s12 + $0x3a0] ss:$8 sps:$4 sm:$0xff]   ;;  %v8148_v36 = vld [vmem:[%s9842_s12 + $0x294] ss:$8 sps:$4 sm:$0xff]   ;;  %v8146_v43 = vld [vmem:[%s9842_s12 + $0x290] ss:$8 sps:$4 sm:$0xff]  }
0x115d   : > { %6334 = vmatprep.mubr.bf16.mxu1 %v5526_v61  ;;  %v8151_v60 = vld [vmem:[%s9842_s12 + $0x394] ss:$8 sps:$4 sm:$0xff]   ;;  %v8149_v53 = vld [vmem:[%s9842_s12 + $0x390] ss:$8 sps:$4 sm:$0xff]   ;;  %v8154_v55 = vld [vmem:[%s9842_s12 + $0x284] ss:$8 sps:$4 sm:$0xff]  }
0x115e   : > { %6266 = vmatpush1.bf16.msra.mxu0 %v8074_v21  ;;  %v8157_v48 = vld [vmem:[%s9842_s12 + $0x384] ss:$8 sps:$4 sm:$0xff]   ;;  %v8152_v51 = vld [vmem:[%s9842_s12 + $0x280] ss:$8 sps:$4 sm:$0xff]   ;;  %v5387_v6 = vmax.f32 %v9631_v25, 0.0  ;;  %v5389_v41 = vmax.f32 %v9633_v9, 0.0 }
0x115f   : > { %6307 = vmatpush1.bf16.msra.mxu1 %v8077_v58  ;;  %6267 = vmatprep.subr.bf16.mxu0 %v8082_v45  ;;  %v8155_v56 = vld [vmem:[%s9842_s12 + $0x380] ss:$8 sps:$4 sm:$0xff]  }
0x1160   : > { %6308 = vmatprep.subr.bf16.mxu1 %v8085_v17  ;;  %v5523_v5 = vpack.c.bf16 %v5387_v6, %v5387_v6  ;;  %v5525_v61 = vpack.c.bf16 %v5389_v41, %v5389_v41 }
0x1162   : > { %6268 = vmatpush1.bf16.msra.mxu0 %v8080_v11 }
0x1163   : > { %6309 = vmatpush1.bf16.msra.mxu1 %v8083_v14  ;;  %6269 = vmatprep.subr.bf16.mxu0 %v8088_v15 }
0x1164   : > { %6310 = vmatprep.subr.bf16.mxu1 %v8091_v32  ;;  %v5527_v32 = vld [vmem:[%s9843_s13] sm:$0x3] }
0x1165   : > { %v6172_v9 = vrot.slane %v5527_v32, %v5337_v16 }
0x1166   : > { %6270 = vmatpush1.bf16.msra.mxu0 %v8086_v24  ;;  %v6176_v24 = vrot.slane %v5527_v32, %v5341_v31 }
0x1167   : > { %6311 = vmatpush1.bf16.msra.mxu1 %v8089_v52  ;;  %6271 = vmatprep.subr.bf16.mxu0 %v8094_v3 }
0x1168   : > { %6312 = vmatprep.subr.bf16.mxu1 %v8097_v13 }
0x116a   : > { %6272 = vmatpush1.bf16.msra.mxu0 %v8092_v57  ;;  %v8262_v57 = vmov 1966171168  }
0x116b   : > { %6313 = vmatpush1.bf16.msra.mxu1 %v8095_v7  ;;  %6273 = vmatprep.subr.bf16.mxu0 %v8100_v19  ;;  %v6349_v7 = vunpack.c.l.s4 %v8262_v57 }
0x116c   : > { %6314 = vmatprep.subr.bf16.mxu1 %v8103_v18 }
0x116e   : > { %6274 = vmatpush1.bf16.msra.mxu0 %v8098_v8 }
0x116f   : > { %6315 = vmatpush1.bf16.msra.mxu1 %v8101_v54  ;;  %6275 = vmatprep.subr.bf16.mxu0 %v8106_v30 }
0x1170   : > { %6316 = vmatprep.subr.bf16.mxu1 %v8109_v1 }
0x1172   : > { %6276 = vmatpush1.bf16.msra.mxu0 %v8104_v20 }
0x1173   : > { %6317 = vmatpush1.bf16.msra.mxu1 %v8107_v28  ;;  %6277 = vmatprep.subr.bf16.mxu0 %v8112_v37  ;;  %v6350_v37 = vunpack.c.0.s8 %v6349_v7 }
0x1174   : > { %6318 = vmatprep.subr.bf16.mxu1 %v8115_v35 }
0x1176   : > { %6278 = vmatpush2.bf16.msra.mxu0 %v8110_v39 }
0x1177   : > { %6319 = vmatpush2.bf16.msra.mxu1 %v8113_v42  ;;  %6279 = vmatprep.subr.bf16.mxu0 %v8118_v47 }
0x1178   : > { %6320 = vmatprep.subr.bf16.mxu1 %v8121_v26  ;;  %v6353_v26 = vsub.s32 %v6350_v37, %v9603_v49 }
0x117a   : > { %6280 = vmatpush2.bf16.msra.mxu0 %v8116_v27 }
0x117b   : > { %6321 = vmatpush2.bf16.msra.mxu1 %v8119_v23  ;;  %6281 = vmatprep.subr.bf16.mxu0 %v8124_v38 }
0x117c   : > { %6322 = vmatprep.subr.bf16.mxu1 %v8127_v29 }
0x117e   : > { %6282 = vmatpush2.bf16.msra.mxu0 %v8122_v46 }
0x117f   : > { %6323 = vmatpush2.bf16.msra.mxu1 %v8125_v22  ;;  %6283 = vmatprep.subr.bf16.mxu0 %v8130_v59 }
0x1180   : > { %6324 = vmatprep.subr.bf16.mxu1 %v8133_v44 }
0x1182   : > { %6284 = vmatpush2.bf16.msra.mxu0 %v8128_v62 }
0x1183   : > { %6325 = vmatpush2.bf16.msra.mxu1 %v8131_v34  ;;  %6285 = vmatprep.subr.bf16.mxu0 %v8136_v63 }
0x1184   : > { %6326 = vmatprep.subr.bf16.mxu1 %v8139_v12 }
0x1186   : > { %6286 = vmatpush2.bf16.msra.mxu0 %v8134_v50 }
0x1187   : > { %6327 = vmatpush2.bf16.msra.mxu1 %v8137_v10  ;;  %6287 = vmatprep.subr.bf16.mxu0 %v8142_v0 }
0x1188   : > { %6328 = vmatprep.subr.bf16.mxu1 %v8145_v40 }
0x118a   : > { %6288 = vmatpush2.bf16.msra.mxu0 %v8140_v2 }
0x118b   : > { %6329 = vmatpush2.bf16.msra.mxu1 %v8143_v4  ;;  %6289 = vmatprep.subr.bf16.mxu0 %v8148_v36 }
0x118c   : > { %6330 = vmatprep.subr.bf16.mxu1 %v8151_v60 }
0x118e   : > { %6290 = vmatpush2.bf16.msra.mxu0 %v8146_v43 }
0x118f   : > { %6331 = vmatpush2.bf16.msra.mxu1 %v8149_v53  ;;  %6291 = vmatprep.subr.bf16.mxu0 %v8154_v55 }
0x1190   : > { %6332 = vmatprep.subr.bf16.mxu1 %v8157_v48 }
0x1192   : > { %6292 = vmatpush2.bf16.msra.mxu0 %v8152_v51 }
0x1193   : > { %6333 = vmatpush2.bf16.msra.mxu1 %v8155_v56 }
0x1195   : > { %6294 = vmatmul.mubr.bf16.vlgmr.msra.gmra.mxu0 %v5523_v5 }
0x1196   : > { %6335 = vmatmul.mubr.bf16.vlgmr.msra.gmra.mxu1 %v5525_v61 }
0x1215   : > { %v6213_v21 = vpop.f32.mrf.mxu0 }
0x1216   : > { %v6254_v58 = vpop.f32.mrf.mxu1  ;;  %v6214_v52 = vadd.f32 %v6213_v21, %v6172_v9 }
0x1217   : > { %v6215_v45 = vpop.f32.mrf.mxu0 }
0x1218   : > { %v6256_v17 = vpop.f32.mrf.mxu1  ;;  %v6216_v3 = vadd.f32 %v6215_v45, %v6176_v24  ;;  %v6255_v13 = vadd.f32 %v6254_v58, %v6214_v52 }
0x1219   : > { %v6217_v25 = vpop.f32.mrf.mxu0 }
0x121a   : > { %v6258_v11 = vpop.f32.mrf.mxu1  ;;  %v6257_v18 = vadd.f32 %v6256_v17, %v6216_v3 }
0x121b   : > { %v6218_v14 = vpop.f32.mrf.mxu0 }
0x121c   : > { %v6259_v15 = vpop.f32.mrf.mxu1 }
0x1255   : > { %v6295_v19 = vpop.f32.mrf.mxu0 }
0x1256   : > { %v6296_v8 = vadd.f32 %v6295_v19, %v6255_v13  ;;  %v6336_v54 = vpop.f32.mrf.mxu1 }
0x1257   : > { %v6297_v30 = vpop.f32.mrf.mxu0 }
0x1258   : > { %v6337_v1 = vadd.f32 %v6336_v54, %v6296_v8  ;;  %v6298_v20 = vadd.f32 %v6297_v30, %v6257_v18  ;;  %v6338_v28 = vpop.f32.mrf.mxu1 }
0x1259   : > { %v6299_v35 = vpop.f32.mrf.mxu0 }
0x125a   : > { %v6339_v16 = vadd.f32 %v6338_v28, %v6298_v20  ;;  %v6340_v39 = vpop.f32.mrf.mxu1  ;;  %v6343_v31 = vmax.f32 %v6337_v1, 0.0 }
0x125b   : > { %v6300_v42 = vpop.f32.mrf.mxu0 }
0x125c   : > { %v6344_v47 = vmax.f32 %v6339_v16, 0.0  ;;  %v6341_v27 = vpop.f32.mrf.mxu1 }
0x125e   : > { %v6347_v23 = vcombine.low %v6343_v31, %v6344_v47 }
0x1260   : > { %v6354_v38 = vrot.slane %v6347_v23, %v6353_v26 }
0x1262   : > { %v6361_v29 = vrot.slane %v6354_v38, %v6353_v26 }
0x1264   : > { %6367 = vst.msk [vmem:[%s509_s17] sm:$0x3] %vm6365_vm6, %v6361_v29 }
0x1265 PF: > { %s26_s29 = sadd.s32 1, %s8250_s29  }
0x1266   : > { %p23_p2 = scmp.ge.s32.totalorder %s26_s29, 4  }
0x1268   :  { %25 = sbr.rel (!%p23_p2) target bundleno = 2 (0x2), region = 170 }
0x126d   :  { %6387 = vsyncpa [#allocation3], 1 }
0x126e   :  { %6389 = vsyncpa [#allocation3 + $0x1], 1 }
0x126f   :  { %6390 = vsyncpa [#allocation5], 1 }

</bundles_post_ra>
